<compile_context>
chip_gen: v6e
topology: v6e:2x2x1
jax: 0.10.0
libtpu: 0.0.40
codegen_flags: <defaults>
</compile_context>

<pallas_src>
import functools

import jax
import jax.numpy as jnp
import numpy as np
from jax.experimental import pallas as pl
from jax.experimental.pallas import tpu as pltpu

LEAKY_SLOPE = 0.01        # PyTorch nn.LeakyReLU default
SCALE_BOUND = 0.11        # lower bound on conditional scale
LIKELIHOOD_BOUND = 1e-9   # lower bound on likelihood


# -----------------------------------------------------------------------------
# Pallas kernel: one grid step == (batch tile n, coding group g)
# -----------------------------------------------------------------------------
def _group_context_kernel(
    y_prev_ref,   # (BN, H, W, C)  f32  input fed to the ConvLSTM (prev group / 0)
    y_cur_ref,    # (BN, H, W, C)  f32  quantized symbols of the current group
    cond0_ref,    # (BN, H, W, P)  f32  initial LSTM hidden/cell state
    w_lstm_ref,   # (9*(C+P), 4P)  bf16 ConvLSTM 3x3 gate weights, tap-major rows
    b_lstm_ref,   # (1, 4P)        f32
    w_r1h_ref,    # (P, 2C)        bf16 reparam conv1 (1x1), hidden rows
    w_r1y_ref,    # (C, 2C)        bf16 reparam conv1 (1x1), yi rows
    b_r1_ref,     # (1, 2C)        f32
    w_r2_ref,     # (9*2C, 2C)     bf16 reparam conv2 (3x3), tap-major rows
    b_r2_ref,     # (1, 2C)        f32
    w_r3_ref,     # (2C, 2C)       bf16 reparam conv3 (1x1) -> [mean | scale]
    b_r3_ref,     # (1, 2C)        f32
    ll_ref,       # (BN, H, W, C)  f32  output: per-group likelihood
    h_ref,        # scratch (BN, H, W, P)                 LSTM hidden state
    c_ref,        # scratch (BN, H, W, P)                 LSTM cell state
    pad1_ref,     # scratch (BN, H+2, W+2, C+P)           zero-padded LSTM input
    pad2_ref,     # scratch (BN, H+2, W+2, 2C)            zero-padded reparam input
    col1_ref,     # scratch (BN, H, W, 9*(C+P))           im2col for LSTM conv
    col2_ref,     # scratch (BN, H, W, 9*2C)              im2col for reparam conv2
    *, BN, H, W, C, P):
  g = pl.program_id(1)          # group axis (sequential recurrence)
  rows = BN * H * W
  CIN1 = C + P
  C2 = 2 * C

  @pl.when(g == 0)
  def _():
    # Zero the padded scratch once per batch tile: only the 1-px border has to
    # stay zero, the interior is fully overwritten every group.  Also seed the
    # ConvLSTM state from the condition.
    pad1_ref[...] = jnp.zeros_like(pad1_ref)
    pad2_ref[...] = jnp.zeros_like(pad2_ref)
    h_ref[...] = cond0_ref[...]
    c_ref[...] = cond0_ref[...]

  yi = y_prev_ref[...]                                   # (BN,H,W,C) f32

  # ---- ConvLSTM gates: im2col + ONE (rows, 9*CIN1) @ (9*CIN1, 4P) matmul ----
  pad1_ref[:, 1:H + 1, 1:W + 1, 0:C] = yi
  pad1_ref[:, 1:H + 1, 1:W + 1, C:CIN1] = h_ref[...]
  for k in range(9):                                     # build im2col columns
    dy, dx = k // 3, k % 3
    col1_ref[:, :, :, k * CIN1:(k + 1) * CIN1] = pad1_ref[:, dy:dy + H,
                                                          dx:dx + W, :]
  gates = jnp.dot(
      col1_ref[...].reshape(rows, 9 * CIN1).astype(jnp.bfloat16),
      w_lstm_ref[...], preferred_element_type=jnp.float32) + b_lstm_ref[...]

  i_g = jax.nn.sigmoid(gates[:, 0 * P:1 * P])
  f_g = jax.nn.sigmoid(gates[:, 1 * P:2 * P])
  o_g = jax.nn.sigmoid(gates[:, 2 * P:3 * P])
  g_g = jnp.tanh(gates[:, 3 * P:4 * P])

  c_new = f_g * c_ref[...].reshape(rows, P) + i_g * g_g
  h_new = o_g * jnp.tanh(c_new)
  c_ref[...] = c_new.reshape(BN, H, W, P)
  h_ref[...] = h_new.reshape(BN, H, W, P)

  # ---- reparam: 1x1 -> LeakyReLU -> 3x3 (im2col) -> LeakyReLU -> 1x1 ----
  yi_flat = yi.reshape(rows, C)
  t = (jnp.dot(h_new.astype(jnp.bfloat16), w_r1h_ref[...],
               preferred_element_type=jnp.float32)
       + jnp.dot(yi_flat.astype(jnp.bfloat16), w_r1y_ref[...],
                 preferred_element_type=jnp.float32)
       + b_r1_ref[...])
  t = jnp.where(t >= 0, t, LEAKY_SLOPE * t)

  pad2_ref[:, 1:H + 1, 1:W + 1, :] = t.reshape(BN, H, W, C2)
  for k in range(9):
    dy, dx = k // 3, k % 3
    col2_ref[:, :, :, k * C2:(k + 1) * C2] = pad2_ref[:, dy:dy + H, dx:dx + W, :]
  u = jnp.dot(
      col2_ref[...].reshape(rows, 9 * C2).astype(jnp.bfloat16),
      w_r2_ref[...], preferred_element_type=jnp.float32) + b_r2_ref[...]
  u = jnp.where(u >= 0, u, LEAKY_SLOPE * u)

  cond = jnp.dot(u.astype(jnp.bfloat16), w_r3_ref[...],
                 preferred_element_type=jnp.float32) + b_r3_ref[...]
  mean = cond[:, 0:C]
  scale = jnp.maximum(jnp.abs(cond[:, C:C2]), SCALE_BOUND)

  # ---- conditional logistic likelihood of the current group (kept in f32) ----
  y = y_cur_ref[...].reshape(rows, C)
  centered = y - mean
  inv_scale = pl.reciprocal(scale, approx=True)   # EUP; replaces two divisions
  upper = jax.nn.sigmoid((centered + 0.5) * inv_scale)
  lower = jax.nn.sigmoid((centered - 0.5) * inv_scale)
  ll = jnp.maximum(upper - lower, LIKELIHOOD_BOUND)
  ll_ref[...] = ll.reshape(BN, H, W, C)


# -----------------------------------------------------------------------------
# pallas_call wrapper
# -----------------------------------------------------------------------------
def group_context_pallas(y_prev, y_cur, cond0, params, batch_block=1):
  """y_prev, y_cur: (4, N, H, W, C) group-major NHWC; cond0: (N, H, W, P)."""
  G, N, H, W, C = y_cur.shape
  assert G == 4
  P = cond0.shape[-1]
  BN = batch_block
  assert N % BN == 0, "batch_block must divide N"
  n_tiles = N // BN
  CIN1 = C + P
  C2 = 2 * C

  kernel = functools.partial(_group_context_kernel, BN=BN, H=H, W=W, C=C, P=P)

  # bf16 copies of the MXU operands (weights); biases stay f32.
  w_lstm = params["w_lstm"].astype(jnp.bfloat16)
  w_r1h = params["w_r1"][:P].astype(jnp.bfloat16)
  w_r1y = params["w_r1"][P:].astype(jnp.bfloat16)
  w_r2 = params["w_r2"].astype(jnp.bfloat16)
  w_r3 = params["w_r3"].astype(jnp.bfloat16)
  b_lstm, b_r1 = params["b_lstm"], params["b_r1"]
  b_r2, b_r3 = params["b_r2"], params["b_r3"]

  grp_spec = pl.BlockSpec((None, BN, H, W, C), lambda n, g: (g, n, 0, 0, 0))
  cond_spec = pl.BlockSpec((BN, H, W, P), lambda n, g: (n, 0, 0, 0))

  def full(arr):
    return pl.BlockSpec(arr.shape, lambda n, g, nd=arr.ndim: (0,) * nd)

  ll = pl.pallas_call(
      kernel,
      out_shape=jax.ShapeDtypeStruct((4, N, H, W, C), jnp.float32),
      grid_spec=pltpu.PrefetchScalarGridSpec(
          num_scalar_prefetch=0,
          grid=(n_tiles, 4),          # batch tiles (parallel) x groups (carry)
          in_specs=[
              grp_spec, grp_spec, cond_spec,
              full(w_lstm), full(b_lstm),
              full(w_r1h), full(w_r1y), full(b_r1),
              full(w_r2), full(b_r2),
              full(w_r3), full(b_r3),
          ],
          out_specs=pl.BlockSpec((None, BN, H, W, C),
                                 lambda n, g: (g, n, 0, 0, 0)),
          scratch_shapes=[
              pltpu.VMEM((BN, H, W, P), jnp.float32),              # h state
              pltpu.VMEM((BN, H, W, P), jnp.float32),              # c state
              pltpu.VMEM((BN, H + 2, W + 2, CIN1), jnp.float32),   # padded LSTM in
              pltpu.VMEM((BN, H + 2, W + 2, C2), jnp.float32),     # padded reparam in
              pltpu.VMEM((BN, H, W, 9 * CIN1), jnp.float32),       # im2col (LSTM)
              pltpu.VMEM((BN, H, W, 9 * C2), jnp.float32),         # im2col (reparam)
          ]),
      compiler_params=pltpu.CompilerParams(
          # group axis MUST stay "arbitrary" (LSTM carry); only the batch-tile
          # axis is parallel (megacore / v7x VMEM cap).
          dimension_semantics=("parallel", "arbitrary"),
          # explicit scoped-VMEM budget; re-size per working set when scaling
          # H/W/N (32 MiB is safe on v5e/v6e/v7x and vastly exceeds this demo).
          vmem_limit_bytes=32 * 1024 * 1024),
  )(y_prev, y_cur, cond0, w_lstm, b_lstm, w_r1h, w_r1y, b_r1,
    w_r2, b_r2, w_r3, b_r3)
  return ll


# -----------------------------------------------------------------------------
# Plain-JAX glue (reshapes / layout only)
# -----------------------------------------------------------------------------
def space_to_depth_nchw(x, bs=2):
  n, c, h, w = x.shape
  x = x.reshape(n, c, h // bs, bs, w // bs, bs)
  x = jnp.transpose(x, (0, 3, 5, 1, 2, 4))          # offset-major channel order
  return x.reshape(n, c * bs * bs, h // bs, w // bs)


def depth_to_space_nchw(x, bs=2):
  n, c4, h, w = x.shape
  c = c4 // (bs * bs)
  x = x.reshape(n, bs, bs, c, h, w)
  x = jnp.transpose(x, (0, 3, 4, 1, 5, 2))
  return x.reshape(n, c, h * bs, w * bs)


def _to_nhwc(a):
  return jnp.transpose(a, (0, 2, 3, 1))


def prepare_groups(x_nchw, cond_nchw):
  output = jnp.round(x_nchw)                        # quantize(..., 'round')
  y_s2d = space_to_depth_nchw(output, 2)            # (N, 4C, H/2, W/2)
  N, C4, H2, W2 = y_s2d.shape
  C = C4 // 4
  groups = [_to_nhwc(y_s2d[:, g * C:(g + 1) * C]) for g in range(4)]
  if cond_nchw.shape[-2:] == x_nchw.shape[-2:]:
    cond_nchw = space_to_depth_nchw(cond_nchw, 2)
  y_cur = jnp.stack(groups, axis=0)                                # (4,N,H2,W2,C)
  y_prev = jnp.stack([jnp.zeros_like(groups[0])] + groups[:3], axis=0)
  cond0 = _to_nhwc(cond_nchw)                                      # (N,H2,W2,P)
  return output, y_prev, y_cur, cond0, (N, C, H2, W2)


def group_context_model2_forward(x_nchw, cond_nchw, params, batch_block=1):
  output, y_prev, y_cur, cond0, _ = prepare_groups(x_nchw, cond_nchw)
  ll_stack = group_context_pallas(y_prev, y_cur, cond0, params, batch_block)
  lls = [jnp.transpose(ll_stack[g], (0, 3, 1, 2)) for g in range(4)]
  likelihood = depth_to_space_nchw(jnp.concatenate(lls, axis=1), 2)
  return output, likelihood


# -----------------------------------------------------------------------------
# Deterministic parameter init (shapes follow the module's __init__)
# -----------------------------------------------------------------------------
def init_params(key, C, P, condition_size=2):
  ks = jax.random.split(key, 8)
  def w(k, shape, s=0.1):
    return s * jax.random.normal(k, shape, jnp.float32)
  CIN1 = C + P
  C2 = 2 * C
  return dict(
      w_lstm=w(ks[0], (9 * CIN1, 4 * P)),
      b_lstm=w(ks[1], (1, 4 * P)),
      w_r1=w(ks[2], (P + C, C2)),
      b_r1=w(ks[3], (1, C2)),
      w_r2=w(ks[4], (9 * C2, C2)),
      b_r2=w(ks[5], (1, C2)),
      w_r3=w(ks[6], (C2, C * condition_size)),
      b_r3=w(ks[7], (1, C * condition_size)),
  )


# -----------------------------------------------------------------------------
# Pure-JAX reference (same math, bf16 MXU operands like the kernel, no Pallas)
# -----------------------------------------------------------------------------
def _leaky(x):
  return jnp.where(x >= 0, x, LEAKY_SLOPE * x)


def _conv3x3_ref(x, w_taps, b):
  n, hh, ww, cin = x.shape
  xp = jnp.pad(x, ((0, 0), (1, 1), (1, 1), (0, 0)))
  cols = jnp.concatenate(
      [xp[:, dy:dy + hh, dx:dx + ww, :] for dy in range(3) for dx in range(3)],
      axis=-1).reshape(-1, 9 * cin)
  out = jnp.dot(cols.astype(jnp.bfloat16), w_taps.astype(jnp.bfloat16),
                preferred_element_type=jnp.float32)
  return out.reshape(n, hh, ww, -1) + b.reshape(1, 1, 1, -1)


def _conv1x1_ref(x, w, b):
  n, hh, ww, cin = x.shape
  out = jnp.dot(x.reshape(-1, cin).astype(jnp.bfloat16),
                w.astype(jnp.bfloat16), preferred_element_type=jnp.float32)
  return out.reshape(n, hh, ww, -1) + b.reshape(1, 1, 1, -1)


def forward_ref(y_prev, y_cur, cond0, p, C, P):
  h = cond0
  c = cond0
  lls = []
  for g in range(4):
    yi = y_prev[g]
    gates = _conv3x3_ref(jnp.concatenate([yi, h], -1), p["w_lstm"], p["b_lstm"])
    i_g = jax.nn.sigmoid(gates[..., 0 * P:1 * P])
    f_g = jax.nn.sigmoid(gates[..., 1 * P:2 * P])
    o_g = jax.nn.sigmoid(gates[..., 2 * P:3 * P])
    g_g = jnp.tanh(gates[..., 3 * P:4 * P])
    c = f_g * c + i_g * g_g
    h = o_g * jnp.tanh(c)
    t = _leaky(_conv1x1_ref(jnp.concatenate([h, yi], -1), p["w_r1"], p["b_r1"]))
    u = _leaky(_conv3x3_ref(t, p["w_r2"], p["b_r2"]))
    cond = _conv1x1_ref(u, p["w_r3"], p["b_r3"])
    mean = cond[..., :C]
    scale = jnp.maximum(jnp.abs(cond[..., C:]), SCALE_BOUND)
    centered = y_cur[g] - mean
    ll = jax.nn.sigmoid((centered + 0.5) / scale) - \
        jax.nn.sigmoid((centered - 0.5) / scale)
    lls.append(jnp.maximum(ll, LIKELIHOOD_BOUND))
  return jnp.stack(lls, axis=0)


# -----------------------------------------------------------------------------
if __name__ == "__main__":
  key = jax.random.PRNGKey(0)
  N, C, P, H, W = 2, 4, 8, 16, 16          # num_features=4, num_phi_features=8
  k1, k2, k3 = jax.random.split(key, 3)
  x = 4.0 * jax.random.normal(k1, (N, C, H, W), jnp.float32)
  # condition has the same spatial size as input -> space_to_depth path taken;
  # P//4 channels so it becomes (N, P, H/2, W/2) after space_to_depth.
  condition = jax.random.normal(k2, (N, P // 4, H, W), jnp.float32)
  params = init_params(k3, C, P)

  output, likelihood = group_context_model2_forward(x, condition, params)
  jax.block_until_ready((output, likelihood))

  # Correctness check against the pure-JAX reference (same bf16 MXU precision;
  # remaining delta is the kernel's approximate reciprocal in the likelihood).
  _, y_prev, y_cur, cond0, _dims = prepare_groups(x, condition)
  ll_kernel = group_context_pallas(y_prev, y_cur, cond0, params)
  ll_ref = forward_ref(y_prev, y_cur, cond0, params, C, P)
  np.testing.assert_allclose(np.asarray(ll_kernel), np.asarray(ll_ref),
                             rtol=1e-2, atol=2e-3)
  assert output.shape == (N, C, H, W)
  assert likelihood.shape == (N, C, H, W)

  print("KERNEL_OK")
</pallas_src>

<mosaic_0001>
module attributes {stable_mosaic.version = 11 : i64} {
  func.func @_group_context_kernel(%arg0: i32, %arg1: i32, %arg2: memref<1x1x8x8x4xf32, #tpu.memory_space<vmem>>, %arg3: memref<1x1x8x8x4xf32, #tpu.memory_space<vmem>>, %arg4: memref<1x8x8x8xf32, #tpu.memory_space<vmem>>, %arg5: memref<108x32xbf16, #tpu.memory_space<vmem>>, %arg6: memref<1x32xf32, #tpu.memory_space<vmem>>, %arg7: memref<8x8xbf16, #tpu.memory_space<vmem>>, %arg8: memref<4x8xbf16, #tpu.memory_space<vmem>>, %arg9: memref<1x8xf32, #tpu.memory_space<vmem>>, %arg10: memref<72x8xbf16, #tpu.memory_space<vmem>>, %arg11: memref<1x8xf32, #tpu.memory_space<vmem>>, %arg12: memref<8x8xbf16, #tpu.memory_space<vmem>>, %arg13: memref<1x8xf32, #tpu.memory_space<vmem>>, %arg14: memref<1x1x8x8x4xf32, #tpu.memory_space<vmem>>, %arg15: memref<1x8x8x8xf32, #tpu.memory_space<vmem>>, %arg16: memref<1x8x8x8xf32, #tpu.memory_space<vmem>>, %arg17: memref<1x10x10x12xf32, #tpu.memory_space<vmem>>, %arg18: memref<1x10x10x8xf32, #tpu.memory_space<vmem>>, %arg19: memref<1x8x8x108xf32, #tpu.memory_space<vmem>>, %arg20: memref<1x8x8x72xf32, #tpu.memory_space<vmem>>) attributes {dimension_semantics = [#tpu.dimension_semantics<parallel>, #tpu.dimension_semantics<arbitrary>], iteration_bounds = array<i64: 2, 4>, scalar_prefetch = 0 : i64, scratch_operands = 6 : i64, tpu.core_type = #tpu.core_type<tc>, window_params = [{transform_indices = @transform_0, window_bounds = array<i64: 1, 1, 8, 8, 4>}, {transform_indices = @transform_1, window_bounds = array<i64: 1, 1, 8, 8, 4>}, {transform_indices = @transform_2, window_bounds = array<i64: 1, 8, 8, 8>}, {pipeline_mode = #tpu.pipeline_mode<synchronous>, transform_indices = @transform_3, window_bounds = array<i64: 108, 32>}, {pipeline_mode = #tpu.pipeline_mode<synchronous>, transform_indices = @transform_4, window_bounds = array<i64: 1, 32>}, {pipeline_mode = #tpu.pipeline_mode<synchronous>, transform_indices = @transform_5, window_bounds = array<i64: 8, 8>}, {pipeline_mode = #tpu.pipeline_mode<synchronous>, transform_indices = @transform_6, window_bounds = array<i64: 4, 8>}, {pipeline_mode = #tpu.pipeline_mode<synchronous>, transform_indices = @transform_7, window_bounds = array<i64: 1, 8>}, {pipeline_mode = #tpu.pipeline_mode<synchronous>, transform_indices = @transform_8, window_bounds = array<i64: 72, 8>}, {pipeline_mode = #tpu.pipeline_mode<synchronous>, transform_indices = @transform_9, window_bounds = array<i64: 1, 8>}, {pipeline_mode = #tpu.pipeline_mode<synchronous>, transform_indices = @transform_10, window_bounds = array<i64: 8, 8>}, {pipeline_mode = #tpu.pipeline_mode<synchronous>, transform_indices = @transform_11, window_bounds = array<i64: 1, 8>}, {transform_indices = @transform_12, window_bounds = array<i64: 1, 1, 8, 8, 4>}]} {
    %c0_i32 = arith.constant 0 : i32
    %0 = arith.cmpi eq, %arg1, %c0_i32 : i32
    %1 = arith.extui %0 : i1 to i32
    %c0_i32_0 = arith.constant 0 : i32
    %2 = arith.cmpi ne, %1, %c0_i32_0 : i32
    scf.if %2 {
      %cst_213 = arith.constant 0.000000e+00 : f32
      %153 = vector.broadcast %cst_213 : f32 to vector<1x10x10x12xf32>
      %c0_214 = arith.constant 0 : index
      %c0_215 = arith.constant 0 : index
      %c0_216 = arith.constant 0 : index
      %c0_217 = arith.constant 0 : index
      %154 = vector.load %arg17[%c0_214, %c0_215, %c0_216, %c0_217] : memref<1x10x10x12xf32, #tpu.memory_space<vmem>>, vector<1x10x10x12xf32>
      tpu.vector_store %arg17[%c0_214, %c0_215, %c0_216, %c0_217], %153 {strides = array<i32>} : memref<1x10x10x12xf32, #tpu.memory_space<vmem>>, vector<1x10x10x12xf32>,
      %cst_218 = arith.constant 0.000000e+00 : f32
      %155 = vector.broadcast %cst_218 : f32 to vector<1x10x10x8xf32>
      %c0_219 = arith.constant 0 : index
      %c0_220 = arith.constant 0 : index
      %c0_221 = arith.constant 0 : index
      %c0_222 = arith.constant 0 : index
      %156 = vector.load %arg18[%c0_219, %c0_220, %c0_221, %c0_222] : memref<1x10x10x8xf32, #tpu.memory_space<vmem>>, vector<1x10x10x8xf32>
      tpu.vector_store %arg18[%c0_219, %c0_220, %c0_221, %c0_222], %155 {strides = array<i32>} : memref<1x10x10x8xf32, #tpu.memory_space<vmem>>, vector<1x10x10x8xf32>,
      %c0_223 = arith.constant 0 : index
      %c0_224 = arith.constant 0 : index
      %c0_225 = arith.constant 0 : index
      %c0_226 = arith.constant 0 : index
      %157 = vector.load %arg4[%c0_223, %c0_224, %c0_225, %c0_226] : memref<1x8x8x8xf32, #tpu.memory_space<vmem>>, vector<1x8x8x8xf32>
      %c0_227 = arith.constant 0 : index
      %c0_228 = arith.constant 0 : index
      %c0_229 = arith.constant 0 : index
      %c0_230 = arith.constant 0 : index
      %158 = vector.load %arg15[%c0_227, %c0_228, %c0_229, %c0_230] : memref<1x8x8x8xf32, #tpu.memory_space<vmem>>, vector<1x8x8x8xf32>
      tpu.vector_store %arg15[%c0_227, %c0_228, %c0_229, %c0_230], %157 {strides = array<i32>} : memref<1x8x8x8xf32, #tpu.memory_space<vmem>>, vector<1x8x8x8xf32>,
      %c0_231 = arith.constant 0 : index
      %c0_232 = arith.constant 0 : index
      %c0_233 = arith.constant 0 : index
      %c0_234 = arith.constant 0 : index
      %159 = vector.load %arg4[%c0_231, %c0_232, %c0_233, %c0_234] : memref<1x8x8x8xf32, #tpu.memory_space<vmem>>, vector<1x8x8x8xf32>
      %c0_235 = arith.constant 0 : index
      %c0_236 = arith.constant 0 : index
      %c0_237 = arith.constant 0 : index
      %c0_238 = arith.constant 0 : index
      %160 = vector.load %arg16[%c0_235, %c0_236, %c0_237, %c0_238] : memref<1x8x8x8xf32, #tpu.memory_space<vmem>>, vector<1x8x8x8xf32>
      tpu.vector_store %arg16[%c0_235, %c0_236, %c0_237, %c0_238], %159 {strides = array<i32>} : memref<1x8x8x8xf32, #tpu.memory_space<vmem>>, vector<1x8x8x8xf32>,
    } else {
    }
    %c0 = arith.constant 0 : index
    %c0_1 = arith.constant 0 : index
    %c0_2 = arith.constant 0 : index
    %c0_3 = arith.constant 0 : index
    %c0_4 = arith.constant 0 : index
    %3 = vector.load %arg2[%c0, %c0_1, %c0_2, %c0_3, %c0_4] : memref<1x1x8x8x4xf32, #tpu.memory_space<vmem>>, vector<1x1x8x8x4xf32>
    %4 = vector.shape_cast %3 : vector<1x1x8x8x4xf32> to vector<1x8x8x4xf32>
    %c0_5 = arith.constant 0 : index
    %c1 = arith.constant 1 : index
    %c1_6 = arith.constant 1 : index
    %c0_7 = arith.constant 0 : index
    %5 = vector.load %arg17[%c0_5, %c1, %c1_6, %c0_7] : memref<1x10x10x12xf32, #tpu.memory_space<vmem>>, vector<1x8x8x4xf32>
    tpu.vector_store %arg17[%c0_5, %c1, %c1_6, %c0_7], %4 {strides = array<i32>} : memref<1x10x10x12xf32, #tpu.memory_space<vmem>>, vector<1x8x8x4xf32>,
    %c0_8 = arith.constant 0 : index
    %c0_9 = arith.constant 0 : index
    %c0_10 = arith.constant 0 : index
    %c0_11 = arith.constant 0 : index
    %6 = vector.load %arg15[%c0_8, %c0_9, %c0_10, %c0_11] : memref<1x8x8x8xf32, #tpu.memory_space<vmem>>, vector<1x8x8x8xf32>
    %c0_12 = arith.constant 0 : index
    %c1_13 = arith.constant 1 : index
    %c1_14 = arith.constant 1 : index
    %c4 = arith.constant 4 : index
    %7 = vector.load %arg17[%c0_12, %c1_13, %c1_14, %c4] : memref<1x10x10x12xf32, #tpu.memory_space<vmem>>, vector<1x8x8x8xf32>
    tpu.vector_store %arg17[%c0_12, %c1_13, %c1_14, %c4], %6 {strides = array<i32>} : memref<1x10x10x12xf32, #tpu.memory_space<vmem>>, vector<1x8x8x8xf32>,
    %c0_15 = arith.constant 0 : index
    %c0_16 = arith.constant 0 : index
    %c0_17 = arith.constant 0 : index
    %c0_18 = arith.constant 0 : index
    %8 = vector.load %arg17[%c0_15, %c0_16, %c0_17, %c0_18] : memref<1x10x10x12xf32, #tpu.memory_space<vmem>>, vector<1x8x8x12xf32>
    %c0_19 = arith.constant 0 : index
    %c0_20 = arith.constant 0 : index
    %c0_21 = arith.constant 0 : index
    %c0_22 = arith.constant 0 : index
    %9 = vector.load %arg19[%c0_19, %c0_20, %c0_21, %c0_22] : memref<1x8x8x108xf32, #tpu.memory_space<vmem>>, vector<1x8x8x12xf32>
    tpu.vector_store %arg19[%c0_19, %c0_20, %c0_21, %c0_22], %8 {strides = array<i32>} : memref<1x8x8x108xf32, #tpu.memory_space<vmem>>, vector<1x8x8x12xf32>,
    %c0_23 = arith.constant 0 : index
    %c0_24 = arith.constant 0 : index
    %c1_25 = arith.constant 1 : index
    %c0_26 = arith.constant 0 : index
    %10 = vector.load %arg17[%c0_23, %c0_24, %c1_25, %c0_26] : memref<1x10x10x12xf32, #tpu.memory_space<vmem>>, vector<1x8x8x12xf32>
    %c0_27 = arith.constant 0 : index
    %c0_28 = arith.constant 0 : index
    %c0_29 = arith.constant 0 : index
    %c12 = arith.constant 12 : index
    %11 = vector.load %arg19[%c0_27, %c0_28, %c0_29, %c12] : memref<1x8x8x108xf32, #tpu.memory_space<vmem>>, vector<1x8x8x12xf32>
    tpu.vector_store %arg19[%c0_27, %c0_28, %c0_29, %c12], %10 {strides = array<i32>} : memref<1x8x8x108xf32, #tpu.memory_space<vmem>>, vector<1x8x8x12xf32>,
    %c0_30 = arith.constant 0 : index
    %c0_31 = arith.constant 0 : index
    %c2 = arith.constant 2 : index
    %c0_32 = arith.constant 0 : index
    %12 = vector.load %arg17[%c0_30, %c0_31, %c2, %c0_32] : memref<1x10x10x12xf32, #tpu.memory_space<vmem>>, vector<1x8x8x12xf32>
    %c0_33 = arith.constant 0 : index
    %c0_34 = arith.constant 0 : index
    %c0_35 = arith.constant 0 : index
    %c24 = arith.constant 24 : index
    %13 = vector.load %arg19[%c0_33, %c0_34, %c0_35, %c24] : memref<1x8x8x108xf32, #tpu.memory_space<vmem>>, vector<1x8x8x12xf32>
    tpu.vector_store %arg19[%c0_33, %c0_34, %c0_35, %c24], %12 {strides = array<i32>} : memref<1x8x8x108xf32, #tpu.memory_space<vmem>>, vector<1x8x8x12xf32>,
    %c0_36 = arith.constant 0 : index
    %c1_37 = arith.constant 1 : index
    %c0_38 = arith.constant 0 : index
    %c0_39 = arith.constant 0 : index
    %14 = vector.load %arg17[%c0_36, %c1_37, %c0_38, %c0_39] : memref<1x10x10x12xf32, #tpu.memory_space<vmem>>, vector<1x8x8x12xf32>
    %c0_40 = arith.constant 0 : index
    %c0_41 = arith.constant 0 : index
    %c0_42 = arith.constant 0 : index
    %c36 = arith.constant 36 : index
    %15 = vector.load %arg19[%c0_40, %c0_41, %c0_42, %c36] : memref<1x8x8x108xf32, #tpu.memory_space<vmem>>, vector<1x8x8x12xf32>
    tpu.vector_store %arg19[%c0_40, %c0_41, %c0_42, %c36], %14 {strides = array<i32>} : memref<1x8x8x108xf32, #tpu.memory_space<vmem>>, vector<1x8x8x12xf32>,
    %c0_43 = arith.constant 0 : index
    %c1_44 = arith.constant 1 : index
    %c1_45 = arith.constant 1 : index
    %c0_46 = arith.constant 0 : index
    %16 = vector.load %arg17[%c0_43, %c1_44, %c1_45, %c0_46] : memref<1x10x10x12xf32, #tpu.memory_space<vmem>>, vector<1x8x8x12xf32>
    %c0_47 = arith.constant 0 : index
    %c0_48 = arith.constant 0 : index
    %c0_49 = arith.constant 0 : index
    %c48 = arith.constant 48 : index
    %17 = vector.load %arg19[%c0_47, %c0_48, %c0_49, %c48] : memref<1x8x8x108xf32, #tpu.memory_space<vmem>>, vector<1x8x8x12xf32>
    tpu.vector_store %arg19[%c0_47, %c0_48, %c0_49, %c48], %16 {strides = array<i32>} : memref<1x8x8x108xf32, #tpu.memory_space<vmem>>, vector<1x8x8x12xf32>,
    %c0_50 = arith.constant 0 : index
    %c1_51 = arith.constant 1 : index
    %c2_52 = arith.constant 2 : index
    %c0_53 = arith.constant 0 : index
    %18 = vector.load %arg17[%c0_50, %c1_51, %c2_52, %c0_53] : memref<1x10x10x12xf32, #tpu.memory_space<vmem>>, vector<1x8x8x12xf32>
    %c0_54 = arith.constant 0 : index
    %c0_55 = arith.constant 0 : index
    %c0_56 = arith.constant 0 : index
    %c60 = arith.constant 60 : index
    %19 = vector.load %arg19[%c0_54, %c0_55, %c0_56, %c60] : memref<1x8x8x108xf32, #tpu.memory_space<vmem>>, vector<1x8x8x12xf32>
    tpu.vector_store %arg19[%c0_54, %c0_55, %c0_56, %c60], %18 {strides = array<i32>} : memref<1x8x8x108xf32, #tpu.memory_space<vmem>>, vector<1x8x8x12xf32>,
    %c0_57 = arith.constant 0 : index
    %c2_58 = arith.constant 2 : index
    %c0_59 = arith.constant 0 : index
    %c0_60 = arith.constant 0 : index
    %20 = vector.load %arg17[%c0_57, %c2_58, %c0_59, %c0_60] : memref<1x10x10x12xf32, #tpu.memory_space<vmem>>, vector<1x8x8x12xf32>
    %c0_61 = arith.constant 0 : index
    %c0_62 = arith.constant 0 : index
    %c0_63 = arith.constant 0 : index
    %c72 = arith.constant 72 : index
    %21 = vector.load %arg19[%c0_61, %c0_62, %c0_63, %c72] : memref<1x8x8x108xf32, #tpu.memory_space<vmem>>, vector<1x8x8x12xf32>
    tpu.vector_store %arg19[%c0_61, %c0_62, %c0_63, %c72], %20 {strides = array<i32>} : memref<1x8x8x108xf32, #tpu.memory_space<vmem>>, vector<1x8x8x12xf32>,
    %c0_64 = arith.constant 0 : index
    %c2_65 = arith.constant 2 : index
    %c1_66 = arith.constant 1 : index
    %c0_67 = arith.constant 0 : index
    %22 = vector.load %arg17[%c0_64, %c2_65, %c1_66, %c0_67] : memref<1x10x10x12xf32, #tpu.memory_space<vmem>>, vector<1x8x8x12xf32>
    %c0_68 = arith.constant 0 : index
    %c0_69 = arith.constant 0 : index
    %c0_70 = arith.constant 0 : index
    %c84 = arith.constant 84 : index
    %23 = vector.load %arg19[%c0_68, %c0_69, %c0_70, %c84] : memref<1x8x8x108xf32, #tpu.memory_space<vmem>>, vector<1x8x8x12xf32>
    tpu.vector_store %arg19[%c0_68, %c0_69, %c0_70, %c84], %22 {strides = array<i32>} : memref<1x8x8x108xf32, #tpu.memory_space<vmem>>, vector<1x8x8x12xf32>,
    %c0_71 = arith.constant 0 : index
    %c2_72 = arith.constant 2 : index
    %c2_73 = arith.constant 2 : index
    %c0_74 = arith.constant 0 : index
    %24 = vector.load %arg17[%c0_71, %c2_72, %c2_73, %c0_74] : memref<1x10x10x12xf32, #tpu.memory_space<vmem>>, vector<1x8x8x12xf32>
    %c0_75 = arith.constant 0 : index
    %c0_76 = arith.constant 0 : index
    %c0_77 = arith.constant 0 : index
    %c96 = arith.constant 96 : index
    %25 = vector.load %arg19[%c0_75, %c0_76, %c0_77, %c96] : memref<1x8x8x108xf32, #tpu.memory_space<vmem>>, vector<1x8x8x12xf32>
    tpu.vector_store %arg19[%c0_75, %c0_76, %c0_77, %c96], %24 {strides = array<i32>} : memref<1x8x8x108xf32, #tpu.memory_space<vmem>>, vector<1x8x8x12xf32>,
    %c0_78 = arith.constant 0 : index
    %c0_79 = arith.constant 0 : index
    %c0_80 = arith.constant 0 : index
    %c0_81 = arith.constant 0 : index
    %26 = vector.load %arg19[%c0_78, %c0_79, %c0_80, %c0_81] : memref<1x8x8x108xf32, #tpu.memory_space<vmem>>, vector<1x8x8x108xf32>
    %27 = vector.shape_cast %26 : vector<1x8x8x108xf32> to vector<64x108xf32>
    %28 = arith.truncf %27 : vector<64x108xf32> to vector<64x108xbf16>
    %c0_82 = arith.constant 0 : index
    %c0_83 = arith.constant 0 : index
    %29 = vector.load %arg5[%c0_82, %c0_83] : memref<108x32xbf16, #tpu.memory_space<vmem>>, vector<108x32xbf16>
    %cst = arith.constant dense<0.000000e+00> : vector<64x32xf32>
    %30 = tpu.matmul %28, %29, %cst {dimension_numbers = #tpu.dot_dimension_numbers<[1], [0], [0], [1], [0, 0, 1, 1], [], []>} : vector<64x108xbf16>, vector<108x32xbf16>, vector<64x32xf32> -> vector<64x32xf32>
    %c0_84 = arith.constant 0 : index
    %c0_85 = arith.constant 0 : index
    %31 = vector.load %arg6[%c0_84, %c0_85] : memref<1x32xf32, #tpu.memory_space<vmem>>, vector<1x32xf32>
    %32 = vector.broadcast %31 : vector<1x32xf32> to vector<64x32xf32>
    %33 = arith.addf %30, %32 : vector<64x32xf32>
    %34 = vector.extract_strided_slice %33 {offsets = [0, 0], sizes = [64, 8], strides = [1, 1]} : vector<64x32xf32> to vector<64x8xf32>
    %35 = arith.negf %34 : vector<64x8xf32>
    %36 = math.exp %35 : vector<64x8xf32>
    %cst_86 = arith.constant 1.000000e+00 : f32
    %37 = vector.broadcast %cst_86 : f32 to vector<64x8xf32>
    %38 = arith.addf %37, %36 : vector<64x8xf32>
    %39 = arith.divf %37, %38 : vector<64x8xf32>
    %40 = vector.extract_strided_slice %33 {offsets = [0, 8], sizes = [64, 8], strides = [1, 1]} : vector<64x32xf32> to vector<64x8xf32>
    %41 = arith.negf %40 : vector<64x8xf32>
    %42 = math.exp %41 : vector<64x8xf32>
    %cst_87 = arith.constant 1.000000e+00 : f32
    %43 = vector.broadcast %cst_87 : f32 to vector<64x8xf32>
    %44 = arith.addf %43, %42 : vector<64x8xf32>
    %45 = arith.divf %43, %44 : vector<64x8xf32>
    %46 = vector.extract_strided_slice %33 {offsets = [0, 16], sizes = [64, 8], strides = [1, 1]} : vector<64x32xf32> to vector<64x8xf32>
    %47 = arith.negf %46 : vector<64x8xf32>
    %48 = math.exp %47 : vector<64x8xf32>
    %cst_88 = arith.constant 1.000000e+00 : f32
    %49 = vector.broadcast %cst_88 : f32 to vector<64x8xf32>
    %50 = arith.addf %49, %48 : vector<64x8xf32>
    %51 = arith.divf %49, %50 : vector<64x8xf32>
    %52 = vector.extract_strided_slice %33 {offsets = [0, 24], sizes = [64, 8], strides = [1, 1]} : vector<64x32xf32> to vector<64x8xf32>
    %53 = math.tanh %52 : vector<64x8xf32>
    %c0_89 = arith.constant 0 : index
    %c0_90 = arith.constant 0 : index
    %c0_91 = arith.constant 0 : index
    %c0_92 = arith.constant 0 : index
    %54 = vector.load %arg16[%c0_89, %c0_90, %c0_91, %c0_92] : memref<1x8x8x8xf32, #tpu.memory_space<vmem>>, vector<1x8x8x8xf32>
    %55 = vector.shape_cast %54 : vector<1x8x8x8xf32> to vector<64x8xf32>
    %56 = arith.mulf %45, %55 : vector<64x8xf32>
    %57 = arith.mulf %39, %53 : vector<64x8xf32>
    %58 = arith.addf %56, %57 : vector<64x8xf32>
    %59 = math.tanh %58 : vector<64x8xf32>
    %60 = arith.mulf %51, %59 : vector<64x8xf32>
    %61 = vector.shape_cast %58 : vector<64x8xf32> to vector<1x8x8x8xf32>
    %c0_93 = arith.constant 0 : index
    %c0_94 = arith.constant 0 : index
    %c0_95 = arith.constant 0 : index
    %c0_96 = arith.constant 0 : index
    %62 = vector.load %arg16[%c0_93, %c0_94, %c0_95, %c0_96] : memref<1x8x8x8xf32, #tpu.memory_space<vmem>>, vector<1x8x8x8xf32>
    tpu.vector_store %arg16[%c0_93, %c0_94, %c0_95, %c0_96], %61 {strides = array<i32>} : memref<1x8x8x8xf32, #tpu.memory_space<vmem>>, vector<1x8x8x8xf32>,
    %63 = vector.shape_cast %60 : vector<64x8xf32> to vector<1x8x8x8xf32>
    %c0_97 = arith.constant 0 : index
    %c0_98 = arith.constant 0 : index
    %c0_99 = arith.constant 0 : index
    %c0_100 = arith.constant 0 : index
    %64 = vector.load %arg15[%c0_97, %c0_98, %c0_99, %c0_100] : memref<1x8x8x8xf32, #tpu.memory_space<vmem>>, vector<1x8x8x8xf32>
    tpu.vector_store %arg15[%c0_97, %c0_98, %c0_99, %c0_100], %63 {strides = array<i32>} : memref<1x8x8x8xf32, #tpu.memory_space<vmem>>, vector<1x8x8x8xf32>,
    %65 = vector.shape_cast %4 : vector<1x8x8x4xf32> to vector<64x4xf32>
    %66 = arith.truncf %60 : vector<64x8xf32> to vector<64x8xbf16>
    %c0_101 = arith.constant 0 : index
    %c0_102 = arith.constant 0 : index
    %67 = vector.load %arg7[%c0_101, %c0_102] : memref<8x8xbf16, #tpu.memory_space<vmem>>, vector<8x8xbf16>
    %cst_103 = arith.constant dense<0.000000e+00> : vector<64x8xf32>
    %68 = tpu.matmul %66, %67, %cst_103 {dimension_numbers = #tpu.dot_dimension_numbers<[1], [0], [0], [1], [0, 0, 1, 1], [], []>} : vector<64x8xbf16>, vector<8x8xbf16>, vector<64x8xf32> -> vector<64x8xf32>
    %69 = arith.truncf %65 : vector<64x4xf32> to vector<64x4xbf16>
    %c0_104 = arith.constant 0 : index
    %c0_105 = arith.constant 0 : index
    %70 = vector.load %arg8[%c0_104, %c0_105] : memref<4x8xbf16, #tpu.memory_space<vmem>>, vector<4x8xbf16>
    %cst_106 = arith.constant dense<0.000000e+00> : vector<64x8xf32>
    %71 = tpu.matmul %69, %70, %cst_106 {dimension_numbers = #tpu.dot_dimension_numbers<[1], [0], [0], [1], [0, 0, 1, 1], [], []>} : vector<64x4xbf16>, vector<4x8xbf16>, vector<64x8xf32> -> vector<64x8xf32>
    %72 = arith.addf %68, %71 : vector<64x8xf32>
    %c0_107 = arith.constant 0 : index
    %c0_108 = arith.constant 0 : index
    %73 = vector.load %arg9[%c0_107, %c0_108] : memref<1x8xf32, #tpu.memory_space<vmem>>, vector<1x8xf32>
    %74 = vector.broadcast %73 : vector<1x8xf32> to vector<64x8xf32>
    %75 = arith.addf %72, %74 : vector<64x8xf32>
    %cst_109 = arith.constant 0.000000e+00 : f32
    %76 = vector.broadcast %cst_109 : f32 to vector<64x8xf32>
    %77 = arith.cmpf oge, %75, %76 : vector<64x8xf32>
    %cst_110 = arith.constant 0.00999999977 : f32
    %78 = vector.broadcast %cst_110 : f32 to vector<64x8xf32>
    %79 = arith.mulf %78, %75 : vector<64x8xf32>
    %80 = arith.select %77, %75, %79 : vector<64x8xi1>, vector<64x8xf32>
    %81 = vector.shape_cast %80 : vector<64x8xf32> to vector<1x8x8x8xf32>
    %c0_111 = arith.constant 0 : index
    %c1_112 = arith.constant 1 : index
    %c1_113 = arith.constant 1 : index
    %c0_114 = arith.constant 0 : index
    %82 = vector.load %arg18[%c0_111, %c1_112, %c1_113, %c0_114] : memref<1x10x10x8xf32, #tpu.memory_space<vmem>>, vector<1x8x8x8xf32>
    tpu.vector_store %arg18[%c0_111, %c1_112, %c1_113, %c0_114], %81 {strides = array<i32>} : memref<1x10x10x8xf32, #tpu.memory_space<vmem>>, vector<1x8x8x8xf32>,
    %c0_115 = arith.constant 0 : index
    %c0_116 = arith.constant 0 : index
    %c0_117 = arith.constant 0 : index
    %c0_118 = arith.constant 0 : index
    %83 = vector.load %arg18[%c0_115, %c0_116, %c0_117, %c0_118] : memref<1x10x10x8xf32, #tpu.memory_space<vmem>>, vector<1x8x8x8xf32>
    %c0_119 = arith.constant 0 : index
    %c0_120 = arith.constant 0 : index
    %c0_121 = arith.constant 0 : index
    %c0_122 = arith.constant 0 : index
    %84 = vector.load %arg20[%c0_119, %c0_120, %c0_121, %c0_122] : memref<1x8x8x72xf32, #tpu.memory_space<vmem>>, vector<1x8x8x8xf32>
    tpu.vector_store %arg20[%c0_119, %c0_120, %c0_121, %c0_122], %83 {strides = array<i32>} : memref<1x8x8x72xf32, #tpu.memory_space<vmem>>, vector<1x8x8x8xf32>,
    %c0_123 = arith.constant 0 : index
    %c0_124 = arith.constant 0 : index
    %c1_125 = arith.constant 1 : index
    %c0_126 = arith.constant 0 : index
    %85 = vector.load %arg18[%c0_123, %c0_124, %c1_125, %c0_126] : memref<1x10x10x8xf32, #tpu.memory_space<vmem>>, vector<1x8x8x8xf32>
    %c0_127 = arith.constant 0 : index
    %c0_128 = arith.constant 0 : index
    %c0_129 = arith.constant 0 : index
    %c8 = arith.constant 8 : index
    %86 = vector.load %arg20[%c0_127, %c0_128, %c0_129, %c8] : memref<1x8x8x72xf32, #tpu.memory_space<vmem>>, vector<1x8x8x8xf32>
    tpu.vector_store %arg20[%c0_127, %c0_128, %c0_129, %c8], %85 {strides = array<i32>} : memref<1x8x8x72xf32, #tpu.memory_space<vmem>>, vector<1x8x8x8xf32>,
    %c0_130 = arith.constant 0 : index
    %c0_131 = arith.constant 0 : index
    %c2_132 = arith.constant 2 : index
    %c0_133 = arith.constant 0 : index
    %87 = vector.load %arg18[%c0_130, %c0_131, %c2_132, %c0_133] : memref<1x10x10x8xf32, #tpu.memory_space<vmem>>, vector<1x8x8x8xf32>
    %c0_134 = arith.constant 0 : index
    %c0_135 = arith.constant 0 : index
    %c0_136 = arith.constant 0 : index
    %c16 = arith.constant 16 : index
    %88 = vector.load %arg20[%c0_134, %c0_135, %c0_136, %c16] : memref<1x8x8x72xf32, #tpu.memory_space<vmem>>, vector<1x8x8x8xf32>
    tpu.vector_store %arg20[%c0_134, %c0_135, %c0_136, %c16], %87 {strides = array<i32>} : memref<1x8x8x72xf32, #tpu.memory_space<vmem>>, vector<1x8x8x8xf32>,
    %c0_137 = arith.constant 0 : index
    %c1_138 = arith.constant 1 : index
    %c0_139 = arith.constant 0 : index
    %c0_140 = arith.constant 0 : index
    %89 = vector.load %arg18[%c0_137, %c1_138, %c0_139, %c0_140] : memref<1x10x10x8xf32, #tpu.memory_space<vmem>>, vector<1x8x8x8xf32>
    %c0_141 = arith.constant 0 : index
    %c0_142 = arith.constant 0 : index
    %c0_143 = arith.constant 0 : index
    %c24_144 = arith.constant 24 : index
    %90 = vector.load %arg20[%c0_141, %c0_142, %c0_143, %c24_144] : memref<1x8x8x72xf32, #tpu.memory_space<vmem>>, vector<1x8x8x8xf32>
    tpu.vector_store %arg20[%c0_141, %c0_142, %c0_143, %c24_144], %89 {strides = array<i32>} : memref<1x8x8x72xf32, #tpu.memory_space<vmem>>, vector<1x8x8x8xf32>,
    %c0_145 = arith.constant 0 : index
    %c1_146 = arith.constant 1 : index
    %c1_147 = arith.constant 1 : index
    %c0_148 = arith.constant 0 : index
    %91 = vector.load %arg18[%c0_145, %c1_146, %c1_147, %c0_148] : memref<1x10x10x8xf32, #tpu.memory_space<vmem>>, vector<1x8x8x8xf32>
    %c0_149 = arith.constant 0 : index
    %c0_150 = arith.constant 0 : index
    %c0_151 = arith.constant 0 : index
    %c32 = arith.constant 32 : index
    %92 = vector.load %arg20[%c0_149, %c0_150, %c0_151, %c32] : memref<1x8x8x72xf32, #tpu.memory_space<vmem>>, vector<1x8x8x8xf32>
    tpu.vector_store %arg20[%c0_149, %c0_150, %c0_151, %c32], %91 {strides = array<i32>} : memref<1x8x8x72xf32, #tpu.memory_space<vmem>>, vector<1x8x8x8xf32>,
    %c0_152 = arith.constant 0 : index
    %c1_153 = arith.constant 1 : index
    %c2_154 = arith.constant 2 : index
    %c0_155 = arith.constant 0 : index
    %93 = vector.load %arg18[%c0_152, %c1_153, %c2_154, %c0_155] : memref<1x10x10x8xf32, #tpu.memory_space<vmem>>, vector<1x8x8x8xf32>
    %c0_156 = arith.constant 0 : index
    %c0_157 = arith.constant 0 : index
    %c0_158 = arith.constant 0 : index
    %c40 = arith.constant 40 : index
    %94 = vector.load %arg20[%c0_156, %c0_157, %c0_158, %c40] : memref<1x8x8x72xf32, #tpu.memory_space<vmem>>, vector<1x8x8x8xf32>
    tpu.vector_store %arg20[%c0_156, %c0_157, %c0_158, %c40], %93 {strides = array<i32>} : memref<1x8x8x72xf32, #tpu.memory_space<vmem>>, vector<1x8x8x8xf32>,
    %c0_159 = arith.constant 0 : index
    %c2_160 = arith.constant 2 : index
    %c0_161 = arith.constant 0 : index
    %c0_162 = arith.constant 0 : index
    %95 = vector.load %arg18[%c0_159, %c2_160, %c0_161, %c0_162] : memref<1x10x10x8xf32, #tpu.memory_space<vmem>>, vector<1x8x8x8xf32>
    %c0_163 = arith.constant 0 : index
    %c0_164 = arith.constant 0 : index
    %c0_165 = arith.constant 0 : index
    %c48_166 = arith.constant 48 : index
    %96 = vector.load %arg20[%c0_163, %c0_164, %c0_165, %c48_166] : memref<1x8x8x72xf32, #tpu.memory_space<vmem>>, vector<1x8x8x8xf32>
    tpu.vector_store %arg20[%c0_163, %c0_164, %c0_165, %c48_166], %95 {strides = array<i32>} : memref<1x8x8x72xf32, #tpu.memory_space<vmem>>, vector<1x8x8x8xf32>,
    %c0_167 = arith.constant 0 : index
    %c2_168 = arith.constant 2 : index
    %c1_169 = arith.constant 1 : index
    %c0_170 = arith.constant 0 : index
    %97 = vector.load %arg18[%c0_167, %c2_168, %c1_169, %c0_170] : memref<1x10x10x8xf32, #tpu.memory_space<vmem>>, vector<1x8x8x8xf32>
    %c0_171 = arith.constant 0 : index
    %c0_172 = arith.constant 0 : index
    %c0_173 = arith.constant 0 : index
    %c56 = arith.constant 56 : index
    %98 = vector.load %arg20[%c0_171, %c0_172, %c0_173, %c56] : memref<1x8x8x72xf32, #tpu.memory_space<vmem>>, vector<1x8x8x8xf32>
    tpu.vector_store %arg20[%c0_171, %c0_172, %c0_173, %c56], %97 {strides = array<i32>} : memref<1x8x8x72xf32, #tpu.memory_space<vmem>>, vector<1x8x8x8xf32>,
    %c0_174 = arith.constant 0 : index
    %c2_175 = arith.constant 2 : index
    %c2_176 = arith.constant 2 : index
    %c0_177 = arith.constant 0 : index
    %99 = vector.load %arg18[%c0_174, %c2_175, %c2_176, %c0_177] : memref<1x10x10x8xf32, #tpu.memory_space<vmem>>, vector<1x8x8x8xf32>
    %c0_178 = arith.constant 0 : index
    %c0_179 = arith.constant 0 : index
    %c0_180 = arith.constant 0 : index
    %c64 = arith.constant 64 : index
    %100 = vector.load %arg20[%c0_178, %c0_179, %c0_180, %c64] : memref<1x8x8x72xf32, #tpu.memory_space<vmem>>, vector<1x8x8x8xf32>
    tpu.vector_store %arg20[%c0_178, %c0_179, %c0_180, %c64], %99 {strides = array<i32>} : memref<1x8x8x72xf32, #tpu.memory_space<vmem>>, vector<1x8x8x8xf32>,
    %c0_181 = arith.constant 0 : index
    %c0_182 = arith.constant 0 : index
    %c0_183 = arith.constant 0 : index
    %c0_184 = arith.constant 0 : index
    %101 = vector.load %arg20[%c0_181, %c0_182, %c0_183, %c0_184] : memref<1x8x8x72xf32, #tpu.memory_space<vmem>>, vector<1x8x8x72xf32>
    %102 = vector.shape_cast %101 : vector<1x8x8x72xf32> to vector<64x72xf32>
    %103 = arith.truncf %102 : vector<64x72xf32> to vector<64x72xbf16>
    %c0_185 = arith.constant 0 : index
    %c0_186 = arith.constant 0 : index
    %104 = vector.load %arg10[%c0_185, %c0_186] : memref<72x8xbf16, #tpu.memory_space<vmem>>, vector<72x8xbf16>
    %cst_187 = arith.constant dense<0.000000e+00> : vector<64x8xf32>
    %105 = tpu.matmul %103, %104, %cst_187 {dimension_numbers = #tpu.dot_dimension_numbers<[1], [0], [0], [1], [0, 0, 1, 1], [], []>} : vector<64x72xbf16>, vector<72x8xbf16>, vector<64x8xf32> -> vector<64x8xf32>
    %c0_188 = arith.constant 0 : index
    %c0_189 = arith.constant 0 : index
    %106 = vector.load %arg11[%c0_188, %c0_189] : memref<1x8xf32, #tpu.memory_space<vmem>>, vector<1x8xf32>
    %107 = vector.broadcast %106 : vector<1x8xf32> to vector<64x8xf32>
    %108 = arith.addf %105, %107 : vector<64x8xf32>
    %cst_190 = arith.constant 0.000000e+00 : f32
    %109 = vector.broadcast %cst_190 : f32 to vector<64x8xf32>
    %110 = arith.cmpf oge, %108, %109 : vector<64x8xf32>
    %cst_191 = arith.constant 0.00999999977 : f32
    %111 = vector.broadcast %cst_191 : f32 to vector<64x8xf32>
    %112 = arith.mulf %111, %108 : vector<64x8xf32>
    %113 = arith.select %110, %108, %112 : vector<64x8xi1>, vector<64x8xf32>
    %114 = arith.truncf %113 : vector<64x8xf32> to vector<64x8xbf16>
    %c0_192 = arith.constant 0 : index
    %c0_193 = arith.constant 0 : index
    %115 = vector.load %arg12[%c0_192, %c0_193] : memref<8x8xbf16, #tpu.memory_space<vmem>>, vector<8x8xbf16>
    %cst_194 = arith.constant dense<0.000000e+00> : vector<64x8xf32>
    %116 = tpu.matmul %114, %115, %cst_194 {dimension_numbers = #tpu.dot_dimension_numbers<[1], [0], [0], [1], [0, 0, 1, 1], [], []>} : vector<64x8xbf16>, vector<8x8xbf16>, vector<64x8xf32> -> vector<64x8xf32>
    %c0_195 = arith.constant 0 : index
    %c0_196 = arith.constant 0 : index
    %117 = vector.load %arg13[%c0_195, %c0_196] : memref<1x8xf32, #tpu.memory_space<vmem>>, vector<1x8xf32>
    %118 = vector.broadcast %117 : vector<1x8xf32> to vector<64x8xf32>
    %119 = arith.addf %116, %118 : vector<64x8xf32>
    %120 = vector.extract_strided_slice %119 {offsets = [0, 0], sizes = [64, 4], strides = [1, 1]} : vector<64x8xf32> to vector<64x4xf32>
    %121 = vector.extract_strided_slice %119 {offsets = [0, 4], sizes = [64, 4], strides = [1, 1]} : vector<64x8xf32> to vector<64x4xf32>
    %122 = math.absf %121 : vector<64x4xf32>
    %cst_197 = arith.constant 1.100000e-01 : f32
    %123 = vector.broadcast %cst_197 : f32 to vector<64x4xf32>
    %124 = arith.maximumf %122, %123 : vector<64x4xf32>
    %c0_198 = arith.constant 0 : index
    %c0_199 = arith.constant 0 : index
    %c0_200 = arith.constant 0 : index
    %c0_201 = arith.constant 0 : index
    %c0_202 = arith.constant 0 : index
    %125 = vector.load %arg3[%c0_198, %c0_199, %c0_200, %c0_201, %c0_202] : memref<1x1x8x8x4xf32, #tpu.memory_space<vmem>>, vector<1x1x8x8x4xf32>
    %126 = vector.shape_cast %125 : vector<1x1x8x8x4xf32> to vector<1x8x8x4xf32>
    %127 = vector.shape_cast %126 : vector<1x8x8x4xf32> to vector<64x4xf32>
    %128 = arith.subf %127, %120 : vector<64x4xf32>
    %129 = tpu.reciprocal %124 {approx = true} : vector<64x4xf32> -> vector<64x4xf32>
    %cst_203 = arith.constant 5.000000e-01 : f32
    %130 = vector.broadcast %cst_203 : f32 to vector<64x4xf32>
    %131 = arith.addf %128, %130 : vector<64x4xf32>
    %132 = arith.mulf %131, %129 : vector<64x4xf32>
    %133 = arith.negf %132 : vector<64x4xf32>
    %134 = math.exp %133 : vector<64x4xf32>
    %cst_204 = arith.constant 1.000000e+00 : f32
    %135 = vector.broadcast %cst_204 : f32 to vector<64x4xf32>
    %136 = arith.addf %135, %134 : vector<64x4xf32>
    %137 = arith.divf %135, %136 : vector<64x4xf32>
    %cst_205 = arith.constant 5.000000e-01 : f32
    %138 = vector.broadcast %cst_205 : f32 to vector<64x4xf32>
    %139 = arith.subf %128, %138 : vector<64x4xf32>
    %140 = arith.mulf %139, %129 : vector<64x4xf32>
    %141 = arith.negf %140 : vector<64x4xf32>
    %142 = math.exp %141 : vector<64x4xf32>
    %cst_206 = arith.constant 1.000000e+00 : f32
    %143 = vector.broadcast %cst_206 : f32 to vector<64x4xf32>
    %144 = arith.addf %143, %142 : vector<64x4xf32>
    %145 = arith.divf %143, %144 : vector<64x4xf32>
    %146 = arith.subf %137, %145 : vector<64x4xf32>
    %cst_207 = arith.constant 9.99999971E-10 : f32
    %147 = vector.broadcast %cst_207 : f32 to vector<64x4xf32>
    %148 = arith.maximumf %146, %147 : vector<64x4xf32>
    %149 = vector.shape_cast %148 : vector<64x4xf32> to vector<1x8x8x4xf32>
    %c0_208 = arith.constant 0 : index
    %c0_209 = arith.constant 0 : index
    %c0_210 = arith.constant 0 : index
    %c0_211 = arith.constant 0 : index
    %c0_212 = arith.constant 0 : index
    %150 = vector.load %arg14[%c0_208, %c0_209, %c0_210, %c0_211, %c0_212] : memref<1x1x8x8x4xf32, #tpu.memory_space<vmem>>, vector<1x1x8x8x4xf32>
    %151 = vector.shape_cast %150 : vector<1x1x8x8x4xf32> to vector<1x8x8x4xf32>
    %152 = vector.shape_cast %149 : vector<1x8x8x4xf32> to vector<1x1x8x8x4xf32>
    tpu.vector_store %arg14[%c0_208, %c0_209, %c0_210, %c0_211, %c0_212], %152 {strides = array<i32>} : memref<1x1x8x8x4xf32, #tpu.memory_space<vmem>>, vector<1x1x8x8x4xf32>,
    return
  }
  func.func @transform_0(%arg0: i32, %arg1: i32) -> (i32, i32, i32, i32, i32) {
    %c0_i32 = arith.constant 0 : i32
    %c0_i32_0 = arith.constant 0 : i32
    %c0_i32_1 = arith.constant 0 : i32
    %c0_i32_2 = arith.constant 0 : i32
    return %arg1, %arg0, %c0_i32, %c0_i32_0, %c0_i32_1 : i32, i32, i32, i32, i32
  }
  func.func @transform_1(%arg0: i32, %arg1: i32) -> (i32, i32, i32, i32, i32) {
    %c0_i32 = arith.constant 0 : i32
    %c0_i32_0 = arith.constant 0 : i32
    %c0_i32_1 = arith.constant 0 : i32
    %c0_i32_2 = arith.constant 0 : i32
    return %arg1, %arg0, %c0_i32, %c0_i32_0, %c0_i32_1 : i32, i32, i32, i32, i32
  }
  func.func @transform_2(%arg0: i32, %arg1: i32) -> (i32, i32, i32, i32) {
    %c0_i32 = arith.constant 0 : i32
    %c0_i32_0 = arith.constant 0 : i32
    %c0_i32_1 = arith.constant 0 : i32
    %c0_i32_2 = arith.constant 0 : i32
    return %arg0, %c0_i32, %c0_i32_0, %c0_i32_1 : i32, i32, i32, i32
  }
  func.func @transform_3(%arg0: i32, %arg1: i32) -> (i32, i32) {
    %c0_i32 = arith.constant 0 : i32
    %c0_i32_0 = arith.constant 0 : i32
    %c0_i32_1 = arith.constant 0 : i32
    return %c0_i32, %c0_i32_0 : i32, i32
  }
  func.func @transform_4(%arg0: i32, %arg1: i32) -> (i32, i32) {
    %c0_i32 = arith.constant 0 : i32
    %c0_i32_0 = arith.constant 0 : i32
    %c0_i32_1 = arith.constant 0 : i32
    return %c0_i32, %c0_i32_0 : i32, i32
  }
  func.func @transform_5(%arg0: i32, %arg1: i32) -> (i32, i32) {
    %c0_i32 = arith.constant 0 : i32
    %c0_i32_0 = arith.constant 0 : i32
    %c0_i32_1 = arith.constant 0 : i32
    return %c0_i32, %c0_i32_0 : i32, i32
  }
  func.func @transform_6(%arg0: i32, %arg1: i32) -> (i32, i32) {
    %c0_i32 = arith.constant 0 : i32
    %c0_i32_0 = arith.constant 0 : i32
    %c0_i32_1 = arith.constant 0 : i32
    return %c0_i32, %c0_i32_0 : i32, i32
  }
  func.func @transform_7(%arg0: i32, %arg1: i32) -> (i32, i32) {
    %c0_i32 = arith.constant 0 : i32
    %c0_i32_0 = arith.constant 0 : i32
    %c0_i32_1 = arith.constant 0 : i32
    return %c0_i32, %c0_i32_0 : i32, i32
  }
  func.func @transform_8(%arg0: i32, %arg1: i32) -> (i32, i32) {
    %c0_i32 = arith.constant 0 : i32
    %c0_i32_0 = arith.constant 0 : i32
    %c0_i32_1 = arith.constant 0 : i32
    return %c0_i32, %c0_i32_0 : i32, i32
  }
  func.func @transform_9(%arg0: i32, %arg1: i32) -> (i32, i32) {
    %c0_i32 = arith.constant 0 : i32
    %c0_i32_0 = arith.constant 0 : i32
    %c0_i32_1 = arith.constant 0 : i32
    return %c0_i32, %c0_i32_0 : i32, i32
  }
  func.func @transform_10(%arg0: i32, %arg1: i32) -> (i32, i32) {
    %c0_i32 = arith.constant 0 : i32
    %c0_i32_0 = arith.constant 0 : i32
    %c0_i32_1 = arith.constant 0 : i32
    return %c0_i32, %c0_i32_0 : i32, i32
  }
  func.func @transform_11(%arg0: i32, %arg1: i32) -> (i32, i32) {
    %c0_i32 = arith.constant 0 : i32
    %c0_i32_0 = arith.constant 0 : i32
    %c0_i32_1 = arith.constant 0 : i32
    return %c0_i32, %c0_i32_0 : i32, i32
  }
  func.func @transform_12(%arg0: i32, %arg1: i32) -> (i32, i32, i32, i32, i32) {
    %c0_i32 = arith.constant 0 : i32
    %c0_i32_0 = arith.constant 0 : i32
    %c0_i32_1 = arith.constant 0 : i32
    %c0_i32_2 = arith.constant 0 : i32
    return %arg1, %arg0, %c0_i32, %c0_i32_0, %c0_i32_1 : i32, i32, i32, i32, i32
  }
}

</mosaic_0001>

<bundles_post_ra>
// kernel: tpu_custom_call.1
= control target key start
LH: loop header
LB: loop body
LE: loop exit
PB: predicated region body
PF: predicated region fallthrough
CT: control target
= control target key end

     0   :  { %s3315_s21 = smov 0   ;;  %s3317_s22 = smov 0   ;;  %s4167_s0 = inlined_call_operand.vmem [shape: f32[4,2,8,8,4], index: 0, kind: input, shape index: {}]   ;;  %s4168_s1 = inlined_call_operand.vmem [shape: f32[4,2,8,8,4], index: 1, kind: input, shape index: {}]   ;;  %s4169_s2 = inlined_call_operand.vmem [shape: f32[2,8,8,8], index: 2, kind: input, shape index: {}]   ;;  %s4170_s3 = inlined_call_operand.vmem [shape: bf16[108,32], index: 3, kind: input, shape index: {}]   ;;  %s4171_s4 = inlined_call_operand.vmem [shape: f32[1,32], index: 4, kind: input, shape index: {}]   ;;  %s4172_s5 = inlined_call_operand.vmem [shape: bf16[8,8], index: 5, kind: input, shape index: {}]   ;;  %s4173_s6 = inlined_call_operand.vmem [shape: bf16[4,8], index: 6, kind: input, shape index: {}]   ;;  %s4174_s7 = inlined_call_operand.vmem [shape: f32[1,8], index: 7, kind: input, shape index: {}]   ;;  %s4175_s8 = inlined_call_operand.vmem [shape: bf16[72,8], index: 8, kind: input, shape index: {}]   ;;  %s4176_s9 = inlined_call_operand.vmem [shape: f32[1,8], index: 9, kind: input, shape index: {}]   ;;  %s4177_s10 = inlined_call_operand.vmem [shape: bf16[8,8], index: 10, kind: input, shape index: {}]   ;;  %s4178_s11 = inlined_call_operand.vmem [shape: f32[1,8], index: 11, kind: input, shape index: {}]   ;;  %s4179_s12 = inlined_call_operand.vmem [shape: f32[4,2,8,8,4], index: 12, kind: output, shape index: {}]  }
   0x1   :  { %s3319_s23 = smov 0   ;;  %s3321_s24 = smov 0  }
   0x2   :  { %s3323_s25 = smov 0  }
   0x3 LB: > { %4183 = sst [smem:[#allocation8_spill]] %s3220_s23  ;;  %s31_s26 = sadd.s32 1, %s3220_s23  ;;  %s3228_s25 = sphi %s3323_s25, %s22_s25   ;;  %s3224_s24 = sphi %s3321_s24, %s4192_s24   ;;  %s3220_s23 = sphi %s3319_s23, %s4191_s23   ;;  %s3216_s22 = sphi %s3317_s22, %s4190_s22   ;;  %s3212_s21 = sphi %s3315_s21, %s4189_s21  }
   0x4   : > { %4184 = sst [smem:[#allocation9_spill]] %s3224_s24  ;;  %s34_s27 = sadd.s32 1, %s3224_s24 }
   0x5   : > { %4185 = sst [smem:[#allocation10_spill]] %s3228_s25  ;;  %p32_p0 = scmp.ge.s32.totalorder %s31_s26, 4 }
   0x6   : > { %p2780_p1 = scmp.ge.s32.totalorder %s3228_s25, 1  ;;  %p408_p2 = scmp.lt.s32.totalorder %s3228_s25, 9 }
   0x7   : > { %s4194_s26 = smov (%p32_p0, %s31_s26), 0  ;;  %s4196_s27 = smov (!%p32_p0, %s34_s27), %s3224_s24 }
   0x8   : > { %4186 = sst [smem:[#allocation11_spill]] %s4194_s26  ;;  %p409_p3 = pnand %p2780_p1, %p408_p2 }
   0x9   : > { %p36_p4 = scmp.ge.s32.totalorder %s4196_s27, 2  ;;  %p472_p5 = scmp.lt.s32.totalorder (!%p409_p3), %s3212_s21, 3 }
   0xa   : > { %412 = sbr.rel (%p409_p3) target bundleno = 2114 (0x842), region = 68  ;;  %p474_p6 = scmp.lt.s32.totalorder (!%p409_p3), %s3216_s22, 1 }
   0xb   : > { %s4198_s27 = smov (%p36_p4, %s4196_s27), 0  ;;  %p2792_p7 = scmp.ne.s32.totalorder (!%p409_p3), %s3212_s21, 0 }
   0xc   : > { %4187 = sst [smem:[#allocation12_spill]] %s4198_s27 }
   0xf   : > { %s473_s28 = scalar_select %p472_p5, %s3212_s21, 3 }
  0x10   : > { %s4200_s22 = smov (!%p474_p6, %s3216_s22), 1 }
  0x11   : > { %s2782_s29 = sshll.u32 %s473_s28, 4  ;;  %s2781_s30 = sshll.u32 %s4200_s22, 3 }
  0x12   : > { %s2863_s13 = sshll.u32 %s4200_s22, 6  ;;  %s478_s14 = sadd.s32 %s2782_s29, %s2781_s30 }
  0x13   : > { %s3352_s17 = scalar_lea.vmem %s4169_s2, %s2863_s13  ;;  %s2783_s18 = sshll.u32 %s478_s14, 3 }
  0x14   : > { %s3357_s27 = scalar_lea.vmem %s4167_s0, %s2783_s18  ;;  %s3362_s23 = scalar_lea.vmem %s4168_s1, %s2783_s18 }
  0x15   : > { %s3367_s22 = scalar_lea.vmem %s4179_s12, %s2783_s18  ;;  %508 = sbr.rel (%p2792_p7) target bundleno = 55 (0x37), region = 72 }
  0x1a   : > { %vm509_vm0 = vcmask 97280   ;;  %vm511_vm1 = vcmask 91136   ;;  %vm531_vm2 = vcmask 64512   ;;  %v553_v0 = vld [vmem:[%s3352_s17] sm:$0xff]  ;;  %v554_v1 = vld [vmem:[%s3352_s17 + $0x8] sm:$0xff]  ;;  %v3230_v2 = vmov 0.0  }
  0x1b   : > { %510 = vst.msk [vmem:[#allocation4] sm:$0xff] %vm509_vm0, %v3230_v2  ;;  %513 = vst.msk [vmem:[#allocation4 + $0x10] sm:$0xff] %vm509_vm0, %v3230_v2  ;;  %vm533_vm3 = vcmask 58368   ;;  %v555_v3 = vld [vmem:[%s3352_s17 + $0x10] sm:$0xff]  ;;  %v556_v4 = vld [vmem:[%s3352_s17 + $0x18] sm:$0xff] }
  0x1c   : > { %515 = vst.msk [vmem:[#allocation4 + $0x20] sm:$0xff] %vm509_vm0, %v3230_v2  ;;  %517 = vst.msk [vmem:[#allocation4 + $0x30] sm:$0xff] %vm509_vm0, %v3230_v2  ;;  %v557_v5 = vld [vmem:[%s3352_s17 + $0x20] sm:$0xff]  ;;  %v558_v6 = vld [vmem:[%s3352_s17 + $0x28] sm:$0xff] }
  0x1d   : > { %519 = vst.msk [vmem:[#allocation4 + $0x40] sm:$0xff] %vm509_vm0, %v3230_v2  ;;  %521 = vst.msk [vmem:[#allocation4 + $0x50] sm:$0xff] %vm509_vm0, %v3230_v2  ;;  %v559_v7 = vld [vmem:[%s3352_s17 + $0x30] sm:$0xff]  ;;  %v560_v8 = vld [vmem:[%s3352_s17 + $0x38] sm:$0xff] }
  0x1e   : > { %523 = vst.msk [vmem:[#allocation4 + $0x60] sm:$0xff] %vm509_vm0, %v3230_v2  ;;  %525 = vst.msk [vmem:[#allocation4 + $0x70] sm:$0xff] %vm509_vm0, %v3230_v2 }
  0x1f   : > { %527 = vst.msk [vmem:[#allocation4 + $0x80] sm:$0xff] %vm509_vm0, %v3230_v2  ;;  %529 = vst.msk [vmem:[#allocation4 + $0x90] sm:$0xff] %vm509_vm0, %v3230_v2 }
  0x20   : > { %512 = vst.msk [vmem:[#allocation4 + $0x8] sm:$0x3] %vm511_vm1, %v3230_v2  ;;  %514 = vst.msk [vmem:[#allocation4 + $0x18] sm:$0x3] %vm511_vm1, %v3230_v2 }
  0x21   : > { %516 = vst.msk [vmem:[#allocation4 + $0x28] sm:$0x3] %vm511_vm1, %v3230_v2  ;;  %518 = vst.msk [vmem:[#allocation4 + $0x38] sm:$0x3] %vm511_vm1, %v3230_v2 }
  0x22   : > { %520 = vst.msk [vmem:[#allocation4 + $0x48] sm:$0x3] %vm511_vm1, %v3230_v2  ;;  %522 = vst.msk [vmem:[#allocation4 + $0x58] sm:$0x3] %vm511_vm1, %v3230_v2 }
  0x23   : > { %524 = vst.msk [vmem:[#allocation4 + $0x68] sm:$0x3] %vm511_vm1, %v3230_v2  ;;  %526 = vst.msk [vmem:[#allocation4 + $0x78] sm:$0x3] %vm511_vm1, %v3230_v2 }
  0x24   : > { %528 = vst.msk [vmem:[#allocation4 + $0x88] sm:$0x3] %vm511_vm1, %v3230_v2  ;;  %530 = vst.msk [vmem:[#allocation4 + $0x98] sm:$0x3] %vm511_vm1, %v3230_v2 }
  0x25   : > { %532 = vst.msk [vmem:[#allocation5] sm:$0xff] %vm531_vm2, %v3230_v2  ;;  %535 = vst.msk [vmem:[#allocation5 + $0x10] sm:$0xff] %vm531_vm2, %v3230_v2 }
  0x26   : > { %537 = vst.msk [vmem:[#allocation5 + $0x20] sm:$0xff] %vm531_vm2, %v3230_v2  ;;  %539 = vst.msk [vmem:[#allocation5 + $0x30] sm:$0xff] %vm531_vm2, %v3230_v2 }
  0x27   : > { %541 = vst.msk [vmem:[#allocation5 + $0x40] sm:$0xff] %vm531_vm2, %v3230_v2  ;;  %543 = vst.msk [vmem:[#allocation5 + $0x50] sm:$0xff] %vm531_vm2, %v3230_v2 }
  0x28   : > { %545 = vst.msk [vmem:[#allocation5 + $0x60] sm:$0xff] %vm531_vm2, %v3230_v2  ;;  %547 = vst.msk [vmem:[#allocation5 + $0x70] sm:$0xff] %vm531_vm2, %v3230_v2 }
  0x29   : > { %549 = vst.msk [vmem:[#allocation5 + $0x80] sm:$0xff] %vm531_vm2, %v3230_v2  ;;  %551 = vst.msk [vmem:[#allocation5 + $0x90] sm:$0xff] %vm531_vm2, %v3230_v2 }
  0x2a   : > { %561 = vst.msk [vmem:[#allocation2] sm:$0xff] %vm531_vm2, %v553_v0  ;;  %562 = vst.msk [vmem:[#allocation2 + $0x8] sm:$0xff] %vm531_vm2, %v554_v1 }
  0x2b   : > { %577 = vst.msk [vmem:[#allocation3] sm:$0xff] %vm531_vm2, %v553_v0  ;;  %578 = vst.msk [vmem:[#allocation3 + $0x8] sm:$0xff] %vm531_vm2, %v554_v1 }
  0x2c   : > { %534 = vst.msk [vmem:[#allocation5 + $0x8] sm:$0x3] %vm533_vm3, %v3230_v2  ;;  %536 = vst.msk [vmem:[#allocation5 + $0x18] sm:$0x3] %vm533_vm3, %v3230_v2 }
  0x2d   : > { %538 = vst.msk [vmem:[#allocation5 + $0x28] sm:$0x3] %vm533_vm3, %v3230_v2  ;;  %540 = vst.msk [vmem:[#allocation5 + $0x38] sm:$0x3] %vm533_vm3, %v3230_v2 }
  0x2e   : > { %542 = vst.msk [vmem:[#allocation5 + $0x48] sm:$0x3] %vm533_vm3, %v3230_v2  ;;  %544 = vst.msk [vmem:[#allocation5 + $0x58] sm:$0x3] %vm533_vm3, %v3230_v2 }
  0x2f   : > { %546 = vst.msk [vmem:[#allocation5 + $0x68] sm:$0x3] %vm533_vm3, %v3230_v2  ;;  %548 = vst.msk [vmem:[#allocation5 + $0x78] sm:$0x3] %vm533_vm3, %v3230_v2 }
  0x30   : > { %550 = vst.msk [vmem:[#allocation5 + $0x88] sm:$0x3] %vm533_vm3, %v3230_v2  ;;  %552 = vst.msk [vmem:[#allocation5 + $0x98] sm:$0x3] %vm533_vm3, %v3230_v2 }
  0x31   : > { %563 = vst.msk [vmem:[#allocation2 + $0x10] sm:$0xff] %vm531_vm2, %v555_v3  ;;  %564 = vst.msk [vmem:[#allocation2 + $0x18] sm:$0xff] %vm531_vm2, %v556_v4 }
  0x32   : > { %565 = vst.msk [vmem:[#allocation2 + $0x20] sm:$0xff] %vm531_vm2, %v557_v5  ;;  %579 = vst.msk [vmem:[#allocation3 + $0x10] sm:$0xff] %vm531_vm2, %v555_v3 }
  0x33   : > { %580 = vst.msk [vmem:[#allocation3 + $0x18] sm:$0xff] %vm531_vm2, %v556_v4  ;;  %581 = vst.msk [vmem:[#allocation3 + $0x20] sm:$0xff] %vm531_vm2, %v557_v5 }
  0x34   : > { %566 = vst.msk [vmem:[#allocation2 + $0x28] sm:$0xff] %vm531_vm2, %v558_v6  ;;  %567 = vst.msk [vmem:[#allocation2 + $0x30] sm:$0xff] %vm531_vm2, %v559_v7 }
  0x35   : > { %568 = vst.msk [vmem:[#allocation2 + $0x38] sm:$0xff] %vm531_vm2, %v560_v8  ;;  %582 = vst.msk [vmem:[#allocation3 + $0x28] sm:$0xff] %vm531_vm2, %v558_v6 }
  0x36   : > { %583 = vst.msk [vmem:[#allocation3 + $0x30] sm:$0xff] %vm531_vm2, %v559_v7  ;;  %584 = vst.msk [vmem:[#allocation3 + $0x38] sm:$0xff] %vm531_vm2, %v560_v8 }
  0x37 PF: > { %v603_v9 = vld [vmem:[#allocation2] sm:$0xff]  ;;  %vm594_vm4 = vcmask 31744   ;;  %s3231_s21 = smov 4   ;;  %v604_v11 = vld [vmem:[#allocation2 + $0x8] sm:$0xff]  ;;  %v3430_v14 = vld [vmem:[%s3357_s27 + $0x10] sm:$0xff]  ;;  %s3232_s24 = smov 72  }
  0x38   : > { %v605_v10 = vld [vmem:[#allocation2 + $0x10] sm:$0xff]  ;;  %619 = vrot.lane.b32.xlu0 %v603_v9, %s3231_s21  ;;  %v606_v12 = vld [vmem:[#allocation2 + $0x18] sm:$0xff]  ;;  %v3425_v13 = vld [vmem:[%s3357_s27] sm:$0xff]  ;;  %597 = vst.msk [vmem:[#allocation4 + $0x31] sm:$0xff] %vm594_vm4, %v3430_v14  ;;  %s3233_s25 = smov 12   ;;  %s3234_s26 = smov 24  }
  0x39   : > { %623 = vrot.lane.b32.xlu1 %v605_v10, %s3231_s21  ;;  %595 = vst.msk [vmem:[#allocation4 + $0x11] sm:$0xff] %vm594_vm4, %v3425_v13  ;;  %v3433_v15 = vld [vmem:[%s3357_s27 + $0x8] sm:$0xff]  ;;  %v607_v16 = vld [vmem:[#allocation2 + $0x20] sm:$0xff]  ;;  %v3440_v17 = vld [vmem:[%s3357_s27 + $0x18] sm:$0xff]  ;;  %vm660_vm5 = vcmask 97280   ;;  %vm643_vm6 = vcmask 97312  }
  0x3a   : > { %596 = vst.msk [vmem:[#allocation4 + $0x21] sm:$0xff] %vm594_vm4, %v3433_v15  ;;  %598 = vst.msk [vmem:[#allocation4 + $0x41] sm:$0xff] %vm594_vm4, %v3440_v17  ;;  %v1537_v19 = vpack.c.bf16 %v3440_v17, %v3430_v14  ;;  %v922_v22 = vld [vmem:[#allocation4 + $0x90] sm:$0xff]  ;;  %v669_v23 = vld [vmem:[#allocation4 + $0x1] sm:$0xff]  ;;  %vm709_vm7 = vcmask 195680   ;;  %vm758_vm8 = vcmask 294080  }
  0x3b   : > { %v608_v18 = vld [vmem:[#allocation2 + $0x28] sm:$0xff]  ;;  %v609_v20 = vld [vmem:[#allocation2 + $0x30] sm:$0xff]  ;;  %v3450_v25 = vld [vmem:[%s3357_s27 + $0x20] sm:$0xff]  ;;  %s3236_s29 = smov 48   ;;  %s3237_s30 = smov 60   ;;  %vm1149_vm9 = vcmask 1045504  }
  0x3c   : > { %621 = vrot.lane.b32.xlu0 %v604_v11, %s3231_s21  ;;  %v610_v21 = vld [vmem:[#allocation2 + $0x38] sm:$0xff]  ;;  %v718_v24 = vld [vmem:[#allocation4 + $0x2] sm:$0xff]  ;;  %599 = vst.msk [vmem:[#allocation4 + $0x51] sm:$0xff] %vm594_vm4, %v3450_v25  ;;  %v3462_v28 = vld [vmem:[%s3357_s27 + $0x30] sm:$0xff]  ;;  %s3238_s28 = smov 84   ;;  %s3239_s16 = smov 96  }
  0x3d   : > { %625 = vrot.lane.b32.xlu1 %v606_v12, %s3231_s21  ;;  %v3455_v26 = vld [vmem:[%s3357_s27 + $0x28] sm:$0xff]  ;;  %601 = vst.msk [vmem:[#allocation4 + $0x71] sm:$0xff] %vm594_vm4, %v3462_v28  ;;  %v3467_v29 = vld [vmem:[%s3357_s27 + $0x38] sm:$0xff]  ;;  %v652_v31 = vld [vmem:[#allocation4] sm:$0xff]  ;;  %s3235_s27 = smov 36   ;;  %vm807_vm10 = vcmask 392480  }
  0x3e   : > { %600 = vst.msk [vmem:[#allocation4 + $0x61] sm:$0xff] %vm594_vm4, %v3455_v26  ;;  %v1538_v27 = vpack.c.bf16 %v3455_v26, %v3450_v25  ;;  %602 = vst.msk [vmem:[#allocation4 + $0x81] sm:$0xff] %vm594_vm4, %v3467_v29  ;;  %v1539_v30 = vpack.c.bf16 %v3467_v29, %v3462_v28  ;;  %v3034_v56 = vld [vmem:[%s4170_s3 + $0x30] sm:$0x3f]   ;;  %v3035_v59 = vld [vmem:[%s4170_s3 + $0x28] sm:$0xff]   ;;  %vm856_vm11 = vcmask 490880  }
  0x3f   : > { %661 = vst.msk [vmem:[#allocation6] sm:$0xff] %vm660_vm5, %v652_v31  ;;  %2969 = vmatprep.subr.msk.bf16.mxu0 %vm1149_vm9, %v3034_v56  ;;  %v1151_v57 = vsel %vm1149_vm9, %v3034_v56, 0  ;;  %v3036_v60 = vld [vmem:[%s4170_s3 + $0x20] sm:$0xff]   ;;  %v3037_v61 = vld [vmem:[%s4170_s3 + $0x18] sm:$0xff]   ;;  %v3038_v62 = vld [vmem:[%s4170_s3 + $0x10] sm:$0xff]   ;;  %vm905_vm12 = vcmask 589280  }
  0x40   : > { %627 = vrot.lane.b32.xlu0 %v607_v16, %s3231_s21  ;;  %2900 = vmatpush3.bf16.msra.mxu0 %v1151_v57  ;;  %v3039_v0 = vld [vmem:[%s4170_s3 + $0x8] sm:$0xff]   ;;  %v3040_v1 = vld [vmem:[%s4170_s3] sm:$0xff]   ;;  %v971_v11 = vld [vmem:[#allocation4 + $0x91] sm:$0xff]  ;;  %vm955_vm13 = vcmask 687680   ;;  %vm1004_vm14 = vcmask 786080   ;;  %vm1053_vm15 = vcmask 884480  }
  0x41   : > { %629 = vrot.lane.b32.xlu1 %v608_v18, %s3231_s21  ;;  %2901 = vmatprep.subr.bf16.mxu0 %v3035_v59  ;;  %v1020_v16 = vld [vmem:[#allocation4 + $0x92] sm:$0xff]  ;;  %vm1136_vm0 = vcmask 883712   ;;  %vm1553_vm1 = vcmask 1041408   ;;  %vm1646_vm2 = vcmask 1043456   ;;  %s3242_s13 = smov 112   ;;  %vm1482_vm3 = vcmask 64512  }
  0x42   : > { %s3243_s14 = smov 16   ;;  %s3244_s15 = smov 56  }
  0x43   : > { %s3245_s18 = smov 32  }
  0x44   : > { %631 = vrot.lane.b32.xlu0 %v609_v20, %s3231_s21  ;;  %2902 = vmatpush3.bf16.msra.mxu0 %v3035_v59 }
  0x45   : > { %633 = vrot.lane.b32.xlu1 %v610_v21, %s3231_s21  ;;  %2903 = vmatprep.subr.bf16.mxu0 %v3036_v60 }
  0x48   : > { %685 = vrot.lane.b32.xlu0 %v669_v23, %s3233_s25  ;;  %2904 = vmatpush3.bf16.msra.mxu0 %v3036_v60 }
  0x49   : > { %945 = vrot.lane.b32.xlu1 %v922_v22, %s3232_s24  ;;  %2905 = vmatprep.subr.bf16.mxu0 %v3037_v61 }
  0x4c   : > { %734 = vrot.lane.b32.xlu0 %v718_v24, %s3234_s26  ;;  %2906 = vmatpush3.bf16.msra.mxu0 %v3037_v61 }
  0x4d   : > { %2907 = vmatprep.subr.bf16.mxu0 %v3038_v62 }
  0x50   : > { %2908 = vmatpush3.bf16.msra.mxu0 %v3038_v62 }
  0x51   : > { %2909 = vmatprep.subr.bf16.mxu0 %v3039_v0 }
  0x54   : > { %2910 = vmatpush3.bf16.msra.mxu0 %v3039_v0 }
  0x55   : > { %2911 = vmatprep.subr.bf16.mxu0 %v3040_v1 }
  0x58   : > { %2912 = vmatpush3.bf16.msra.mxu0 %v3040_v1 }
  0xaa   : > { %v620_v32 = vpop.permute.xlu0 %619 }
  0xab   : > { %v624_v33 = vpop.permute.xlu1 %623  ;;  %644 = vst.msk [vmem:[#allocation4 + $0x11] sm:$0xff] %vm643_vm6, %v620_v32 }
  0xac   : > { %646 = vst.msk [vmem:[#allocation4 + $0x31] sm:$0xff] %vm643_vm6, %v624_v33 }
  0xae   : > { %v622_v34 = vpop.permute.xlu0 %621 }
  0xaf   : > { %v626_v35 = vpop.permute.xlu1 %625  ;;  %645 = vst.msk [vmem:[#allocation4 + $0x21] sm:$0xff] %vm643_vm6, %v622_v34 }
  0xb0   : > { %647 = vst.msk [vmem:[#allocation4 + $0x41] sm:$0xff] %vm643_vm6, %v626_v35 }
  0xb2   : > { %v670_v36 = vld [vmem:[#allocation4 + $0x11] sm:$0xff]  ;;  %v628_v37 = vpop.permute.xlu0 %627 }
  0xb3   : > { %v630_v38 = vpop.permute.xlu1 %629  ;;  %687 = vrot.lane.b32.xlu1 %v670_v36, %s3233_s25  ;;  %v767_v39 = vld [vmem:[#allocation4 + $0x10] sm:$0xff]  ;;  %648 = vst.msk [vmem:[#allocation4 + $0x51] sm:$0xff] %vm643_vm6, %v628_v37 }
  0xb4   : > { %v769_v40 = vld [vmem:[#allocation4 + $0x30] sm:$0xff]  ;;  %649 = vst.msk [vmem:[#allocation4 + $0x61] sm:$0xff] %vm643_vm6, %v630_v38 }
  0xb5   : > { %v3481_v41 = vld [vmem:[#allocation4 + $0x31] sm:$0xff]  ;;  %662 = vst.msk [vmem:[#allocation6 + $0x8] sm:$0xff] %vm660_vm5, %v767_v39  ;;  %664 = vst.msk [vmem:[#allocation6 + $0x18] sm:$0xff] %vm660_vm5, %v769_v40 }
  0xb6   : > { %v671_v42 = vld [vmem:[#allocation4 + $0x21] sm:$0xff]  ;;  %v632_v44 = vpop.permute.xlu0 %631  ;;  %v719_v48 = vld [vmem:[#allocation4 + $0x12] sm:$0xff] }
  0xb7   : > { %v768_v43 = vld [vmem:[#allocation4 + $0x20] sm:$0xff]  ;;  %v634_v45 = vpop.permute.xlu1 %633  ;;  %689 = vrot.lane.b32.xlu0 %v671_v42, %s3233_s25  ;;  %691 = vrot.lane.b32.xlu1 %v3481_v41, %s3233_s25  ;;  %650 = vst.msk [vmem:[#allocation4 + $0x71] sm:$0xff] %vm643_vm6, %v632_v44  ;;  %v721_v52 = vld [vmem:[#allocation4 + $0x32] sm:$0xff] }
  0xb8   : > { %v770_v46 = vld [vmem:[#allocation4 + $0x40] sm:$0xff]  ;;  %651 = vst.msk [vmem:[#allocation4 + $0x81] sm:$0xff] %vm643_vm6, %v634_v45  ;;  %vm1868_vm6 = vcmask 195712  }
  0xb9   : > { %663 = vst.msk [vmem:[#allocation6 + $0x10] sm:$0xff] %vm660_vm5, %v768_v43  ;;  %v3491_v47 = vld [vmem:[#allocation4 + $0x22] sm:$0xff]  ;;  %665 = vst.msk [vmem:[#allocation6 + $0x20] sm:$0xff] %vm660_vm5, %v770_v46 }
  0xba   : > { %v3494_v49 = vld [vmem:[#allocation4 + $0x50] sm:$0xff]  ;;  %v686_v50 = vpop.permute.xlu0 %685  ;;  %v819_v55 = vld [vmem:[#allocation4 + $0x41] sm:$0xff] }
  0xbb   : > { %738 = vrot.lane.b32.xlu0 %v3491_v47, %s3234_s26  ;;  %736 = vrot.lane.b32.xlu1 %v719_v48, %s3234_s26  ;;  %v3499_v51 = vld [vmem:[#allocation4 + $0x60] sm:$0xff]  ;;  %710 = vst.msk [vmem:[#allocation6] sm:$0xff] %vm709_vm7, %v686_v50  ;;  %v967_v63 = vld [vmem:[#allocation4 + $0x51] sm:$0xff]  ;;  %v3592_v10 = vpop.permute.xlu1 %945 }
  0xbc   : > { %666 = vst.msk [vmem:[#allocation6 + $0x28] sm:$0xff] %vm660_vm5, %v3494_v49  ;;  %667 = vst.msk [vmem:[#allocation6 + $0x30] sm:$0xff] %vm660_vm5, %v3499_v51  ;;  %v868_v58 = vld [vmem:[#allocation4 + $0x42] sm:$0xff]  ;;  %v1016_v3 = vld [vmem:[#allocation4 + $0x52] sm:$0xff] }
  0xbd   : > { %v675_v2 = vld [vmem:[#allocation4 + $0x61] sm:$0xff] }
  0xbe   : > { %v3506_v53 = vld [vmem:[#allocation4 + $0x70] sm:$0xff]  ;;  %v735_v54 = vpop.permute.xlu0 %734  ;;  %v724_v5 = vld [vmem:[#allocation4 + $0x62] sm:$0xff] }
  0xbf   : > { %783 = vrot.lane.b32.xlu0 %v767_v39, %s3235_s27  ;;  %740 = vrot.lane.b32.xlu1 %v721_v52, %s3234_s26  ;;  %759 = vst.msk [vmem:[#allocation6] sm:$0xff] %vm758_vm8, %v735_v54  ;;  %v676_v4 = vld [vmem:[#allocation4 + $0x71] sm:$0xff]  ;;  %v774_v7 = vld [vmem:[#allocation4 + $0x80] sm:$0xff] }
  0xc0   : > { %668 = vst.msk [vmem:[#allocation6 + $0x38] sm:$0xff] %vm660_vm5, %v3506_v53  ;;  %v725_v6 = vld [vmem:[#allocation4 + $0x72] sm:$0xff]  ;;  %v823_v8 = vld [vmem:[#allocation4 + $0x81] sm:$0xff]  ;;  %vm1819_vm5 = vcmask 130112  }
  0xc1   : > { %v872_v9 = vld [vmem:[#allocation4 + $0x82] sm:$0xff] }
  0xc3   : > { %787 = vrot.lane.b32.xlu0 %v769_v40, %s3235_s27  ;;  %785 = vrot.lane.b32.xlu1 %v768_v43, %s3235_s27 }
  0xc7   : > { %832 = vrot.lane.b32.xlu0 %v670_v36, %s3236_s29  ;;  %789 = vrot.lane.b32.xlu1 %v770_v46, %s3235_s27 }
  0xcb   : > { %836 = vrot.lane.b32.xlu0 %v3481_v41, %s3236_s29  ;;  %834 = vrot.lane.b32.xlu1 %v671_v42, %s3236_s29 }
  0xcf   : > { %881 = vrot.lane.b32.xlu0 %v719_v48, %s3237_s30  ;;  %838 = vrot.lane.b32.xlu1 %v819_v55, %s3236_s29 }
  0xd3   : > { %885 = vrot.lane.b32.xlu0 %v721_v52, %s3237_s30  ;;  %883 = vrot.lane.b32.xlu1 %v3491_v47, %s3237_s30 }
  0xd7   : > { %931 = vrot.lane.b32.xlu0 %v768_v43, %s3232_s24  ;;  %887 = vrot.lane.b32.xlu1 %v868_v58, %s3237_s30 }
  0xdb   : > { %935 = vrot.lane.b32.xlu0 %v770_v46, %s3232_s24  ;;  %933 = vrot.lane.b32.xlu1 %v769_v40, %s3232_s24 }
  0xdf   : > { %980 = vrot.lane.b32.xlu0 %v671_v42, %s3238_s28  ;;  %937 = vrot.lane.b32.xlu1 %v3494_v49, %s3232_s24 }
  0xe3   : > { %984 = vrot.lane.b32.xlu0 %v819_v55, %s3238_s28  ;;  %982 = vrot.lane.b32.xlu1 %v3481_v41, %s3238_s28 }
  0xe7   : > { %1029 = vrot.lane.b32.xlu0 %v3491_v47, %s3239_s16  ;;  %986 = vrot.lane.b32.xlu1 %v967_v63, %s3238_s28 }
  0xeb   : > { %693 = vrot.lane.b32.xlu0 %v819_v55, %s3233_s25  ;;  %1031 = vrot.lane.b32.xlu1 %v721_v52, %s3239_s16 }
  0xef   : > { %1033 = vrot.lane.b32.xlu0 %v868_v58, %s3239_s16  ;;  %695 = vrot.lane.b32.xlu1 %v967_v63, %s3233_s25 }
  0xf3   : > { %697 = vrot.lane.b32.xlu0 %v675_v2, %s3233_s25  ;;  %1035 = vrot.lane.b32.xlu1 %v1016_v3, %s3239_s16 }
  0xf7   : > { %742 = vrot.lane.b32.xlu0 %v868_v58, %s3234_s26  ;;  %699 = vrot.lane.b32.xlu1 %v676_v4, %s3233_s25  ;;  %s3247_s25 = smov 64  }
  0xfb   : > { %746 = vrot.lane.b32.xlu0 %v724_v5, %s3234_s26  ;;  %744 = vrot.lane.b32.xlu1 %v1016_v3, %s3234_s26 }
  0xff   : > { %791 = vrot.lane.b32.xlu0 %v3494_v49, %s3235_s27  ;;  %748 = vrot.lane.b32.xlu1 %v725_v6, %s3234_s26 }
 0x103   : > { %795 = vrot.lane.b32.xlu0 %v3506_v53, %s3235_s27  ;;  %793 = vrot.lane.b32.xlu1 %v3499_v51, %s3235_s27 }
 0x107   : > { %840 = vrot.lane.b32.xlu0 %v967_v63, %s3236_s29  ;;  %797 = vrot.lane.b32.xlu1 %v774_v7, %s3235_s27  ;;  %s3240_s27 = smov 104  }
 0x10b   : > { %844 = vrot.lane.b32.xlu0 %v676_v4, %s3236_s29  ;;  %842 = vrot.lane.b32.xlu1 %v675_v2, %s3236_s29 }
 0x10f   : > { %889 = vrot.lane.b32.xlu0 %v1016_v3, %s3237_s30  ;;  %846 = vrot.lane.b32.xlu1 %v823_v8, %s3236_s29 }
 0x113   : > { %893 = vrot.lane.b32.xlu0 %v725_v6, %s3237_s30  ;;  %891 = vrot.lane.b32.xlu1 %v724_v5, %s3237_s30 }
 0x117   : > { %939 = vrot.lane.b32.xlu0 %v3499_v51, %s3232_s24  ;;  %895 = vrot.lane.b32.xlu1 %v872_v9, %s3237_s30  ;;  %s3241_s30 = smov 8  }
 0x11b   : > { %943 = vrot.lane.b32.xlu0 %v774_v7, %s3232_s24  ;;  %941 = vrot.lane.b32.xlu1 %v3506_v53, %s3232_s24  ;;  %s3246_s24 = smov 40  }
 0x11f   : > { %988 = vrot.lane.b32.xlu0 %v675_v2, %s3238_s28  ;;  %990 = vrot.lane.b32.xlu1 %v676_v4, %s3238_s28 }
 0x123   : > { %992 = vrot.lane.b32.xlu0 %v823_v8, %s3238_s28  ;;  %994 = vrot.lane.b32.xlu1 %v971_v11, %s3238_s28 }
 0x125   : > { %v688_v12 = vpop.permute.xlu1 %687 }
 0x126   : > { %711 = vst.msk [vmem:[#allocation6 + $0x8] sm:$0xff] %vm709_vm7, %v688_v12 }
 0x127   : > { %1037 = vrot.lane.b32.xlu0 %v724_v5, %s3239_s16  ;;  %1039 = vrot.lane.b32.xlu1 %v725_v6, %s3239_s16 }
 0x129   : > { %v690_v18 = vpop.permute.xlu0 %689  ;;  %v692_v20 = vpop.permute.xlu1 %691 }
 0x12a   : > { %712 = vst.msk [vmem:[#allocation6 + $0x10] sm:$0xff] %vm709_vm7, %v690_v18  ;;  %713 = vst.msk [vmem:[#allocation6 + $0x18] sm:$0xff] %vm709_vm7, %v692_v20 }
 0x12b   : > { %1041 = vrot.lane.b32.xlu0 %v872_v9, %s3239_s16  ;;  %1043 = vrot.lane.b32.xlu1 %v1020_v16, %s3239_s16 }
 0x12d   : > { %v739_v21 = vpop.permute.xlu0 %738  ;;  %v737_v22 = vpop.permute.xlu1 %736 }
 0x12e   : > { %761 = vst.msk [vmem:[#allocation6 + $0x10] sm:$0xff] %vm758_vm8, %v739_v21  ;;  %760 = vst.msk [vmem:[#allocation6 + $0x8] sm:$0xff] %vm758_vm8, %v737_v22 }
 0x131   : > { %v784_v23 = vpop.permute.xlu0 %783  ;;  %v741_v24 = vpop.permute.xlu1 %740 }
 0x132   : > { %808 = vst.msk [vmem:[#allocation6] sm:$0xff] %vm807_vm10, %v784_v23 }
 0x133   : > { %762 = vst.msk [vmem:[#allocation6 + $0x18] sm:$0xff] %vm758_vm8, %v741_v24 }
 0x135   : > { %v788_v31 = vpop.permute.xlu0 %787  ;;  %v786_v32 = vpop.permute.xlu1 %785 }
 0x136   : > { %810 = vst.msk [vmem:[#allocation6 + $0x10] sm:$0xff] %vm807_vm10, %v788_v31  ;;  %809 = vst.msk [vmem:[#allocation6 + $0x8] sm:$0xff] %vm807_vm10, %v786_v32 }
 0x139   : > { %v833_v33 = vpop.permute.xlu0 %832  ;;  %v790_v34 = vpop.permute.xlu1 %789 }
 0x13a   : > { %857 = vst.msk [vmem:[#allocation6] sm:$0xff] %vm856_vm11, %v833_v33 }
 0x13b   : > { %811 = vst.msk [vmem:[#allocation6 + $0x18] sm:$0xff] %vm807_vm10, %v790_v34 }
 0x13d   : > { %v837_v35 = vpop.permute.xlu0 %836  ;;  %v835_v36 = vpop.permute.xlu1 %834 }
 0x13e   : > { %859 = vst.msk [vmem:[#allocation6 + $0x10] sm:$0xff] %vm856_vm11, %v837_v35  ;;  %858 = vst.msk [vmem:[#allocation6 + $0x8] sm:$0xff] %vm856_vm11, %v835_v36 }
 0x141   : > { %v882_v37 = vpop.permute.xlu0 %881  ;;  %v839_v38 = vpop.permute.xlu1 %838 }
 0x142   : > { %906 = vst.msk [vmem:[#allocation6] sm:$0xff] %vm905_vm12, %v882_v37 }
 0x143   : > { %860 = vst.msk [vmem:[#allocation6 + $0x18] sm:$0xff] %vm856_vm11, %v839_v38 }
 0x145   : > { %v886_v39 = vpop.permute.xlu0 %885  ;;  %v884_v40 = vpop.permute.xlu1 %883 }
 0x146   : > { %908 = vst.msk [vmem:[#allocation6 + $0x10] sm:$0xff] %vm905_vm12, %v886_v39  ;;  %907 = vst.msk [vmem:[#allocation6 + $0x8] sm:$0xff] %vm905_vm12, %v884_v40 }
 0x149   : > { %v932_v41 = vpop.permute.xlu0 %931  ;;  %v888_v42 = vpop.permute.xlu1 %887 }
 0x14a   : > { %956 = vst.msk [vmem:[#allocation6] sm:$0xff] %vm955_vm13, %v932_v41 }
 0x14b   : > { %909 = vst.msk [vmem:[#allocation6 + $0x18] sm:$0xff] %vm905_vm12, %v888_v42 }
 0x14d   : > { %v936_v43 = vpop.permute.xlu0 %935  ;;  %v934_v44 = vpop.permute.xlu1 %933 }
 0x14e   : > { %958 = vst.msk [vmem:[#allocation6 + $0x10] sm:$0xff] %vm955_vm13, %v936_v43  ;;  %957 = vst.msk [vmem:[#allocation6 + $0x8] sm:$0xff] %vm955_vm13, %v934_v44 }
 0x151   : > { %v981_v45 = vpop.permute.xlu0 %980  ;;  %v938_v46 = vpop.permute.xlu1 %937 }
 0x152   : > { %1005 = vst.msk [vmem:[#allocation6] sm:$0xff] %vm1004_vm14, %v981_v45  ;;  %v2793_v45 = vld [vmem:[%s4171_s4] ss:$0 sm:$0xff] }
 0x153   : > { %959 = vst.msk [vmem:[#allocation6 + $0x18] sm:$0xff] %vm955_vm13, %v938_v46 }
 0x155   : > { %v985_v47 = vpop.permute.xlu0 %984  ;;  %v983_v48 = vpop.permute.xlu1 %982 }
 0x156   : > { %1007 = vst.msk [vmem:[#allocation6 + $0x10] sm:$0xff] %vm1004_vm14, %v985_v47  ;;  %1006 = vst.msk [vmem:[#allocation6 + $0x8] sm:$0xff] %vm1004_vm14, %v983_v48 }
 0x159   : > { %v1030_v49 = vpop.permute.xlu0 %1029  ;;  %v987_v50 = vpop.permute.xlu1 %986 }
 0x15a   : > { %1054 = vst.msk [vmem:[#allocation6] sm:$0xff] %vm1053_vm15, %v1030_v49 }
 0x15b   : > { %1008 = vst.msk [vmem:[#allocation6 + $0x18] sm:$0xff] %vm1004_vm14, %v987_v50 }
 0x15d   : > { %v694_v51 = vpop.permute.xlu0 %693  ;;  %v1032_v52 = vpop.permute.xlu1 %1031 }
 0x15e   : > { %714 = vst.msk [vmem:[#allocation6 + $0x20] sm:$0xff] %vm709_vm7, %v694_v51 }
 0x15f   : > { %1055 = vst.msk [vmem:[#allocation6 + $0x8] sm:$0xff] %vm1053_vm15, %v1032_v52 }
 0x161   : > { %v1034_v53 = vpop.permute.xlu0 %1033  ;;  %v696_v54 = vpop.permute.xlu1 %695  ;;  %v1062_v57 = vld [vmem:[#allocation6] sm:$0xff] }
 0x162   : > { %1056 = vst.msk [vmem:[#allocation6 + $0x10] sm:$0xff] %vm1053_vm15, %v1034_v53 }
 0x163   : > { %715 = vst.msk [vmem:[#allocation6 + $0x28] sm:$0xff] %vm709_vm7, %v696_v54 }
 0x165   : > { %v698_v55 = vpop.permute.xlu0 %697  ;;  %v1036_v56 = vpop.permute.xlu1 %1035 }
 0x166   : > { %v1063_v58 = vld [vmem:[#allocation6 + $0x8] sm:$0xff]  ;;  %716 = vst.msk [vmem:[#allocation6 + $0x30] sm:$0xff] %vm709_vm7, %v698_v55 }
 0x167   : > { %1057 = vst.msk [vmem:[#allocation6 + $0x18] sm:$0xff] %vm1053_vm15, %v1036_v56  ;;  %v1070_v59 = vpack.c.bf16 %v1063_v58, %v1062_v57 }
 0x169   : > { %2913 = vmatprep.mubr.msk.bf16.mxu0 %vm1136_vm0, %v1070_v59  ;;  %v743_v60 = vpop.permute.xlu0 %742  ;;  %v700_v61 = vpop.permute.xlu1 %699  ;;  %v1064_v0 = vld [vmem:[#allocation6 + $0x10] sm:$0xff] }
 0x16a   : > { %763 = vst.msk [vmem:[#allocation6 + $0x20] sm:$0xff] %vm758_vm8, %v743_v60 }
 0x16b   : > { %717 = vst.msk [vmem:[#allocation6 + $0x38] sm:$0xff] %vm709_vm7, %v700_v61 }
 0x16d   : > { %v747_v62 = vpop.permute.xlu0 %746  ;;  %v745_v63 = vpop.permute.xlu1 %744 }
 0x16e   : > { %v1065_v1 = vld [vmem:[#allocation6 + $0x18] sm:$0xff]  ;;  %765 = vst.msk [vmem:[#allocation6 + $0x30] sm:$0xff] %vm758_vm8, %v747_v62  ;;  %764 = vst.msk [vmem:[#allocation6 + $0x28] sm:$0xff] %vm758_vm8, %v745_v63 }
 0x16f   : > { %v1071_v2 = vpack.c.bf16 %v1065_v1, %v1064_v0 }
 0x171   : > { %2914 = vmatmul.mubr.msk.bf16.vlgmr.msra.gmra.mxu0 %vm1136_vm0, %v1071_v2  ;;  %v792_v3 = vpop.permute.xlu0 %791  ;;  %v749_v4 = vpop.permute.xlu1 %748 }
 0x172   : > { %812 = vst.msk [vmem:[#allocation6 + $0x20] sm:$0xff] %vm807_vm10, %v792_v3 }
 0x173   : > { %766 = vst.msk [vmem:[#allocation6 + $0x38] sm:$0xff] %vm758_vm8, %v749_v4  ;;  %v1274_v4 = vld [vmem:[#allocation3] sm:$0xff] }
 0x175   : > { %v796_v5 = vpop.permute.xlu0 %795  ;;  %v794_v6 = vpop.permute.xlu1 %793 }
 0x176   : > { %814 = vst.msk [vmem:[#allocation6 + $0x30] sm:$0xff] %vm807_vm10, %v796_v5  ;;  %813 = vst.msk [vmem:[#allocation6 + $0x28] sm:$0xff] %vm807_vm10, %v794_v6  ;;  %v1275_v6 = vld [vmem:[#allocation3 + $0x8] sm:$0xff] }
 0x179   : > { %v841_v7 = vpop.permute.xlu0 %840  ;;  %v798_v8 = vpop.permute.xlu1 %797 }
 0x17a   : > { %861 = vst.msk [vmem:[#allocation6 + $0x20] sm:$0xff] %vm856_vm11, %v841_v7  ;;  %v1276_v7 = vld [vmem:[#allocation3 + $0x10] sm:$0xff] }
 0x17b   : > { %815 = vst.msk [vmem:[#allocation6 + $0x38] sm:$0xff] %vm807_vm10, %v798_v8  ;;  %v1277_v8 = vld [vmem:[#allocation3 + $0x18] sm:$0xff] }
 0x17d   : > { %v845_v9 = vpop.permute.xlu0 %844  ;;  %v843_v11 = vpop.permute.xlu1 %842 }
 0x17e   : > { %863 = vst.msk [vmem:[#allocation6 + $0x30] sm:$0xff] %vm856_vm11, %v845_v9  ;;  %862 = vst.msk [vmem:[#allocation6 + $0x28] sm:$0xff] %vm856_vm11, %v843_v11  ;;  %v1278_v9 = vld [vmem:[#allocation3 + $0x20] sm:$0xff]  ;;  %v1279_v11 = vld [vmem:[#allocation3 + $0x28] sm:$0xff] }
 0x181   : > { %v890_v12 = vpop.permute.xlu0 %889  ;;  %v847_v16 = vpop.permute.xlu1 %846 }
 0x182   : > { %910 = vst.msk [vmem:[#allocation6 + $0x20] sm:$0xff] %vm905_vm12, %v890_v12 }
 0x183   : > { %864 = vst.msk [vmem:[#allocation6 + $0x38] sm:$0xff] %vm856_vm11, %v847_v16 }
 0x185   : > { %v894_v18 = vpop.permute.xlu0 %893  ;;  %v892_v20 = vpop.permute.xlu1 %891 }
 0x186   : > { %912 = vst.msk [vmem:[#allocation6 + $0x30] sm:$0xff] %vm905_vm12, %v894_v18  ;;  %911 = vst.msk [vmem:[#allocation6 + $0x28] sm:$0xff] %vm905_vm12, %v892_v20 }
 0x189   : > { %v940_v21 = vpop.permute.xlu0 %939  ;;  %v896_v22 = vpop.permute.xlu1 %895 }
 0x18a   : > { %960 = vst.msk [vmem:[#allocation6 + $0x20] sm:$0xff] %vm955_vm13, %v940_v21 }
 0x18b   : > { %913 = vst.msk [vmem:[#allocation6 + $0x38] sm:$0xff] %vm905_vm12, %v896_v22 }
 0x18c   : > { %963 = vst.msk [vmem:[#allocation6 + $0x38] sm:$0xff] %vm955_vm13, %v3592_v10 }
 0x18d   : > { %v944_v23 = vpop.permute.xlu0 %943  ;;  %v942_v24 = vpop.permute.xlu1 %941 }
 0x18e   : > { %962 = vst.msk [vmem:[#allocation6 + $0x30] sm:$0xff] %vm955_vm13, %v944_v23  ;;  %961 = vst.msk [vmem:[#allocation6 + $0x28] sm:$0xff] %vm955_vm13, %v942_v24 }
 0x191   : > { %v989_v31 = vpop.permute.xlu0 %988  ;;  %v991_v32 = vpop.permute.xlu1 %990 }
 0x192   : > { %1009 = vst.msk [vmem:[#allocation6 + $0x20] sm:$0xff] %vm1004_vm14, %v989_v31  ;;  %1010 = vst.msk [vmem:[#allocation6 + $0x28] sm:$0xff] %vm1004_vm14, %v991_v32 }
 0x195   : > { %v993_v33 = vpop.permute.xlu0 %992  ;;  %v995_v34 = vpop.permute.xlu1 %994 }
 0x196   : > { %1011 = vst.msk [vmem:[#allocation6 + $0x30] sm:$0xff] %vm1004_vm14, %v993_v33  ;;  %1012 = vst.msk [vmem:[#allocation6 + $0x38] sm:$0xff] %vm1004_vm14, %v995_v34 }
 0x199   : > { %v1038_v35 = vpop.permute.xlu0 %1037  ;;  %v1040_v10 = vpop.permute.xlu1 %1039 }
 0x19a   : > { %1058 = vst.msk [vmem:[#allocation6 + $0x20] sm:$0xff] %vm1053_vm15, %v1038_v35  ;;  %1059 = vst.msk [vmem:[#allocation6 + $0x28] sm:$0xff] %vm1053_vm15, %v1040_v10 }
 0x19d   : > { %v1042_v36 = vpop.permute.xlu0 %1041  ;;  %v1044_v37 = vpop.permute.xlu1 %1043 }
 0x19e   : > { %1060 = vst.msk [vmem:[#allocation6 + $0x30] sm:$0xff] %vm1053_vm15, %v1042_v36  ;;  %1061 = vst.msk [vmem:[#allocation6 + $0x38] sm:$0xff] %vm1053_vm15, %v1044_v37  ;;  %vm1917_vm15 = vcmask 261312  }
 0x1a1   : > { %v1066_v38 = vld [vmem:[#allocation6 + $0x20] sm:$0xff]  ;;  %v1067_v39 = vld [vmem:[#allocation6 + $0x28] sm:$0xff] }
 0x1a2   : > { %v1072_v40 = vpack.c.bf16 %v1067_v39, %v1066_v38 }
 0x1a4   : > { %2917 = vmatprep.mubr.msk.bf16.mxu0 %vm1136_vm0, %v1072_v40 }
 0x1a5   : > { %v1068_v41 = vld [vmem:[#allocation6 + $0x30] sm:$0xff]  ;;  %v1069_v42 = vld [vmem:[#allocation6 + $0x38] sm:$0xff] }
 0x1a6   : > { %v1073_v43 = vpack.c.bf16 %v1069_v42, %v1068_v41 }
 0x1a8   : > { %2918 = vmatmul.mubr.msk.bf16.gmra.mxu0 %vm1136_vm0, %v1073_v43  ;;  %vm1966_vm0 = vcmask 326912  }
 0x231   : > { %v2915_v44 = vpop.f32.mrf.mxu0 }
 0x232   : > { %v1196_v49 = vadd.f32 %v2915_v44, %v2793_v45 }
 0x233   : > { %v1187_v46 = vpop.f32.mrf.mxu0 }
 0x234   : > { %v1188_v47 = vadd.f32 %v2793_v45, %v1187_v46  ;;  %v2807_v12 = vmul.f32 -1.442695, %v1196_v49 }
 0x235   : > { %v2916_v48 = vpop.f32.mrf.mxu0 }
 0x236   : > { %3046 = vtanh.f32 %v1188_v47  ;;  %v1199_v52 = vadd.f32 %v2916_v48, %v2793_v45  ;;  %v2805_v16 = vmul.f32 -1.442695, %v1188_v47  ;;  %v1281_v47 = vld [vmem:[#allocation3 + $0x38] sm:$0xff] }
 0x237   : > { %v1190_v50 = vpop.f32.mrf.mxu0  ;;  %3048 = vtanh.f32 %v1196_v49 }
 0x238   : > { %v1191_v51 = vadd.f32 %v2793_v45, %v1190_v50  ;;  %v2808_v18 = vmul.f32 -1.442695, %v1199_v52 }
 0x23a   : > { %3050 = vtanh.f32 %v1191_v51  ;;  %v2806_v20 = vmul.f32 -1.442695, %v1191_v51 }
 0x23b   : > { %3052 = vtanh.f32 %v1199_v52 }
 0x243   : > { %v3047_v53 = vpop.eup %3046 }
 0x244   : > { %1330 = vrot.lane.b32.xlu0 %v3047_v53, %s3240_s27  ;;  %v3049_v54 = vpop.eup %3048 }
 0x247   : > { %v3051_v55 = vpop.eup %3050 }
 0x248   : > { %1332 = vrot.lane.b32.xlu1 %v3051_v55, %s3240_s27  ;;  %1334 = vrot.lane.b32.xlu0 %v3049_v54, %s3240_s27  ;;  %v3053_v56 = vpop.eup %3052 }
 0x24c   : > { %1336 = vrot.lane.b32.xlu1 %v3053_v56, %s3240_s27 }
 0x268   : > { %v2919_v57 = vpop.f32.mrf.mxu0 }
 0x269   : > { %v3672_v61 = vadd.f32 %v2919_v57, %v2793_v45 }
 0x26a   : > { %v1203_v58 = vpop.f32.mrf.mxu0 }
 0x26b   : > { %v3670_v59 = vadd.f32 %v2793_v45, %v1203_v58  ;;  %v2811_v49 = vmul.f32 -1.442695, %v3672_v61 }
 0x26c   : > { %v2920_v60 = vpop.f32.mrf.mxu0 }
 0x26d   : > { %3054 = vtanh.f32 %v3670_v59  ;;  %v3678_v0 = vadd.f32 %v2920_v60, %v2793_v45  ;;  %v2809_v48 = vmul.f32 -1.442695, %v3670_v59 }
 0x26e   : > { %v1206_v62 = vpop.f32.mrf.mxu0  ;;  %3056 = vtanh.f32 %v3672_v61 }
 0x26f   : > { %v3675_v63 = vadd.f32 %v2793_v45, %v1206_v62  ;;  %v1280_v45 = vld [vmem:[#allocation3 + $0x30] sm:$0xff]  ;;  %v2812_v51 = vmul.f32 -1.442695, %v3678_v0 }
 0x271   : > { %3058 = vtanh.f32 %v3675_v63  ;;  %v2810_v50 = vmul.f32 -1.442695, %v3675_v63 }
 0x272   : > { %3060 = vtanh.f32 %v3678_v0 }
 0x273   : > { %3062 = vpow2.f32 %v2807_v12 }
 0x274   : > { %3064 = vpow2.f32 %v2805_v16 }
 0x275   : > { %3066 = vpow2.f32 %v2808_v18 }
 0x276   : > { %3068 = vpow2.f32 %v2806_v20 }
 0x27a   : > { %v3055_v1 = vpop.eup %3054 }
 0x27b   : > { %1338 = vrot.lane.b32.xlu0 %v3055_v1, %s3240_s27  ;;  %v3057_v2 = vpop.eup %3056 }
 0x27e   : > { %v3059_v3 = vpop.eup %3058 }
 0x27f   : > { %1340 = vrot.lane.b32.xlu1 %v3059_v3, %s3240_s27  ;;  %1342 = vrot.lane.b32.xlu0 %v3057_v2, %s3240_s27  ;;  %v3061_v5 = vpop.eup %3060 }
 0x280   : > { %v3063_v21 = vpop.eup %3062 }
 0x281   : > { %v3065_v22 = vpop.eup %3064  ;;  %v1244_v23 = vadd.f32 1.0, %v3063_v21 }
 0x282   : > { %v3067_v24 = vpop.eup %3066  ;;  %v1242_v31 = vadd.f32 1.0, %v3065_v22 }
 0x283   : > { %1344 = vrot.lane.b32.xlu1 %v3061_v5, %s3240_s27  ;;  %1290 = vrot.lane.b32.xlu0 %v1274_v4, %s3241_s30  ;;  %3070 = vrcp.f32 %v1244_v23  ;;  %v1245_v32 = vadd.f32 1.0, %v3067_v24  ;;  %v3069_v33 = vpop.eup %3068 }
 0x284   : > { %3072 = vrcp.f32 %v1242_v31  ;;  %v1243_v34 = vadd.f32 1.0, %v3069_v33 }
 0x285   : > { %3074 = vrcp.f32 %v1245_v32 }
 0x286   : > { %3076 = vrcp.f32 %v1243_v34 }
 0x287   : > { %1292 = vrot.lane.b32.xlu1 %v1275_v6, %s3241_s30  ;;  %1294 = vrot.lane.b32.xlu0 %v1276_v7, %s3241_s30  ;;  %3078 = vpow2.f32 %v2809_v48 }
 0x288   : > { %3080 = vpow2.f32 %v2811_v49 }
 0x289   : > { %3082 = vpow2.f32 %v2810_v50 }
 0x28a   : > { %3084 = vpow2.f32 %v2812_v51 }
 0x28b   : > { %1296 = vrot.lane.b32.xlu1 %v1277_v8, %s3241_s30  ;;  %1298 = vrot.lane.b32.xlu0 %v1278_v9, %s3241_s30 }
 0x28f   : > { %1300 = vrot.lane.b32.xlu1 %v1279_v11, %s3241_s30 }
 0x290   : > { %v3688_v10 = vpop.eup %3070 }
 0x291   : > { %v3691_v39 = vpop.eup %3072 }
 0x292   : > { %v3694_v40 = vpop.eup %3074 }
 0x293   : > { %v3700_v44 = vpop.eup %3076 }
 0x294   : > { %v3079_v52 = vpop.eup %3078 }
 0x295   : > { %v3081_v53 = vpop.eup %3080  ;;  %v1246_v54 = vadd.f32 1.0, %v3079_v52 }
 0x296   : > { %v3083_v55 = vpop.eup %3082  ;;  %v1248_v56 = vadd.f32 1.0, %v3081_v53 }
 0x297   : > { %3086 = vrcp.f32 %v1246_v54  ;;  %v1247_v57 = vadd.f32 1.0, %v3083_v55  ;;  %v3085_v58 = vpop.eup %3084 }
 0x298   : > { %3088 = vrcp.f32 %v1248_v56  ;;  %v1249_v59 = vadd.f32 1.0, %v3085_v58 }
 0x299   : > { %3090 = vrcp.f32 %v1247_v57 }
 0x29a   : > { %3092 = vrcp.f32 %v1249_v59 }
 0x2a4   : > { %v3710_v60 = vpop.eup %3086 }
 0x2a5   : > { %v3713_v63 = vpop.eup %3088 }
 0x2a6   : > { %v3716_v0 = vpop.eup %3090 }
 0x2a7   : > { %v3722_v5 = vpop.eup %3092 }
 0x2b6   : > { %v1331_v35 = vpop.permute.xlu0 %1330 }
 0x2b7   : > { %v1354_v42 = vmul.f32 %v3691_v39, %v1331_v35 }
 0x2ba   : > { %v1333_v36 = vpop.permute.xlu1 %1332  ;;  %v1335_v37 = vpop.permute.xlu0 %1334 }
 0x2bb   : > { %v1356_v38 = vmul.f32 %v3688_v10, %v1335_v37  ;;  %v1355_v46 = vmul.f32 %v3700_v44, %v1333_v36 }
 0x2bd   : > { %1374 = vrot.lane.b32.xlu0 %v1356_v38, %s3241_s30 }
 0x2be   : > { %v1337_v41 = vpop.permute.xlu1 %1336 }
 0x2bf   : > { %v1357_v43 = vmul.f32 %v3694_v40, %v1337_v41 }
 0x2c1   : > { %1376 = vrot.lane.b32.xlu1 %v1357_v43, %s3241_s30  ;;  %1370 = vrot.lane.b32.xlu0 %v1354_v42, %s3241_s30 }
 0x2c5   : > { %1372 = vrot.lane.b32.xlu1 %v1355_v46, %s3241_s30  ;;  %1302 = vrot.lane.b32.xlu0 %v1280_v45, %s3241_s30 }
 0x2c9   : > { %1304 = vrot.lane.b32.xlu1 %v1281_v47, %s3241_s30 }
 0x2ed   : > { %v1339_v61 = vpop.permute.xlu0 %1338 }
 0x2ee   : > { %v1358_v62 = vmul.f32 %v3710_v60, %v1339_v61  ;;  %v1540_v61 = vld [vmem:[%s4173_s6] sm:$0x3] }
 0x2ef   : > { %2970 = vmatprep.subr.msk.bf16.mxu1 %vm1553_vm1, %v1540_v61 }
 0x2f0   : > { %1378 = vrot.lane.b32.xlu0 %v1358_v62, %s3241_s30  ;;  %v1536_v62 = vpack.c.bf16 %v3433_v15, %v3425_v13 }
 0x2f1   : > { %v1341_v1 = vpop.permute.xlu1 %1340  ;;  %v1343_v2 = vpop.permute.xlu0 %1342 }
 0x2f2   : > { %v1359_v3 = vmul.f32 %v3716_v0, %v1341_v1  ;;  %v1360_v4 = vmul.f32 %v3713_v63, %v1343_v2  ;;  %v1535_v1 = vld [vmem:[%s4172_s5] sm:$0xf]  ;;  %v1555_v2 = vsel %vm1553_vm1, %v1540_v61, 0  ;;  %2923 = vmatprep.mubr.msk.bf16.mxu1 %vm594_vm4, %v1536_v62  ;;  %vm2015_vm1 = vcmask 392512  }
 0x2f3   : > { %2922 = vmatpush3.bf16.msra.mxu1 %v1555_v2 }
 0x2f4   : > { %1380 = vrot.lane.b32.xlu1 %v1359_v3, %s3241_s30  ;;  %1382 = vrot.lane.b32.xlu0 %v1360_v4, %s3241_s30  ;;  %v1648_v3 = vsel %vm1646_vm2, %v1535_v1, 0 }
 0x2f5   : > { %v1345_v6 = vpop.permute.xlu1 %1344  ;;  %v1291_v8 = vpop.permute.xlu0 %1290  ;;  %2971 = vmatprep.subr.msk.bf16.mxu1 %vm1646_vm2, %v1535_v1 }
 0x2f6   : > { %v1361_v7 = vmul.f32 %v3722_v5, %v1345_v6  ;;  %v1314_v21 = vmul.f32 %v3691_v39, %v1291_v8  ;;  %2924 = vmatmul.mubr.msk.bf16.vlgmr.msra.gmra.mxu1 %vm594_vm4, %v1537_v19 }
 0x2f7   : > { %2932 = vmatpush3.bf16.msra.mxu1 %v1648_v3  ;;  %2927 = vmatprep.mubr.msk.bf16.mxu1 %vm594_vm4, %v1538_v27 }
 0x2f8   : > { %1384 = vrot.lane.b32.xlu1 %v1361_v7, %s3241_s30 }
 0x2f9   : > { %v1293_v9 = vpop.permute.xlu1 %1292  ;;  %v1295_v11 = vpop.permute.xlu0 %1294 }
 0x2fa   : > { %v1316_v31 = vmul.f32 %v3688_v10, %v1295_v11  ;;  %v1315_v32 = vmul.f32 %v3700_v44, %v1293_v9 }
 0x2fd   : > { %v1297_v12 = vpop.permute.xlu1 %1296  ;;  %v1299_v16 = vpop.permute.xlu0 %1298 }
 0x2fe   : > { %v1317_v35 = vmul.f32 %v3694_v40, %v1297_v12  ;;  %v1318_v46 = vmul.f32 %v3710_v60, %v1299_v16  ;;  %2928 = vmatmul.mubr.msk.bf16.gmra.mxu1 %vm594_vm4, %v1539_v30 }
 0x301   : > { %v1301_v18 = vpop.permute.xlu1 %1300 }
 0x302   : > { %v1319_v50 = vmul.f32 %v3716_v0, %v1301_v18 }
 0x32f   : > { %v1375_v20 = vpop.permute.xlu0 %1374 }
 0x330   : > { %v3731_v33 = vadd.f32 %v1375_v20, %v1316_v31  ;;  %v2032_v20 = vld [vmem:[#allocation5 + $0x90] sm:$0xff] }
 0x333   : > { %v1377_v22 = vpop.permute.xlu1 %1376  ;;  %v1371_v23 = vpop.permute.xlu0 %1370 }
 0x334   : > { %v3727_v24 = vadd.f32 %v1371_v23, %v1314_v21  ;;  %v3737_v37 = vadd.f32 %v1377_v22, %v1317_v35  ;;  %v1828_v21 = vld [vmem:[#allocation5 + $0x2] sm:$0xff]  ;;  %v2081_v22 = vld [vmem:[#allocation5 + $0x91] sm:$0xff] }
 0x336   : > { %3094 = vtanh.f32 %v3727_v24 }
 0x337   : > { %v1373_v34 = vpop.permute.xlu1 %1372  ;;  %v1303_v45 = vpop.permute.xlu0 %1302 }
 0x338   : > { %v3735_v36 = vadd.f32 %v1373_v34, %v1315_v32  ;;  %v1320_v51 = vmul.f32 %v3713_v63, %v1303_v45 }
 0x33a   : > { %3096 = vtanh.f32 %v3735_v36 }
 0x33b   : > { %3098 = vtanh.f32 %v3731_v33  ;;  %v1305_v47 = vpop.permute.xlu1 %1304 }
 0x33c   : > { %3100 = vtanh.f32 %v3737_v37  ;;  %v1321_v56 = vmul.f32 %v3722_v5, %v1305_v47 }
 0x343   : > { %v3095_v38 = vpop.eup %3094 }
 0x344   : > { %1418 = vrot.lane.b32.xlu0 %v3095_v38, %s3241_s30 }
 0x347   : > { %v3097_v41 = vpop.eup %3096 }
 0x348   : > { %v3099_v42 = vpop.eup %3098  ;;  %1420 = vrot.lane.b32.xlu1 %v3097_v41, %s3241_s30  ;;  %v1763_v41 = vld [vmem:[#allocation5] sm:$0xff] }
 0x349   : > { %1422 = vrot.lane.b32.xlu0 %v3099_v42, %s3241_s30  ;;  %v3101_v43 = vpop.eup %3100  ;;  %1771 = vst.msk [vmem:[#allocation7] sm:$0xff] %vm1482_vm3, %v1763_v41 }
 0x34c   : > { %1424 = vrot.lane.b32.xlu1 %v3101_v43, %s3241_s30 }
 0x362   : > { %v1379_v48 = vpop.permute.xlu0 %1378 }
 0x363   : > { %v3747_v49 = vadd.f32 %v1379_v48, %v1318_v46  ;;  %v3846_v48 = vld [vmem:[%s4174_s7] ss:$0 sm:$0xff] }
 0x365   : > { %3102 = vtanh.f32 %v3747_v49 }
 0x366   : > { %v1381_v52 = vpop.permute.xlu1 %1380  ;;  %v1383_v53 = vpop.permute.xlu0 %1382 }
 0x367   : > { %v3752_v54 = vadd.f32 %v1381_v52, %v1319_v50  ;;  %v3754_v55 = vadd.f32 %v1383_v53, %v1320_v51 }
 0x369   : > { %3104 = vtanh.f32 %v3752_v54 }
 0x36a   : > { %3106 = vtanh.f32 %v3754_v55  ;;  %v1385_v57 = vpop.permute.xlu1 %1384 }
 0x36b   : > { %v3759_v58 = vadd.f32 %v1385_v57, %v1321_v56 }
 0x36d   : > { %3108 = vtanh.f32 %v3759_v58 }
 0x372   : > { %v3103_v59 = vpop.eup %3102 }
 0x373   : > { %1426 = vrot.lane.b32.xlu0 %v3103_v59, %s3241_s30 }
 0x376   : > { %v3105_v4 = vpop.eup %3104 }
 0x377   : > { %v3107_v6 = vpop.eup %3106  ;;  %1428 = vrot.lane.b32.xlu1 %v3105_v4, %s3241_s30 }
 0x378   : > { %1430 = vrot.lane.b32.xlu0 %v3107_v6, %s3241_s30 }
 0x37a   : > { %v3109_v13 = vpop.eup %3108 }
 0x37b   : > { %1432 = vrot.lane.b32.xlu1 %v3109_v13, %s3241_s30 }
 0x3b6   : > { %v1419_v15 = vpop.permute.xlu0 %1418  ;;  %v2925_v23 = vpop.f32.mrf.mxu1 }
 0x3b7   : > { %v3790_v17 = vmul.f32 %v3691_v39, %v1419_v15 }
 0x3b8   : > { %v1591_v31 = vpop.f32.mrf.mxu1 }
 0x3ba   : > { %v1421_v14 = vpop.permute.xlu1 %1420  ;;  %v2926_v32 = vpop.f32.mrf.mxu1 }
 0x3bb   : > { %v3793_v19 = vmul.f32 %v3700_v44, %v1421_v14  ;;  %v1423_v7 = vpop.permute.xlu0 %1422 }
 0x3bc   : > { %v3798_v27 = vmul.f32 %v3688_v10, %v1423_v7  ;;  %v1594_v34 = vpop.f32.mrf.mxu1 }
 0x3bd   : > { %v1531_v25 = vpack.c.bf16 %v3793_v19, %v3790_v17 }
 0x3be   : > { %v1425_v26 = vpop.permute.xlu1 %1424  ;;  %v3833_v35 = vpop.f32.mrf.mxu1 }
 0x3bf   : > { %v3801_v28 = vmul.f32 %v3694_v40, %v1425_v26  ;;  %1626 = vrot.lane.b32.xlu0 %v1531_v25, %s3242_s13 }
 0x3c0   : > { %v3835_v38 = vpop.f32.mrf.mxu1 }
 0x3c1   : > { %v1532_v29 = vpack.c.bf16 %v3801_v28, %v3798_v27 }
 0x3c2   : > { %v3838_v42 = vpop.f32.mrf.mxu1 }
 0x3c3   : > { %1628 = vrot.lane.b32.xlu1 %v1532_v29, %s3242_s13 }
 0x3c4   : > { %v3841_v45 = vpop.f32.mrf.mxu1 }
 0x3e5   : > { %v1427_v30 = vpop.permute.xlu0 %1426 }
 0x3e6   : > { %v3808_v44 = vmul.f32 %v3710_v60, %v1427_v30 }
 0x3e9   : > { %v1429_v39 = vpop.permute.xlu1 %1428 }
 0x3ea   : > { %v3811_v8 = vmul.f32 %v3716_v0, %v1429_v39  ;;  %v1431_v10 = vpop.permute.xlu0 %1430 }
 0x3eb   : > { %v3816_v11 = vmul.f32 %v3713_v63, %v1431_v10 }
 0x3ec   : > { %v1533_v40 = vpack.c.bf16 %v3811_v8, %v3808_v44 }
 0x3ed   : > { %v1433_v9 = vpop.permute.xlu1 %1432 }
 0x3ee   : > { %v3819_v12 = vmul.f32 %v3722_v5, %v1433_v9  ;;  %1630 = vrot.lane.b32.xlu0 %v1533_v40, %s3242_s13  ;;  %v1779_v5 = vld [vmem:[#allocation5 + $0x1] sm:$0xff] }
 0x3f0   : > { %v1534_v60 = vpack.c.bf16 %v3819_v12, %v3816_v11 }
 0x3f2   : > { %1632 = vrot.lane.b32.xlu1 %v1534_v60, %s3242_s13  ;;  %1795 = vrot.lane.b32.xlu0 %v1779_v5, %s3241_s30 }
 0x3f6   : > { %2055 = vrot.lane.b32.xlu1 %v2032_v20, %s3236_s29  ;;  %1844 = vrot.lane.b32.xlu0 %v1828_v21, %s3243_s14 }
 0x3fa   : > { %2104 = vrot.lane.b32.xlu1 %v2081_v22, %s3244_s15 }
 0x431   : > { %v1627_v0 = vpop.permute.xlu0 %1626 }
 0x432   : > { %2933 = vmatprep.mubr.msk.bf16.mxu1 %vm1482_vm3, %v1627_v0 }
 0x435   : > { %v1629_v16 = vpop.permute.xlu1 %1628 }
 0x436   : > { %2934 = vmatmul.mubr.msk.bf16.vlgmr.msra.gmra.mxu1 %vm1482_vm3, %v1629_v16 }
 0x460   : > { %v1631_v18 = vpop.permute.xlu0 %1630 }
 0x461   : > { %2937 = vmatprep.mubr.msk.bf16.mxu1 %vm1482_vm3, %v1631_v18 }
 0x464   : > { %v1633_v63 = vpop.permute.xlu1 %1632  ;;  %v1796_v43 = vpop.permute.xlu0 %1795 }
 0x465   : > { %2938 = vmatmul.mubr.msk.bf16.gmra.mxu1 %vm1482_vm3, %v1633_v63  ;;  %1820 = vst.msk [vmem:[#allocation7] sm:$0xff] %vm1819_vm5, %v1796_v43 }
 0x468   : > { %v1845_v46 = vpop.permute.xlu0 %1844 }
 0x469   : > { %1869 = vst.msk [vmem:[#allocation7] sm:$0xff] %vm1868_vm6, %v1845_v46 }
 0x4f6   : > { %v2935_v47 = vpop.f32.mrf.mxu1 }
 0x4f7   : > { %v1693_v50 = vadd.f32 %v2935_v47, %v2925_v23 }
 0x4f8   : > { %v1684_v51 = vpop.f32.mrf.mxu1 }
 0x4f9   : > { %v1724_v52 = vadd.f32 %v3846_v48, %v1693_v50  ;;  %v1685_v53 = vadd.f32 %v1684_v51, %v1591_v31 }
 0x4fa   : > { %v2936_v56 = vpop.f32.mrf.mxu1 }
 0x4fb   : > { %vm1732_vm7 = vcmp.ge.f32.partialorder %v1724_v52, 0.0  ;;  %v1740_v57 = vmul.f32 0.01, %v1724_v52  ;;  %v1722_v59 = vadd.f32 %v3846_v48, %v1685_v53  ;;  %v1696_v61 = vadd.f32 %v2936_v56, %v2926_v32 }
 0x4fc   : > { %v1687_v62 = vpop.f32.mrf.mxu1 }
 0x4fd   : > { %v1748_v1 = vsel %vm1732_vm7, %v1724_v52, %v1740_v57  ;;  %vm1730_vm8 = vcmp.ge.f32.partialorder %v1722_v59, 0.0  ;;  %v1738_v2 = vmul.f32 0.01, %v1722_v59  ;;  %v1725_v3 = vadd.f32 %v3846_v48, %v1696_v61 }
 0x4fe   : > { %1757 = vst.msk [vmem:[#allocation5 + $0x31] sm:$0xff] %vm1482_vm3, %v1748_v1  ;;  %v1688_v4 = vadd.f32 %v1687_v62, %v1594_v34  ;;  %v3041_v62 = vld [vmem:[%s4175_s8 + $0x20] ss:$0 sps:$4 sm:$0xff]   ;;  %vm2065_vm7 = vcmask 458112  }
 0x4ff   : > { %v1746_v6 = vsel %vm1730_vm8, %v1722_v59, %v1738_v2  ;;  %vm1733_vm9 = vcmp.ge.f32.partialorder %v1725_v3, 0.0  ;;  %v1741_v13 = vmul.f32 0.01, %v1725_v3  ;;  %2972 = vmatprep.subr.msk.bf16.mxu1 %vm1646_vm2, %v3041_v62  ;;  %v2241_v1 = vsel %vm1646_vm2, %v3041_v62, 0  ;;  %v3042_v2 = vld [vmem:[%s4175_s8 + $0x18] sm:$0xff]  }
 0x500   : > { %1755 = vst.msk [vmem:[#allocation5 + $0x11] sm:$0xff] %vm1482_vm3, %v1746_v6  ;;  %v1723_v15 = vadd.f32 %v3846_v48, %v1688_v4  ;;  %2942 = vmatpush3.bf16.msra.mxu1 %v2241_v1  ;;  %v3044_v4 = vld [vmem:[%s4175_s8 + $0x8] sm:$0xff]   ;;  %vm2114_vm8 = vcmask 523712  }
 0x501   : > { %v1749_v14 = vsel %vm1733_vm9, %v1725_v3, %v1741_v13  ;;  %2943 = vmatprep.subr.bf16.mxu1 %v3042_v2  ;;  %v3043_v3 = vld [vmem:[%s4175_s8 + $0x10] sm:$0xff]   ;;  %v3045_v13 = vld [vmem:[%s4175_s8] sm:$0xff]   ;;  %vm2163_vm9 = vcmask 589312  }
 0x502   : > { %1758 = vst.msk [vmem:[#allocation5 + $0x41] sm:$0xff] %vm1482_vm3, %v1749_v14  ;;  %vm1731_vm10 = vcmp.ge.f32.partialorder %v1723_v15, 0.0  ;;  %v1739_v7 = vmul.f32 0.01, %v1723_v15 }
 0x504   : > { %v1747_v25 = vsel %vm1731_vm10, %v1723_v15, %v1739_v7  ;;  %2944 = vmatpush3.bf16.msra.mxu1 %v3042_v2  ;;  %vm2227_vm10 = vcmask 588800  }
 0x505   : > { %1756 = vst.msk [vmem:[#allocation5 + $0x21] sm:$0xff] %vm1482_vm3, %v1747_v25  ;;  %v1879_v26 = vld [vmem:[#allocation5 + $0x30] sm:$0xff]  ;;  %2945 = vmatprep.subr.bf16.mxu1 %v3043_v3 }
 0x506   : > { %v1782_v29 = vld [vmem:[#allocation5 + $0x31] sm:$0xff]  ;;  %1897 = vrot.lane.b32.xlu0 %v1879_v26, %s3234_s26  ;;  %1774 = vst.msk [vmem:[#allocation7 + $0x18] sm:$0xff] %vm1482_vm3, %v1879_v26 }
 0x507   : > { %1801 = vrot.lane.b32.xlu1 %v1782_v29, %s3241_s30  ;;  %v1877_v30 = vld [vmem:[#allocation5 + $0x10] sm:$0xff] }
 0x508   : > { %1772 = vst.msk [vmem:[#allocation7 + $0x8] sm:$0xff] %vm1482_vm3, %v1877_v30  ;;  %v1831_v39 = vld [vmem:[#allocation5 + $0x32] sm:$0xff]  ;;  %2946 = vmatpush3.bf16.msra.mxu1 %v3043_v3 }
 0x509   : > { %v2027_v10 = vld [vmem:[#allocation5 + $0x40] sm:$0xff]  ;;  %v1926_v9 = vld [vmem:[#allocation5 + $0x11] sm:$0xff]  ;;  %2947 = vmatprep.subr.bf16.mxu1 %v3044_v4 }
 0x50a   : > { %1946 = vrot.lane.b32.xlu0 %v1782_v29, %s3245_s18  ;;  %1775 = vst.msk [vmem:[#allocation7 + $0x20] sm:$0xff] %vm1482_vm3, %v2027_v10  ;;  %v1975_v60 = vld [vmem:[#allocation5 + $0x12] sm:$0xff]  ;;  %v2076_v0 = vld [vmem:[#allocation5 + $0x41] sm:$0xff] }
 0x50b   : > { %1850 = vrot.lane.b32.xlu1 %v1831_v39, %s3243_s14  ;;  %v2125_v21 = vld [vmem:[#allocation5 + $0x42] sm:$0xff] }
 0x50c   : > { %v3864_v40 = vld [vmem:[#allocation5 + $0x20] sm:$0xff]  ;;  %2948 = vmatpush3.bf16.msra.mxu1 %v3044_v4 }
 0x50d   : > { %1773 = vst.msk [vmem:[#allocation7 + $0x10] sm:$0xff] %vm1482_vm3, %v3864_v40  ;;  %v1781_v51 = vld [vmem:[#allocation5 + $0x21] sm:$0xff]  ;;  %2949 = vmatprep.subr.bf16.mxu1 %v3045_v13 }
 0x50e   : > { %1995 = vrot.lane.b32.xlu0 %v1831_v39, %s3246_s24  ;;  %v1830_v53 = vld [vmem:[#allocation5 + $0x22] sm:$0xff] }
 0x50f   : > { %2043 = vrot.lane.b32.xlu1 %v1879_v26, %s3236_s29 }
 0x510   : > { %2950 = vmatpush3.bf16.msra.mxu1 %v3045_v13 }
 0x512   : > { %1893 = vrot.lane.b32.xlu0 %v1877_v30, %s3234_s26  ;;  %v3950_v30 = vpop.permute.xlu1 %2055 }
 0x513   : > { %2092 = vrot.lane.b32.xlu1 %v1782_v29, %s3244_s15 }
 0x516   : > { %1942 = vrot.lane.b32.xlu0 %v1926_v9, %s3245_s18 }
 0x517   : > { %2141 = vrot.lane.b32.xlu1 %v1831_v39, %s3247_s25  ;;  %v3956_v39 = vpop.permute.xlu1 %2104 }
 0x51a   : > { %1991 = vrot.lane.b32.xlu0 %v1975_v60, %s3246_s24 }
 0x51b   : > { %1797 = vrot.lane.b32.xlu1 %v1926_v9, %s3241_s30 }
 0x51e   : > { %2045 = vrot.lane.b32.xlu0 %v2027_v10, %s3236_s29 }
 0x51f   : > { %1846 = vrot.lane.b32.xlu1 %v1975_v60, %s3243_s14 }
 0x522   : > { %2094 = vrot.lane.b32.xlu0 %v2076_v0, %s3244_s15 }
 0x523   : > { %1899 = vrot.lane.b32.xlu1 %v2027_v10, %s3234_s26  ;;  %v2130_v10 = vld [vmem:[#allocation5 + $0x92] sm:$0xff] }
 0x525   : > { %v2939_v16 = vpop.f32.mrf.mxu1 }
 0x526   : > { %1803 = vrot.lane.b32.xlu0 %v2076_v0, %s3241_s30  ;;  %v1709_v18 = vadd.f32 %v2939_v16, %v3833_v35 }
 0x527   : > { %1948 = vrot.lane.b32.xlu1 %v2076_v0, %s3245_s18  ;;  %v1700_v63 = vpop.f32.mrf.mxu1 }
 0x528   : > { %v1728_v5 = vadd.f32 %v3846_v48, %v1709_v18  ;;  %v1701_v20 = vadd.f32 %v1700_v63, %v3835_v38 }
 0x529   : > { %v2940_v22 = vpop.f32.mrf.mxu1 }
 0x52a   : > { %2143 = vrot.lane.b32.xlu0 %v2125_v21, %s3247_s25  ;;  %vm1736_vm11 = vcmp.ge.f32.partialorder %v1728_v5, 0.0  ;;  %v1744_v23 = vmul.f32 0.01, %v1728_v5  ;;  %v1726_v31 = vadd.f32 %v3846_v48, %v1701_v20  ;;  %v1712_v32 = vadd.f32 %v2940_v22, %v3838_v42 }
 0x52b   : > { %1997 = vrot.lane.b32.xlu1 %v2125_v21, %s3246_s24  ;;  %v1703_v34 = vpop.f32.mrf.mxu1 }
 0x52c   : > { %v1752_v41 = vsel %vm1736_vm11, %v1728_v5, %v1744_v23  ;;  %vm1734_vm12 = vcmp.ge.f32.partialorder %v1726_v31, 0.0  ;;  %v1742_v35 = vmul.f32 0.01, %v1726_v31  ;;  %v1729_v43 = vadd.f32 %v3846_v48, %v1712_v32 }
 0x52d   : > { %1761 = vst.msk [vmem:[#allocation5 + $0x71] sm:$0xff] %vm1482_vm3, %v1752_v41  ;;  %v1704_v38 = vadd.f32 %v1703_v34, %v3841_v45 }
 0x52e   : > { %1852 = vrot.lane.b32.xlu0 %v2125_v21, %s3243_s14  ;;  %v1750_v46 = vsel %vm1734_vm12, %v1726_v31, %v1742_v35  ;;  %vm1737_vm13 = vcmp.ge.f32.partialorder %v1729_v43, 0.0  ;;  %v1745_v47 = vmul.f32 0.01, %v1729_v43 }
 0x52f   : > { %1895 = vrot.lane.b32.xlu1 %v3864_v40, %s3234_s26  ;;  %1759 = vst.msk [vmem:[#allocation5 + $0x51] sm:$0xff] %vm1482_vm3, %v1750_v46  ;;  %v1727_v42 = vadd.f32 %v3846_v48, %v1704_v38 }
 0x530   : > { %v1753_v50 = vsel %vm1737_vm13, %v1729_v43, %v1745_v47 }
 0x531   : > { %1762 = vst.msk [vmem:[#allocation5 + $0x81] sm:$0xff] %vm1482_vm3, %v1753_v50  ;;  %vm1735_vm14 = vcmp.ge.f32.partialorder %v1727_v42, 0.0  ;;  %v1743_v52 = vmul.f32 0.01, %v1727_v42 }
 0x532   : > { %1799 = vrot.lane.b32.xlu0 %v1781_v51, %s3241_s30 }
 0x533   : > { %1944 = vrot.lane.b32.xlu1 %v1781_v51, %s3245_s18  ;;  %v1751_v45 = vsel %vm1735_vm14, %v1727_v42, %v1743_v52 }
 0x534   : > { %1760 = vst.msk [vmem:[#allocation5 + $0x61] sm:$0xff] %vm1482_vm3, %v1751_v45  ;;  %v2030_v56 = vld [vmem:[#allocation5 + $0x70] sm:$0xff] }
 0x535   : > { %1778 = vst.msk [vmem:[#allocation7 + $0x38] sm:$0xff] %vm1482_vm3, %v2030_v56  ;;  %v1786_v57 = vld [vmem:[#allocation5 + $0x71] sm:$0xff] }
 0x536   : > { %1848 = vrot.lane.b32.xlu0 %v1830_v53, %s3243_s14  ;;  %v2028_v48 = vld [vmem:[#allocation5 + $0x50] sm:$0xff] }
 0x537   : > { %1993 = vrot.lane.b32.xlu1 %v1830_v53, %s3246_s24  ;;  %1776 = vst.msk [vmem:[#allocation7 + $0x28] sm:$0xff] %vm1482_vm3, %v2028_v48  ;;  %v1835_v61 = vld [vmem:[#allocation5 + $0x72] sm:$0xff] }
 0x538   : > { %v2077_v6 = vld [vmem:[#allocation5 + $0x51] sm:$0xff]  ;;  %v2031_v14 = vld [vmem:[#allocation5 + $0x80] sm:$0xff] }
 0x539   : > { %v1979_v15 = vld [vmem:[#allocation5 + $0x52] sm:$0xff]  ;;  %v2080_v7 = vld [vmem:[#allocation5 + $0x81] sm:$0xff] }
 0x53a   : > { %2041 = vrot.lane.b32.xlu0 %v3864_v40, %s3236_s29  ;;  %v1982_v29 = vld [vmem:[#allocation5 + $0x82] sm:$0xff] }
 0x53b   : > { %1809 = vrot.lane.b32.xlu1 %v1786_v57, %s3241_s30  ;;  %v2029_v59 = vld [vmem:[#allocation5 + $0x60] sm:$0xff] }
 0x53c   : > { %1777 = vst.msk [vmem:[#allocation7 + $0x30] sm:$0xff] %vm1482_vm3, %v2029_v59  ;;  %v1785_v25 = vld [vmem:[#allocation5 + $0x61] sm:$0xff] }
 0x53d   : > { %v1834_v26 = vld [vmem:[#allocation5 + $0x62] sm:$0xff] }
 0x53e   : > { %2090 = vrot.lane.b32.xlu0 %v1781_v51, %s3244_s15 }
 0x53f   : > { %1858 = vrot.lane.b32.xlu1 %v1835_v61, %s3243_s14 }
 0x542   : > { %2139 = vrot.lane.b32.xlu0 %v1830_v53, %s3247_s25 }
 0x543   : > { %2051 = vrot.lane.b32.xlu1 %v2030_v56, %s3236_s29 }
 0x546   : > { %1905 = vrot.lane.b32.xlu0 %v2030_v56, %s3234_s26 }
 0x547   : > { %2100 = vrot.lane.b32.xlu1 %v1786_v57, %s3244_s15 }
 0x54a   : > { %1954 = vrot.lane.b32.xlu0 %v1786_v57, %s3245_s18 }
 0x54b   : > { %2149 = vrot.lane.b32.xlu1 %v1835_v61, %s3247_s25 }
 0x54e   : > { %2003 = vrot.lane.b32.xlu0 %v1835_v61, %s3246_s24 }
 0x54f   : > { %2047 = vrot.lane.b32.xlu1 %v2028_v48, %s3236_s29 }
 0x552   : > { %1901 = vrot.lane.b32.xlu0 %v2028_v48, %s3234_s26 }
 0x553   : > { %2096 = vrot.lane.b32.xlu1 %v2077_v6, %s3244_s15 }
 0x556   : > { %1950 = vrot.lane.b32.xlu0 %v2077_v6, %s3245_s18 }
 0x557   : > { %1805 = vrot.lane.b32.xlu1 %v2077_v6, %s3241_s30 }
 0x55a   : > { %1999 = vrot.lane.b32.xlu0 %v1979_v15, %s3246_s24 }
 0x55b   : > { %2145 = vrot.lane.b32.xlu1 %v1979_v15, %s3247_s25 }
 0x55e   : > { %2053 = vrot.lane.b32.xlu0 %v2031_v14, %s3236_s29 }
 0x55f   : > { %1854 = vrot.lane.b32.xlu1 %v1979_v15, %s3243_s14 }
 0x562   : > { %2102 = vrot.lane.b32.xlu0 %v2080_v7, %s3244_s15 }
 0x563   : > { %1907 = vrot.lane.b32.xlu1 %v2031_v14, %s3234_s26 }
 0x566   : > { %1807 = vrot.lane.b32.xlu0 %v1785_v25, %s3241_s30 }
 0x567   : > { %1956 = vrot.lane.b32.xlu1 %v2080_v7, %s3245_s18 }
 0x56a   : > { %1856 = vrot.lane.b32.xlu0 %v1834_v26, %s3243_s14 }
 0x56b   : > { %2005 = vrot.lane.b32.xlu1 %v1982_v29, %s3246_s24 }
 0x56e   : > { %2049 = vrot.lane.b32.xlu0 %v2029_v59, %s3236_s29 }
 0x56f   : > { %1903 = vrot.lane.b32.xlu1 %v2029_v59, %s3234_s26 }
 0x572   : > { %2098 = vrot.lane.b32.xlu0 %v1785_v25, %s3244_s15 }
 0x573   : > { %1952 = vrot.lane.b32.xlu1 %v1785_v25, %s3245_s18 }
 0x576   : > { %2147 = vrot.lane.b32.xlu0 %v1834_v26, %s3247_s25 }
 0x577   : > { %2001 = vrot.lane.b32.xlu1 %v1834_v26, %s3246_s24  ;;  %s3248_s24 = smov 124  }
 0x578   : > { %v1898_v9 = vpop.permute.xlu0 %1897 }
 0x579   : > { %v1802_v40 = vpop.permute.xlu1 %1801 }
 0x57a   : > { %1823 = vst.msk [vmem:[#allocation7 + $0x18] sm:$0xff] %vm1819_vm5, %v1802_v40  ;;  %2151 = vrot.lane.b32.xlu0 %v1982_v29, %s3247_s25 }
 0x57b   : > { %2153 = vrot.lane.b32.xlu1 %v2130_v10, %s3247_s25  ;;  %s3249_s25 = smov 120  }
 0x57c   : > { %v1947_v0 = vpop.permute.xlu0 %1946 }
 0x57d   : > { %v1851_v60 = vpop.permute.xlu1 %1850 }
 0x57e   : > { %1872 = vst.msk [vmem:[#allocation7 + $0x18] sm:$0xff] %vm1868_vm6, %v1851_v60 }
 0x580   : > { %v1996_v18 = vpop.permute.xlu0 %1995 }
 0x581   : > { %v2044_v16 = vpop.permute.xlu1 %2043 }
 0x584   : > { %v1894_v5 = vpop.permute.xlu0 %1893 }
 0x585   : > { %v2093_v63 = vpop.permute.xlu1 %2092  ;;  %1918 = vst.msk [vmem:[#allocation7] sm:$0xff] %vm1917_vm15, %v1894_v5 }
 0x588   : > { %v1943_v21 = vpop.permute.xlu0 %1942 }
 0x589   : > { %v2142_v20 = vpop.permute.xlu1 %2141  ;;  %1967 = vst.msk [vmem:[#allocation7] sm:$0xff] %vm1966_vm0, %v1943_v21 }
 0x58c   : > { %v1992_v23 = vpop.permute.xlu0 %1991 }
 0x58d   : > { %v1798_v22 = vpop.permute.xlu1 %1797  ;;  %2016 = vst.msk [vmem:[#allocation7] sm:$0xff] %vm2015_vm1, %v1992_v23 }
 0x58e   : > { %1821 = vst.msk [vmem:[#allocation7 + $0x8] sm:$0xff] %vm1819_vm5, %v1798_v22 }
 0x590   : > { %v2046_v32 = vpop.permute.xlu0 %2045 }
 0x591   : > { %v1847_v31 = vpop.permute.xlu1 %1846 }
 0x592   : > { %1870 = vst.msk [vmem:[#allocation7 + $0x8] sm:$0xff] %vm1868_vm6, %v1847_v31 }
 0x594   : > { %v2095_v41 = vpop.permute.xlu0 %2094 }
 0x595   : > { %v1900_v34 = vpop.permute.xlu1 %1899 }
 0x596   : > { %1921 = vst.msk [vmem:[#allocation7 + $0x18] sm:$0xff] %vm1917_vm15, %v1900_v34 }
 0x598   : > { %v1804_v43 = vpop.permute.xlu0 %1803 }
 0x599   : > { %v1949_v35 = vpop.permute.xlu1 %1948  ;;  %1824 = vst.msk [vmem:[#allocation7 + $0x20] sm:$0xff] %vm1819_vm5, %v1804_v43 }
 0x59a   : > { %1970 = vst.msk [vmem:[#allocation7 + $0x18] sm:$0xff] %vm1966_vm0, %v1949_v35 }
 0x59c   : > { %v2144_v46 = vpop.permute.xlu0 %2143 }
 0x59d   : > { %v1998_v38 = vpop.permute.xlu1 %1997 }
 0x59e   : > { %2019 = vst.msk [vmem:[#allocation7 + $0x18] sm:$0xff] %vm2015_vm1, %v1998_v38 }
 0x5a0   : > { %v1853_v42 = vpop.permute.xlu0 %1852 }
 0x5a1   : > { %v1896_v47 = vpop.permute.xlu1 %1895  ;;  %1873 = vst.msk [vmem:[#allocation7 + $0x20] sm:$0xff] %vm1868_vm6, %v1853_v42 }
 0x5a2   : > { %1919 = vst.msk [vmem:[#allocation7 + $0x8] sm:$0xff] %vm1917_vm15, %v1896_v47 }
 0x5a4   : > { %v1800_v51 = vpop.permute.xlu0 %1799 }
 0x5a5   : > { %v1945_v50 = vpop.permute.xlu1 %1944  ;;  %1822 = vst.msk [vmem:[#allocation7 + $0x10] sm:$0xff] %vm1819_vm5, %v1800_v51 }
 0x5a6   : > { %1968 = vst.msk [vmem:[#allocation7 + $0x8] sm:$0xff] %vm1966_vm0, %v1945_v50 }
 0x5a8   : > { %v1849_v45 = vpop.permute.xlu0 %1848 }
 0x5a9   : > { %v1994_v52 = vpop.permute.xlu1 %1993  ;;  %1871 = vst.msk [vmem:[#allocation7 + $0x10] sm:$0xff] %vm1868_vm6, %v1849_v45 }
 0x5aa   : > { %2017 = vst.msk [vmem:[#allocation7 + $0x8] sm:$0xff] %vm2015_vm1, %v1994_v52  ;;  %v2336_v52 = vld [vmem:[%s4177_s10] sm:$0xf] }
 0x5ab   : > { %2067 = vst.msk [vmem:[#allocation7 + $0x8] sm:$0xff] %vm2065_vm7, %v2044_v16  ;;  %2973 = vmatprep.subr.msk.bf16.mxu0 %vm1646_vm2, %v2336_v52  ;;  %v2357_v45 = vsel %vm1646_vm2, %v2336_v52, 0 }
 0x5ac   : > { %1920 = vst.msk [vmem:[#allocation7 + $0x10] sm:$0xff] %vm1917_vm15, %v1898_v9  ;;  %v2042_v56 = vpop.permute.xlu0 %2041  ;;  %2960 = vmatpush3.bf16.msra.mxu0 %v2357_v45 }
 0x5ad   : > { %2116 = vst.msk [vmem:[#allocation7 + $0x8] sm:$0xff] %vm2114_vm8, %v2093_v63  ;;  %v1810_v53 = vpop.permute.xlu1 %1809 }
 0x5ae   : > { %1969 = vst.msk [vmem:[#allocation7 + $0x10] sm:$0xff] %vm1966_vm0, %v1947_v0 }
 0x5af   : > { %2165 = vst.msk [vmem:[#allocation7 + $0x8] sm:$0xff] %vm2163_vm9, %v2142_v20 }
 0x5b0   : > { %2018 = vst.msk [vmem:[#allocation7 + $0x10] sm:$0xff] %vm2015_vm1, %v1996_v18  ;;  %v2091_v57 = vpop.permute.xlu0 %2090 }
 0x5b1   : > { %2068 = vst.msk [vmem:[#allocation7 + $0x10] sm:$0xff] %vm2065_vm7, %v2046_v32  ;;  %2066 = vst.msk [vmem:[#allocation7] sm:$0xff] %vm2065_vm7, %v2042_v56  ;;  %v1859_v48 = vpop.permute.xlu1 %1858  ;;  %v2822_v56 = vld [vmem:[%s4176_s9] ss:$0 sm:$0xff] }
 0x5b2   : > { %1827 = vst.msk [vmem:[#allocation7 + $0x38] sm:$0xff] %vm1819_vm5, %v1810_v53 }
 0x5b3   : > { %2117 = vst.msk [vmem:[#allocation7 + $0x10] sm:$0xff] %vm2114_vm8, %v2095_v41  ;;  %2115 = vst.msk [vmem:[#allocation7] sm:$0xff] %vm2114_vm8, %v2091_v57 }
 0x5b4   : > { %2166 = vst.msk [vmem:[#allocation7 + $0x10] sm:$0xff] %vm2163_vm9, %v2144_v46  ;;  %v2140_v61 = vpop.permute.xlu0 %2139 }
 0x5b5   : > { %1876 = vst.msk [vmem:[#allocation7 + $0x38] sm:$0xff] %vm1868_vm6, %v1859_v48  ;;  %v3992_v59 = vpop.permute.xlu1 %2051 }
 0x5b6   : > { %2164 = vst.msk [vmem:[#allocation7] sm:$0xff] %vm2163_vm9, %v2140_v61  ;;  %v2173_v6 = vld [vmem:[#allocation7 + $0x8] sm:$0xff] }
 0x5b8   : > { %v1906_v1 = vpop.permute.xlu0 %1905 }
 0x5b9   : > { %v2101_v62 = vpop.permute.xlu1 %2100 }
 0x5bb   : > { %v2174_v18 = vld [vmem:[#allocation7 + $0x10] sm:$0xff] }
 0x5bc   : > { %v1955_v3 = vpop.permute.xlu0 %1954 }
 0x5bd   : > { %v2150_v2 = vpop.permute.xlu1 %2149  ;;  %v2172_v4 = vld [vmem:[#allocation7] sm:$0xff] }
 0x5be   : > { %v2180_v13 = vpack.c.bf16 %v2173_v6, %v2172_v4 }
 0x5c0   : > { %2951 = vmatprep.mubr.msk.bf16.mxu1 %vm2227_vm10, %v2180_v13  ;;  %v2004_v14 = vpop.permute.xlu0 %2003 }
 0x5c1   : > { %v2048_v15 = vpop.permute.xlu1 %2047 }
 0x5c2   : > { %2069 = vst.msk [vmem:[#allocation7 + $0x18] sm:$0xff] %vm2065_vm7, %v2048_v15 }
 0x5c4   : > { %v1902_v25 = vpop.permute.xlu0 %1901 }
 0x5c5   : > { %v2097_v7 = vpop.permute.xlu1 %2096  ;;  %1922 = vst.msk [vmem:[#allocation7 + $0x20] sm:$0xff] %vm1917_vm15, %v1902_v25 }
 0x5c6   : > { %2118 = vst.msk [vmem:[#allocation7 + $0x18] sm:$0xff] %vm2114_vm8, %v2097_v7 }
 0x5c8   : > { %v1951_v29 = vpop.permute.xlu0 %1950 }
 0x5c9   : > { %v1806_v26 = vpop.permute.xlu1 %1805  ;;  %1971 = vst.msk [vmem:[#allocation7 + $0x20] sm:$0xff] %vm1966_vm0, %v1951_v29 }
 0x5ca   : > { %1825 = vst.msk [vmem:[#allocation7 + $0x28] sm:$0xff] %vm1819_vm5, %v1806_v26 }
 0x5cc   : > { %v2000_v40 = vpop.permute.xlu0 %1999 }
 0x5cd   : > { %v2146_v10 = vpop.permute.xlu1 %2145  ;;  %2020 = vst.msk [vmem:[#allocation7 + $0x20] sm:$0xff] %vm2015_vm1, %v2000_v40 }
 0x5ce   : > { %2167 = vst.msk [vmem:[#allocation7 + $0x18] sm:$0xff] %vm2163_vm9, %v2146_v10 }
 0x5d0   : > { %v2054_v60 = vpop.permute.xlu0 %2053 }
 0x5d1   : > { %v1855_v9 = vpop.permute.xlu1 %1854 }
 0x5d2   : > { %1874 = vst.msk [vmem:[#allocation7 + $0x28] sm:$0xff] %vm1868_vm6, %v1855_v9 }
 0x5d4   : > { %v2103_v16 = vpop.permute.xlu0 %2102 }
 0x5d5   : > { %v1908_v0 = vpop.permute.xlu1 %1907  ;;  %v2175_v63 = vld [vmem:[#allocation7 + $0x18] sm:$0xff] }
 0x5d6   : > { %1925 = vst.msk [vmem:[#allocation7 + $0x38] sm:$0xff] %vm1917_vm15, %v1908_v0  ;;  %v2181_v5 = vpack.c.bf16 %v2175_v63, %v2174_v18 }
 0x5d8   : > { %2952 = vmatmul.mubr.msk.bf16.vlgmr.msra.gmra.mxu1 %vm2227_vm10, %v2181_v5  ;;  %v1808_v21 = vpop.permute.xlu0 %1807 }
 0x5d9   : > { %v1957_v20 = vpop.permute.xlu1 %1956  ;;  %1826 = vst.msk [vmem:[#allocation7 + $0x30] sm:$0xff] %vm1819_vm5, %v1808_v21 }
 0x5da   : > { %1974 = vst.msk [vmem:[#allocation7 + $0x38] sm:$0xff] %vm1966_vm0, %v1957_v20 }
 0x5dc   : > { %v1857_v23 = vpop.permute.xlu0 %1856 }
 0x5dd   : > { %v2006_v22 = vpop.permute.xlu1 %2005  ;;  %1875 = vst.msk [vmem:[#allocation7 + $0x30] sm:$0xff] %vm1868_vm6, %v1857_v23 }
 0x5de   : > { %2023 = vst.msk [vmem:[#allocation7 + $0x38] sm:$0xff] %vm2015_vm1, %v2006_v22 }
 0x5df   : > { %2073 = vst.msk [vmem:[#allocation7 + $0x38] sm:$0xff] %vm2065_vm7, %v3950_v30 }
 0x5e0   : > { %1924 = vst.msk [vmem:[#allocation7 + $0x30] sm:$0xff] %vm1917_vm15, %v1906_v1  ;;  %v2050_v32 = vpop.permute.xlu0 %2049 }
 0x5e1   : > { %2122 = vst.msk [vmem:[#allocation7 + $0x38] sm:$0xff] %vm2114_vm8, %v3956_v39  ;;  %v1904_v31 = vpop.permute.xlu1 %1903 }
 0x5e2   : > { %1973 = vst.msk [vmem:[#allocation7 + $0x30] sm:$0xff] %vm1966_vm0, %v1955_v3 }
 0x5e3   : > { %2022 = vst.msk [vmem:[#allocation7 + $0x30] sm:$0xff] %vm2015_vm1, %v2004_v14 }
 0x5e4   : > { %1923 = vst.msk [vmem:[#allocation7 + $0x28] sm:$0xff] %vm1917_vm15, %v1904_v31  ;;  %v2099_v34 = vpop.permute.xlu0 %2098 }
 0x5e5   : > { %2072 = vst.msk [vmem:[#allocation7 + $0x30] sm:$0xff] %vm2065_vm7, %v2054_v60  ;;  %2070 = vst.msk [vmem:[#allocation7 + $0x20] sm:$0xff] %vm2065_vm7, %v2050_v32  ;;  %v1953_v30 = vpop.permute.xlu1 %1952 }
 0x5e6   : > { %2121 = vst.msk [vmem:[#allocation7 + $0x30] sm:$0xff] %vm2114_vm8, %v2103_v16  ;;  %2119 = vst.msk [vmem:[#allocation7 + $0x20] sm:$0xff] %vm2114_vm8, %v2099_v34 }
 0x5e7   : > { %1972 = vst.msk [vmem:[#allocation7 + $0x28] sm:$0xff] %vm1966_vm0, %v1953_v30 }
 0x5e8   : > { %v2148_v41 = vpop.permute.xlu0 %2147 }
 0x5e9   : > { %v2002_v39 = vpop.permute.xlu1 %2001  ;;  %2168 = vst.msk [vmem:[#allocation7 + $0x20] sm:$0xff] %vm2163_vm9, %v2148_v41  ;;  %v2832_v41 = vld [vmem:[%s4178_s11] ss:$0 sm:$0xff] }
 0x5ea   : > { %2021 = vst.msk [vmem:[#allocation7 + $0x28] sm:$0xff] %vm2015_vm1, %v2002_v39 }
 0x5eb   : > { %2071 = vst.msk [vmem:[#allocation7 + $0x28] sm:$0xff] %vm2065_vm7, %v3992_v59 }
 0x5ec   : > { %2120 = vst.msk [vmem:[#allocation7 + $0x28] sm:$0xff] %vm2114_vm8, %v2101_v62  ;;  %v2152_v43 = vpop.permute.xlu0 %2151 }
 0x5ed   : > { %2169 = vst.msk [vmem:[#allocation7 + $0x28] sm:$0xff] %vm2163_vm9, %v2150_v2  ;;  %v2154_v35 = vpop.permute.xlu1 %2153  ;;  %2170 = vst.msk [vmem:[#allocation7 + $0x30] sm:$0xff] %vm2163_vm9, %v2152_v43 }
 0x5ee   : > { %2171 = vst.msk [vmem:[#allocation7 + $0x38] sm:$0xff] %vm2163_vm9, %v2154_v35 }
 0x5f0   : > { %v2176_v38 = vld [vmem:[#allocation7 + $0x20] sm:$0xff] }
 0x5f4   : > { %v2177_v46 = vld [vmem:[#allocation7 + $0x28] sm:$0xff]  ;;  %v2178_v42 = vld [vmem:[#allocation7 + $0x30] sm:$0xff] }
 0x5f5   : > { %v2182_v47 = vpack.c.bf16 %v2177_v46, %v2176_v38  ;;  %v2179_v50 = vld [vmem:[#allocation7 + $0x38] sm:$0xff] }
 0x5f6   : > { %v2183_v51 = vpack.c.bf16 %v2179_v50, %v2178_v42 }
 0x5f7   : > { %2955 = vmatprep.mubr.msk.bf16.mxu1 %vm2227_vm10, %v2182_v47 }
 0x5f8   : > { %2956 = vmatmul.mubr.msk.bf16.gmra.mxu1 %vm2227_vm10, %v2183_v51 }
 0x698   : > { %v2953_v53 = vpop.f32.mrf.mxu1 }
 0x699   : > { %v2286_v59 = vadd.f32 %v2953_v53, %v2822_v56 }
 0x69a   : > { %v2277_v48 = vpop.f32.mrf.mxu1 }
 0x69b   : > { %v2278_v57 = vadd.f32 %v2822_v56, %v2277_v48  ;;  %v2318_v6 = vmul.f32 0.01, %v2286_v59  ;;  %vm2310_vm11 = vcmp.ge.f32.partialorder %v2286_v59, 0.0 }
 0x69c   : > { %v2954_v61 = vpop.f32.mrf.mxu1 }
 0x69d   : > { %v2289_v62 = vadd.f32 %v2954_v61, %v2822_v56  ;;  %v2316_v2 = vmul.f32 0.01, %v2278_v57  ;;  %vm2308_vm6 = vcmp.ge.f32.partialorder %v2278_v57, 0.0  ;;  %v2326_v25 = vsel %vm2310_vm11, %v2286_v59, %v2318_v6 }
 0x69e   : > { %v2280_v1 = vpop.f32.mrf.mxu1 }
 0x69f   : > { %vm2311_vm5 = vcmp.ge.f32.partialorder %v2289_v62, 0.0  ;;  %v2319_v3 = vmul.f32 0.01, %v2289_v62  ;;  %v2281_v4 = vadd.f32 %v2822_v56, %v2280_v1  ;;  %v2324_v14 = vsel %vm2308_vm6, %v2278_v57, %v2316_v2 }
 0x6a1   : > { %vm2309_vm2 = vcmp.ge.f32.partialorder %v2281_v4, 0.0  ;;  %v2317_v13 = vmul.f32 0.01, %v2281_v4  ;;  %v2327_v15 = vsel %vm2311_vm5, %v2289_v62, %v2319_v3 }
 0x6a2   : > { %v2333_v29 = vpack.c.bf16 %v2327_v15, %v2326_v25 }
 0x6a3   : > { %v2325_v7 = vsel %vm2309_vm2, %v2281_v4, %v2317_v13 }
 0x6a4   : > { %v2332_v26 = vpack.c.bf16 %v2325_v7, %v2324_v14 }
 0x6a6   : > { %2961 = vmatprep.mubr.msk.bf16.mxu0 %vm1482_vm3, %v2332_v26 }
 0x6a7   : > { %2962 = vmatmul.mubr.msk.bf16.vlgmr.msra.gmra.mxu0 %vm1482_vm3, %v2333_v29 }
 0x6b8   : > { %v2957_v10 = vpop.f32.mrf.mxu1 }
 0x6b9   : > { %v2302_v60 = vadd.f32 %v2957_v10, %v2822_v56 }
 0x6ba   : > { %v2293_v40 = vpop.f32.mrf.mxu1 }
 0x6bb   : > { %v2294_v9 = vadd.f32 %v2822_v56, %v2293_v40  ;;  %v2322_v21 = vmul.f32 0.01, %v2302_v60  ;;  %vm2314_vm14 = vcmp.ge.f32.partialorder %v2302_v60, 0.0 }
 0x6bc   : > { %v2958_v0 = vpop.f32.mrf.mxu1 }
 0x6bd   : > { %v2305_v16 = vadd.f32 %v2958_v0, %v2822_v56  ;;  %v2320_v63 = vmul.f32 0.01, %v2294_v9  ;;  %vm2312_vm13 = vcmp.ge.f32.partialorder %v2294_v9, 0.0  ;;  %v2330_v30 = vsel %vm2314_vm14, %v2302_v60, %v2322_v21 }
 0x6be   : > { %v2296_v18 = vpop.f32.mrf.mxu1 }
 0x6bf   : > { %vm2315_vm12 = vcmp.ge.f32.partialorder %v2305_v16, 0.0  ;;  %v2323_v5 = vmul.f32 0.01, %v2305_v16  ;;  %v2297_v20 = vadd.f32 %v2822_v56, %v2296_v18  ;;  %v2328_v31 = vsel %vm2312_vm13, %v2294_v9, %v2320_v63 }
 0x6c1   : > { %vm2313_vm15 = vcmp.ge.f32.partialorder %v2297_v20, 0.0  ;;  %v2321_v22 = vmul.f32 0.01, %v2297_v20  ;;  %v2331_v23 = vsel %vm2315_vm12, %v2305_v16, %v2323_v5 }
 0x6c2   : > { %v2335_v39 = vpack.c.bf16 %v2331_v23, %v2330_v30 }
 0x6c3   : > { %v2329_v32 = vsel %vm2313_vm15, %v2297_v20, %v2321_v22 }
 0x6c4   : > { %v2334_v34 = vpack.c.bf16 %v2329_v32, %v2328_v31 }
 0x6c6   : > { %2965 = vmatprep.mubr.msk.bf16.mxu0 %vm1482_vm3, %v2334_v34 }
 0x6c7   : > { %2966 = vmatmul.mubr.msk.bf16.gmra.mxu0 %vm1482_vm3, %v2335_v39 }
 0x767   : > { %v2963_v35 = vpop.f32.mrf.mxu0 }
 0x768   : > { %v4048_v43 = vadd.f32 %v2963_v35, %v2832_v41 }
 0x769   : > { %v2393_v38 = vpop.f32.mrf.mxu0 }
 0x76a   : > { %v2426_v46 = vand.u32 2147483647, %v4048_v43  ;;  %v4051_v47 = vadd.f32 %v2832_v41, %v2393_v38 }
 0x76b   : > { %v2964_v42 = vpop.f32.mrf.mxu0 }
 0x76c   : > { %v2434_v50 = vmax.f32 %v2426_v46, 0.11  ;;  %v2424_v51 = vand.u32 2147483647, %v4051_v47  ;;  %v4054_v52 = vadd.f32 %v2964_v42, %v2832_v41 }
 0x76d   : > { %v2396_v45 = vpop.f32.mrf.mxu0 }
 0x76e   : > { %3110 = vrcp.f32 %v2434_v50  ;;  %v2432_v53 = vmax.f32 %v2424_v51, 0.11  ;;  %v2427_v56 = vand.u32 2147483647, %v4054_v52  ;;  %v4057_v48 = vadd.f32 %v2832_v41, %v2396_v45 }
 0x770   : > { %v2435_v57 = vmax.f32 %v2427_v56, 0.11  ;;  %3112 = vrcp.f32 %v2432_v53  ;;  %v2425_v59 = vand.u32 2147483647, %v4057_v48 }
 0x772   : > { %3114 = vrcp.f32 %v2435_v57  ;;  %v2433_v61 = vmax.f32 %v2425_v59, 0.11 }
 0x774   : > { %3116 = vrcp.f32 %v2433_v61 }
 0x77b   : > { %v3111_v62 = vpop.eup %3110 }
 0x77c   : > { %2484 = vrot.lane.b32.xlu0 %v3111_v62, %s3248_s24 }
 0x77d   : > { %v3113_v1 = vpop.eup %3112 }
 0x77f   : > { %v3115_v2 = vpop.eup %3114 }
 0x780   : > { %2486 = vrot.lane.b32.xlu1 %v3115_v2, %s3248_s24  ;;  %2480 = vrot.lane.b32.xlu0 %v3113_v1, %s3248_s24 }
 0x781   : > { %v3117_v3 = vpop.eup %3116 }
 0x784   : > { %2482 = vrot.lane.b32.xlu1 %v3117_v3, %s3248_s24 }
 0x787   : > { %v2967_v4 = vpop.f32.mrf.mxu0 }
 0x788   : > { %v4064_v6 = vadd.f32 %v2967_v4, %v2832_v41 }
 0x789   : > { %v2409_v13 = vpop.f32.mrf.mxu0 }
 0x78a   : > { %v4066_v15 = vadd.f32 %v2832_v41, %v2409_v13  ;;  %v2430_v7 = vand.u32 2147483647, %v4064_v6 }
 0x78b   : > { %v2968_v14 = vpop.f32.mrf.mxu0 }
 0x78c   : > { %v2428_v25 = vand.u32 2147483647, %v4066_v15  ;;  %v4070_v26 = vadd.f32 %v2968_v14, %v2832_v41  ;;  %v2438_v9 = vmax.f32 %v2430_v7, 0.11 }
 0x78d   : > { %v2412_v29 = vpop.f32.mrf.mxu0 }
 0x78e   : > { %v2436_v10 = vmax.f32 %v2428_v25, 0.11  ;;  %v4072_v40 = vadd.f32 %v2832_v41, %v2412_v29  ;;  %v2431_v60 = vand.u32 2147483647, %v4070_v26  ;;  %v2444_v25 = vld [vmem:[%s3362_s23 + $0x20] sm:$0xff] }
 0x790   : > { %3118 = vrcp.f32 %v2436_v10  ;;  %v2429_v0 = vand.u32 2147483647, %v4072_v40  ;;  %v2439_v18 = vmax.f32 %v2431_v60, 0.11 }
 0x791   : > { %3120 = vrcp.f32 %v2438_v9 }
 0x792   : > { %v2437_v16 = vmax.f32 %v2429_v0, 0.11  ;;  %v2446_v0 = vld [vmem:[%s3362_s23 + $0x30] sm:$0xff] }
 0x794   : > { %3122 = vrcp.f32 %v2437_v16  ;;  %v2452_v16 = vsub.f32 %v2444_v25, %v4066_v15 }
 0x795   : > { %3124 = vrcp.f32 %v2439_v18  ;;  %v2445_v18 = vld [vmem:[%s3362_s23 + $0x28] sm:$0xff] }
 0x79d   : > { %v3119_v63 = vpop.eup %3118 }
 0x79e   : > { %2488 = vrot.lane.b32.xlu0 %v3119_v63, %s3248_s24  ;;  %v3121_v5 = vpop.eup %3120  ;;  %v2454_v63 = vsub.f32 %v2446_v0, %v4064_v6 }
 0x7a1   : > { %v3123_v20 = vpop.eup %3122 }
 0x7a2   : > { %2492 = vrot.lane.b32.xlu0 %v3121_v5, %s3248_s24  ;;  %2490 = vrot.lane.b32.xlu1 %v3123_v20, %s3248_s24  ;;  %v3125_v21 = vpop.eup %3124  ;;  %v2468_v5 = vadd.f32 0.5, %v2452_v16  ;;  %v2849_v20 = vadd.f32 -0.5, %v2452_v16 }
 0x7a6   : > { %1458 = vrot.lane.b32.xlu0 %v3727_v24, %s3249_s25  ;;  %2494 = vrot.lane.b32.xlu1 %v3125_v21, %s3248_s24  ;;  %v2442_v24 = vld [vmem:[%s3362_s23 + $0x10] sm:$0xff] }
 0x7aa   : > { %1462 = vrot.lane.b32.xlu0 %v3731_v33, %s3249_s25  ;;  %1460 = vrot.lane.b32.xlu1 %v3735_v36, %s3249_s25  ;;  %v2450_v33 = vsub.f32 %v2442_v24, %v4048_v43  ;;  %v2440_v36 = vld [vmem:[%s3362_s23] sm:$0xff]  ;;  %v2447_v24 = vld [vmem:[%s3362_s23 + $0x38] sm:$0xff] }
 0x7ab   : > { %v2455_v15 = vsub.f32 %v2447_v24, %v4070_v26 }
 0x7ae   : > { %1466 = vrot.lane.b32.xlu0 %v3747_v49, %s3249_s25  ;;  %1464 = vrot.lane.b32.xlu1 %v3737_v37, %s3249_s25  ;;  %v2443_v37 = vld [vmem:[%s3362_s23 + $0x18] sm:$0xff]  ;;  %v2448_v49 = vsub.f32 %v2440_v36, %v4051_v47 }
 0x7b0   : > { %v2845_v32 = vadd.f32 -0.5, %v2448_v49 }
 0x7b2   : > { %1470 = vrot.lane.b32.xlu0 %v3754_v55, %s3249_s25  ;;  %1468 = vrot.lane.b32.xlu1 %v3752_v54, %s3249_s25  ;;  %v2451_v54 = vsub.f32 %v2443_v37, %v4054_v52  ;;  %v2441_v55 = vld [vmem:[%s3362_s23 + $0x8] sm:$0xff] }
 0x7b4   : > { %v2467_v22 = vadd.f32 0.5, %v2451_v54  ;;  %v2848_v23 = vadd.f32 -0.5, %v2451_v54 }
 0x7b6   : > { %1499 = vrot.lane.b32.xlu0 %v3790_v17, %s3242_s13  ;;  %1472 = vrot.lane.b32.xlu1 %v3759_v58, %s3249_s25  ;;  %v2466_v58 = vadd.f32 0.5, %v2450_v33  ;;  %v2847_v17 = vadd.f32 -0.5, %v2450_v33  ;;  %v2453_v33 = vsub.f32 %v2445_v18, %v4072_v40 }
 0x7ba   : > { %1503 = vrot.lane.b32.xlu0 %v3798_v27, %s3242_s13  ;;  %1501 = vrot.lane.b32.xlu1 %v3793_v19, %s3242_s13 }
 0x7be   : > { %1507 = vrot.lane.b32.xlu0 %v3808_v44, %s3242_s13  ;;  %1505 = vrot.lane.b32.xlu1 %v3801_v28, %s3242_s13  ;;  %v2449_v44 = vsub.f32 %v2441_v55, %v4057_v48 }
 0x7c0   : > { %v2465_v43 = vadd.f32 0.5, %v2449_v44  ;;  %v2846_v38 = vadd.f32 -0.5, %v2449_v44  ;;  %v2469_v44 = vadd.f32 0.5, %v2453_v33 }
 0x7c2   : > { %1511 = vrot.lane.b32.xlu0 %v3816_v11, %s3242_s13  ;;  %1509 = vrot.lane.b32.xlu1 %v3811_v8, %s3242_s13  ;;  %v2464_v8 = vadd.f32 0.5, %v2448_v49 }
 0x7c6   : > { %1513 = vrot.lane.b32.xlu1 %v3819_v12, %s3242_s13 }
 0x7ee   : > { %v2485_v19 = vpop.permute.xlu0 %2484 }
 0x7ef   : > { %v2506_v27 = vmul.f32 %v2485_v19, %v2466_v58  ;;  %v2570_v28 = vmul.f32 %v2847_v17, %v2485_v19  ;;  %v2470_v58 = vadd.f32 0.5, %v2454_v63 }
 0x7f1   : > { %v2839_v11 = vmul.f32 -1.442695, %v2506_v27  ;;  %v2855_v12 = vmul.f32 -1.442695, %v2570_v28  ;;  %v2851_v27 = vadd.f32 -0.5, %v2454_v63 }
 0x7f2   : > { %v2487_v31 = vpop.permute.xlu1 %2486  ;;  %v2481_v30 = vpop.permute.xlu0 %2480 }
 0x7f3   : > { %3126 = vpow2.f32 %v2839_v11  ;;  %v2507_v34 = vmul.f32 %v2487_v31, %v2467_v22  ;;  %v2571_v39 = vmul.f32 %v2848_v23, %v2487_v31  ;;  %v2504_v41 = vmul.f32 %v2481_v30, %v2464_v8 }
 0x7f4   : > { %3128 = vpow2.f32 %v2855_v12  ;;  %v2568_v35 = vmul.f32 %v2845_v32, %v2481_v30  ;;  %v2850_v8 = vadd.f32 -0.5, %v2453_v33 }
 0x7f5   : > { %v2840_v46 = vmul.f32 -1.442695, %v2507_v34  ;;  %v2856_v47 = vmul.f32 -1.442695, %v2571_v39  ;;  %v2837_v42 = vmul.f32 -1.442695, %v2504_v41 }
 0x7f6   : > { %v2853_v50 = vmul.f32 -1.442695, %v2568_v35  ;;  %v2483_v51 = vpop.permute.xlu1 %2482  ;;  %v2471_v35 = vadd.f32 0.5, %v2455_v15 }
 0x7f7   : > { %3130 = vpow2.f32 %v2840_v46  ;;  %v2505_v52 = vmul.f32 %v2483_v51, %v2465_v43  ;;  %v2569_v45 = vmul.f32 %v2846_v38, %v2483_v51 }
 0x7f8   : > { %3132 = vpow2.f32 %v2856_v47 }
 0x7f9   : > { %3134 = vpow2.f32 %v2837_v42  ;;  %v2838_v53 = vmul.f32 -1.442695, %v2505_v52  ;;  %v2854_v56 = vmul.f32 -1.442695, %v2569_v45  ;;  %v2852_v52 = vadd.f32 -0.5, %v2455_v15 }
 0x7fa   : > { %3136 = vpow2.f32 %v2853_v50 }
 0x7fb   : > { %3138 = vpow2.f32 %v2838_v53 }
 0x7fc   : > { %3140 = vpow2.f32 %v2854_v56 }
 0x800   : > { %v3127_v48 = vpop.eup %3126 }
 0x801   : > { %v3129_v57 = vpop.eup %3128  ;;  %v2538_v59 = vadd.f32 1.0, %v3127_v48 }
 0x802   : > { %v2602_v61 = vadd.f32 1.0, %v3129_v57 }
 0x803   : > { %3142 = vrcp.f32 %v2538_v59 }
 0x804   : > { %v3131_v62 = vpop.eup %3130  ;;  %3144 = vrcp.f32 %v2602_v61 }
 0x805   : > { %v3133_v1 = vpop.eup %3132  ;;  %v2539_v2 = vadd.f32 1.0, %v3131_v62 }
 0x806   : > { %v3135_v3 = vpop.eup %3134  ;;  %v2603_v4 = vadd.f32 1.0, %v3133_v1 }
 0x807   : > { %v3137_v13 = vpop.eup %3136  ;;  %3146 = vrcp.f32 %v2539_v2  ;;  %v2536_v14 = vadd.f32 1.0, %v3135_v3 }
 0x808   : > { %v3139_v7 = vpop.eup %3138  ;;  %3148 = vrcp.f32 %v2603_v4  ;;  %v2600_v29 = vadd.f32 1.0, %v3137_v13 }
 0x809   : > { %v3141_v10 = vpop.eup %3140  ;;  %3150 = vrcp.f32 %v2536_v14  ;;  %v2537_v9 = vadd.f32 1.0, %v3139_v7 }
 0x80a   : > { %3152 = vrcp.f32 %v2600_v29  ;;  %v2601_v60 = vadd.f32 1.0, %v3141_v10 }
 0x80b   : > { %3154 = vrcp.f32 %v2537_v9 }
 0x80c   : > { %3156 = vrcp.f32 %v2601_v60 }
 0x810   : > { %v3143_v21 = vpop.eup %3142  ;;  %v2489_v36 = vpop.permute.xlu0 %2488 }
 0x811   : > { %v3145_v37 = vpop.eup %3144  ;;  %v2508_v49 = vmul.f32 %v2489_v36, %v2468_v5  ;;  %v2572_v54 = vmul.f32 %v2849_v20, %v2489_v36 }
 0x812   : > { %v2626_v55 = vsub.f32 %v3143_v21, %v3145_v37 }
 0x813   : > { %v2841_v17 = vmul.f32 -1.442695, %v2508_v49  ;;  %v2857_v19 = vmul.f32 -1.442695, %v2572_v54 }
 0x814   : > { %v3147_v28 = vpop.eup %3146  ;;  %v2634_v6 = vmax.f32 %v2626_v55, 1e-09  ;;  %v2493_v11 = vpop.permute.xlu0 %2492 }
 0x815   : > { %v3149_v12 = vpop.eup %3148  ;;  %3158 = vpow2.f32 %v2841_v17  ;;  %v2491_v40 = vpop.permute.xlu1 %2490  ;;  %v2510_v22 = vmul.f32 %v2493_v11, %v2470_v58  ;;  %v2574_v23 = vmul.f32 %v2851_v27, %v2493_v11 }
 0x816   : > { %v3151_v31 = vpop.eup %3150  ;;  %2642 = vst.msk [vmem:[%s3367_s22 + $0x10] sm:$0xff] %vm594_vm4, %v2634_v6  ;;  %v2627_v32 = vsub.f32 %v3147_v28, %v3149_v12  ;;  %3160 = vpow2.f32 %v2857_v19  ;;  %v2509_v30 = vmul.f32 %v2491_v40, %v2469_v44  ;;  %v2573_v26 = vmul.f32 %v2850_v8, %v2491_v40 }
 0x817   : > { %v3153_v34 = vpop.eup %3152  ;;  %v2843_v39 = vmul.f32 -1.442695, %v2510_v22  ;;  %v2859_v41 = vmul.f32 -1.442695, %v2574_v23 }
 0x818   : > { %v3155_v43 = vpop.eup %3154  ;;  %v2635_v38 = vmax.f32 %v2627_v32, 1e-09  ;;  %v2624_v46 = vsub.f32 %v3151_v31, %v3153_v34  ;;  %v2842_v47 = vmul.f32 -1.442695, %v2509_v30  ;;  %v2858_v42 = vmul.f32 -1.442695, %v2573_v26  ;;  %v1459_v50 = vpop.permute.xlu0 %1458 }
 0x819   : > { %v3157_v51 = vpop.eup %3156  ;;  %3162 = vpow2.f32 %v2843_v39  ;;  %v2495_v45 = vpop.permute.xlu1 %2494  ;;  %1483 = vst.msk [vmem:[#allocation3] sm:$0xff] %vm1482_vm3, %v1459_v50 }
 0x81a   : > { %2643 = vst.msk [vmem:[%s3367_s22 + $0x18] sm:$0xff] %vm594_vm4, %v2635_v38  ;;  %v2632_v53 = vmax.f32 %v2624_v46, 1e-09  ;;  %v2625_v56 = vsub.f32 %v3155_v43, %v3157_v51  ;;  %3164 = vpow2.f32 %v2842_v47  ;;  %v2511_v48 = vmul.f32 %v2495_v45, %v2471_v35 }
 0x81b   : > { %3166 = vpow2.f32 %v2858_v42  ;;  %v2575_v57 = vmul.f32 %v2852_v52, %v2495_v45 }
 0x81c   : > { %2640 = vst.msk [vmem:[%s3367_s22] sm:$0xff] %vm594_vm4, %v2632_v53  ;;  %v2633_v59 = vmax.f32 %v2625_v56, 1e-09  ;;  %3168 = vpow2.f32 %v2859_v41  ;;  %v2844_v61 = vmul.f32 -1.442695, %v2511_v48  ;;  %v1463_v62 = vpop.permute.xlu0 %1462 }
 0x81d   : > { %v2860_v1 = vmul.f32 -1.442695, %v2575_v57  ;;  %v1461_v2 = vpop.permute.xlu1 %1460  ;;  %1485 = vst.msk [vmem:[#allocation3 + $0x10] sm:$0xff] %vm1482_vm3, %v1463_v62 }
 0x81e   : > { %2641 = vst.msk [vmem:[%s3367_s22 + $0x8] sm:$0xff] %vm594_vm4, %v2633_v59  ;;  %3170 = vpow2.f32 %v2844_v61 }
 0x81f   : > { %1484 = vst.msk [vmem:[#allocation3 + $0x8] sm:$0xff] %vm1482_vm3, %v1461_v2  ;;  %3172 = vpow2.f32 %v2860_v1 }
 0x820   : > { %v1467_v3 = vpop.permute.xlu0 %1466 }
 0x821   : > { %v1465_v4 = vpop.permute.xlu1 %1464  ;;  %1487 = vst.msk [vmem:[#allocation3 + $0x20] sm:$0xff] %vm1482_vm3, %v1467_v3 }
 0x822   : > { %v3159_v13 = vpop.eup %3158  ;;  %1486 = vst.msk [vmem:[#allocation3 + $0x18] sm:$0xff] %vm1482_vm3, %v1465_v4 }
 0x823   : > { %v3161_v14 = vpop.eup %3160  ;;  %v2540_v7 = vadd.f32 1.0, %v3159_v13 }
 0x824   : > { %v2604_v25 = vadd.f32 1.0, %v3161_v14  ;;  %v1471_v29 = vpop.permute.xlu0 %1470 }
 0x825   : > { %3174 = vrcp.f32 %v2540_v7  ;;  %v1469_v10 = vpop.permute.xlu1 %1468  ;;  %1489 = vst.msk [vmem:[#allocation3 + $0x30] sm:$0xff] %vm1482_vm3, %v1471_v29 }
 0x826   : > { %v3163_v9 = vpop.eup %3162  ;;  %3176 = vrcp.f32 %v2604_v25  ;;  %1488 = vst.msk [vmem:[#allocation3 + $0x28] sm:$0xff] %vm1482_vm3, %v1469_v10 }
 0x827   : > { %v3165_v60 = vpop.eup %3164  ;;  %v2542_v0 = vadd.f32 1.0, %v3163_v9 }
 0x828   : > { %v3167_v16 = vpop.eup %3166  ;;  %v2541_v18 = vadd.f32 1.0, %v3165_v60  ;;  %v1500_v63 = vpop.permute.xlu0 %1499 }
 0x829   : > { %v3169_v5 = vpop.eup %3168  ;;  %v2605_v20 = vadd.f32 1.0, %v3167_v16  ;;  %3178 = vrcp.f32 %v2542_v0  ;;  %v1473_v21 = vpop.permute.xlu1 %1472  ;;  %1523 = vst.msk [vmem:[#allocation2] sm:$0xff] %vm1482_vm3, %v1500_v63 }
 0x82a   : > { %3180 = vrcp.f32 %v2541_v18  ;;  %v2606_v24 = vadd.f32 1.0, %v3169_v5  ;;  %1490 = vst.msk [vmem:[#allocation3 + $0x38] sm:$0xff] %vm1482_vm3, %v1473_v21 }
 0x82b   : > { %v3171_v33 = vpop.eup %3170  ;;  %3182 = vrcp.f32 %v2605_v20 }
 0x82c   : > { %v3173_v36 = vpop.eup %3172  ;;  %3184 = vrcp.f32 %v2606_v24  ;;  %v2543_v37 = vadd.f32 1.0, %v3171_v33  ;;  %v1504_v49 = vpop.permute.xlu0 %1503 }
 0x82d   : > { %v2607_v54 = vadd.f32 1.0, %v3173_v36  ;;  %v1502_v55 = vpop.permute.xlu1 %1501  ;;  %1525 = vst.msk [vmem:[#allocation2 + $0x10] sm:$0xff] %vm1482_vm3, %v1504_v49 }
 0x82e   : > { %3186 = vrcp.f32 %v2543_v37  ;;  %1524 = vst.msk [vmem:[#allocation2 + $0x8] sm:$0xff] %vm1482_vm3, %v1502_v55 }
 0x82f   : > { %3188 = vrcp.f32 %v2607_v54 }
 0x830   : > { %v1508_v58 = vpop.permute.xlu0 %1507 }
 0x831   : > { %v1506_v15 = vpop.permute.xlu1 %1505  ;;  %1527 = vst.msk [vmem:[#allocation2 + $0x20] sm:$0xff] %vm1482_vm3, %v1508_v58 }
 0x832   : > { %v3175_v17 = vpop.eup %3174  ;;  %1526 = vst.msk [vmem:[#allocation2 + $0x18] sm:$0xff] %vm1482_vm3, %v1506_v15 }
 0x833   : > { %v3177_v19 = vpop.eup %3176 }
 0x834   : > { %v2628_v27 = vsub.f32 %v3175_v17, %v3177_v19  ;;  %v1512_v28 = vpop.permute.xlu0 %1511 }
 0x835   : > { %v1510_v6 = vpop.permute.xlu1 %1509  ;;  %1529 = vst.msk [vmem:[#allocation2 + $0x30] sm:$0xff] %vm1482_vm3, %v1512_v28 }
 0x836   : > { %v3179_v44 = vpop.eup %3178  ;;  %v2636_v8 = vmax.f32 %v2628_v27, 1e-09  ;;  %1528 = vst.msk [vmem:[#allocation2 + $0x28] sm:$0xff] %vm1482_vm3, %v1510_v6 }
 0x837   : > { %v3181_v11 = vpop.eup %3180 }
 0x838   : > { %v3183_v12 = vpop.eup %3182  ;;  %2644 = vst.msk [vmem:[%s3367_s22 + $0x20] sm:$0xff] %vm594_vm4, %v2636_v8 }
 0x839   : > { %v3185_v40 = vpop.eup %3184  ;;  %v2629_v22 = vsub.f32 %v3181_v11, %v3183_v12  ;;  %v1514_v23 = vpop.permute.xlu1 %1513 }
 0x83a   : > { %v2630_v31 = vsub.f32 %v3179_v44, %v3185_v40  ;;  %1530 = vst.msk [vmem:[#allocation2 + $0x38] sm:$0xff] %vm1482_vm3, %v1514_v23 }
 0x83b   : > { %v3187_v32 = vpop.eup %3186  ;;  %v2637_v30 = vmax.f32 %v2629_v22, 1e-09 }
 0x83c   : > { %v3189_v26 = vpop.eup %3188  ;;  %v2638_v34 = vmax.f32 %v2630_v31, 1e-09 }
 0x83d   : > { %2645 = vst.msk [vmem:[%s3367_s22 + $0x28] sm:$0xff] %vm594_vm4, %v2637_v30  ;;  %v2631_v39 = vsub.f32 %v3187_v32, %v3189_v26 }
 0x83e   : > { %2646 = vst.msk [vmem:[%s3367_s22 + $0x30] sm:$0xff] %vm594_vm4, %v2638_v34 }
 0x83f   : > { %v2639_v41 = vmax.f32 %v2631_v39, 1e-09 }
 0x841   : > { %2647 = vst.msk [vmem:[%s3367_s22 + $0x38] sm:$0xff] %vm594_vm4, %v2639_v41 }
 0x842 PF: > { %s4188_s23 = sld [smem:[#allocation10_spill]] }
 0x843   : > { %s4189_s21 = sld [smem:[#allocation8_spill]] }
 0x844   : > { %s4190_s22 = sld [smem:[#allocation9_spill]] }
 0x845   : > { %s4192_s24 = sld [smem:[#allocation12_spill]] }
 0x848   : > { %s22_s25 = sadd.s32 1, %s4188_s23   ;;  %s4191_s23 = sld [smem:[#allocation11_spill]] }
 0x849   : > { %p19_p8 = scmp.ge.s32.totalorder %s22_s25, 10  }
 0x84b   :  { %21 = sbr.rel (!%p19_p8) target bundleno = 3 (0x3), region = 112 }

</bundles_post_ra>
